<compile_context>
chip_gen: v5e
topology: v5e:2x2
jax: 0.10.0
libtpu: 0.0.40
codegen_flags: <defaults>
</compile_context>

<pallas_src>
import functools

import jax
import jax.numpy as jnp
from jax.experimental import pallas as pl
from jax.experimental.pallas import tpu as pltpu

EPS = 1e-5
LANE = 128

_CP = pltpu.CompilerParams(
    dimension_semantics=("parallel",),      # shard batch-grid across TCs on v7x
    vmem_limit_bytes=48 * 1024 * 1024,      # headroom above default scoped limit,
)                                           # still safe on v7x's 64 MiB VMEM


def _round_up(x, m):
    return (x + m - 1) // m * m


# ----------------------------- Pallas kernels -----------------------------

def _conv3x3_stats_kernel(xp_ref, w_ref, mask_ref, y_ref, st_ref, *, s, Wq):
    """3x3 conv (stride handled via phase decomposition done in glue) for one image.

    xp_ref : (s*s, 1, Mq, Cin_p) bf16  phase-decomposed, spatially padded input
    w_ref  : (9, Cin_p, Cout_p)  bf16  tap-major weights (resident across grid)
    mask_ref: (M, 1) f32               1.0 on valid output columns, 0.0 on junk
    y_ref  : (1, M, Cout_p) f32        conv output (junk columns included)
    st_ref : (1, 2, Cout_p) f32        per-image [sum, sum_of_squares] over valid rows
    """
    M = y_ref.shape[1]
    acc = None
    for di in range(3):
        for dj in range(3):
            ph = (di % s) * s + (dj % s)          # which stride phase
            off = (di // s) * Wq + (dj // s)      # flat (row, col) offset inside phase
            xs = xp_ref[ph, 0, off:off + M, :]    # (M, Cin_p) bf16, static slice
            part = jnp.dot(xs, w_ref[di * 3 + dj],
                           preferred_element_type=jnp.float32)
            acc = part if acc is None else acc + part
    y_ref[0] = acc
    # fused BN partial statistics over the valid columns only
    av = acc * mask_ref[...]
    st_ref[0, 0:1, :] = jnp.sum(av, axis=0, keepdims=True)
    st_ref[0, 1:2, :] = jnp.sum(av * acc, axis=0, keepdims=True)


def _bn_relu_kernel(y_ref, sc_ref, sh_ref, z_ref):
    # z = relu(y * scale + shift), emitted in bf16 for the next conv's MXU pass.
    v = y_ref[0] * sc_ref[...] + sh_ref[...]
    z_ref[0] = jnp.maximum(v, 0.0).astype(z_ref.dtype)


def _bn_sc1x1_add_relu_kernel(y_ref, xs_ref, w3_ref, sc_ref, sh_ref, o_ref):
    # out = relu(BN2(y) + conv1x1(x))   (shortcut matmul fused, never hits HBM)
    res = jnp.dot(xs_ref[0], w3_ref[...], preferred_element_type=jnp.float32)
    v = y_ref[0] * sc_ref[...] + sh_ref[...] + res
    o_ref[0] = jnp.maximum(v, 0.0).astype(o_ref.dtype)


def _bn_id_add_relu_kernel(y_ref, xid_ref, sc_ref, sh_ref, o_ref):
    # out = relu(BN2(y) + x)   (identity shortcut)
    v = y_ref[0] * sc_ref[...] + sh_ref[...] + xid_ref[0]
    o_ref[0] = jnp.maximum(v, 0.0).astype(o_ref.dtype)


# ----------------------------- call wrappers ------------------------------

def _conv3x3_call(xp, w, mask, *, s, Ho, Wq):
    ss, N, Mq, Cin_p = xp.shape
    Cout_p = w.shape[-1]
    M = Ho * Wq
    kernel = functools.partial(_conv3x3_stats_kernel, s=s, Wq=Wq)
    return pl.pallas_call(
        kernel,
        grid=(N,),
        out_shape=(jax.ShapeDtypeStruct((N, M, Cout_p), jnp.float32),
                   jax.ShapeDtypeStruct((N, 2, Cout_p), jnp.float32)),
        in_specs=[pl.BlockSpec((ss, 1, Mq, Cin_p), lambda n: (0, n, 0, 0)),
                  pl.BlockSpec((9, Cin_p, Cout_p), lambda n: (0, 0, 0)),
                  pl.BlockSpec((M, 1), lambda n: (0, 0))],
        out_specs=(pl.BlockSpec((1, M, Cout_p), lambda n: (n, 0, 0)),
                   pl.BlockSpec((1, 2, Cout_p), lambda n: (n, 0, 0))),
        compiler_params=_CP,
    )(xp, w, mask)


def _bn_relu_call(y, scale, shift):
    N, M, C = y.shape
    return pl.pallas_call(
        _bn_relu_kernel,
        grid=(N,),
        out_shape=jax.ShapeDtypeStruct((N, M, C), jnp.bfloat16),
        in_specs=[pl.BlockSpec((1, M, C), lambda n: (n, 0, 0)),
                  pl.BlockSpec((1, C), lambda n: (0, 0)),
                  pl.BlockSpec((1, C), lambda n: (0, 0))],
        out_specs=pl.BlockSpec((1, M, C), lambda n: (n, 0, 0)),
        compiler_params=_CP,
    )(y, scale, shift)


def _bn_sc1x1_add_relu_call(y, xs, w3, scale, shift):
    N, M, C = y.shape
    K = xs.shape[-1]
    return pl.pallas_call(
        _bn_sc1x1_add_relu_kernel,
        grid=(N,),
        out_shape=jax.ShapeDtypeStruct((N, M, C), jnp.float32),
        in_specs=[pl.BlockSpec((1, M, C), lambda n: (n, 0, 0)),
                  pl.BlockSpec((1, M, K), lambda n: (n, 0, 0)),
                  pl.BlockSpec((K, C), lambda n: (0, 0)),
                  pl.BlockSpec((1, C), lambda n: (0, 0)),
                  pl.BlockSpec((1, C), lambda n: (0, 0))],
        out_specs=pl.BlockSpec((1, M, C), lambda n: (n, 0, 0)),
        compiler_params=_CP,
    )(y, xs, w3, scale, shift)


def _bn_id_add_relu_call(y, xid, scale, shift):
    N, M, C = y.shape
    return pl.pallas_call(
        _bn_id_add_relu_kernel,
        grid=(N,),
        out_shape=jax.ShapeDtypeStruct((N, M, C), jnp.float32),
        in_specs=[pl.BlockSpec((1, M, C), lambda n: (n, 0, 0)),
                  pl.BlockSpec((1, M, C), lambda n: (n, 0, 0)),
                  pl.BlockSpec((1, C), lambda n: (0, 0)),
                  pl.BlockSpec((1, C), lambda n: (0, 0))],
        out_specs=pl.BlockSpec((1, M, C), lambda n: (n, 0, 0)),
        compiler_params=_CP,
    )(y, xid, scale, shift)


# ------------------------------- glue (JAX) -------------------------------

def _phase_flat(x_nhwc, s):
    """Spatially pad (pad=1, 3x3) and decompose into stride phases, flattened.

    Returns xp of shape (s*s, N, Hq*Wq, C) such that for conv tap (di, dj) and
    output pixel (ho, wo), the needed input value is
        xp[(di%s)*s + dj%s, n, ((di//s)+ho)*Wq + (dj//s)+wo, :].
    Also returns (Ho, Wo, Wq).  Wq = Wo + 2//s; the kernel computes Wq-Wo extra
    "junk" columns per row which are masked/discarded downstream.
    """
    N, H, W, C = x_nhwc.shape
    Ho = (H - 1) // s + 1
    Wo = (W - 1) // s + 1
    o = 2 // s
    Hq = Ho + o + 1            # +1 safety row so all static slices stay in range
    Wq = Wo + o
    Ht, Wt = s * Hq, s * Wq
    xp = jnp.pad(x_nhwc, ((0, 0),
                          (1, max(0, Ht - H - 1)),
                          (1, max(0, Wt - W - 1)),
                          (0, 0)))[:, :Ht, :Wt, :]
    xp = xp.reshape(N, Hq, s, Wq, s, C)
    xp = jnp.transpose(xp, (2, 4, 0, 1, 3, 5))      # (s, s, N, Hq, Wq, C)
    return xp.reshape(s * s, N, Hq * Wq, C), Ho, Wo, Wq


def _w3x3_mat(w_oihw, cin_p, cout_p):
    """(Cout, Cin, 3, 3) -> (9, Cin_p, Cout_p) bf16, tap-major (kh*3+kw)."""
    cout, cin = w_oihw.shape[0], w_oihw.shape[1]
    w = jnp.transpose(w_oihw, (2, 3, 1, 0)).reshape(9, cin, cout)
    w = jnp.pad(w, ((0, 0), (0, cin_p - cin), (0, cout_p - cout)))
    return w.astype(jnp.bfloat16)


def _w1x1_mat(w_oihw, cin_p, cout_p):
    cout, cin = w_oihw.shape[0], w_oihw.shape[1]
    w = jnp.transpose(w_oihw.reshape(cout, cin), (1, 0))
    w = jnp.pad(w, ((0, cin_p - cin), (0, cout_p - cout)))
    return w.astype(jnp.bfloat16)


def _bn_scale_shift(stats, gamma, beta, count, cout, cout_p):
    """Reduce per-image [sum, sumsq] -> folded BN scale/shift (f32, (1, Cout_p))."""
    tot = jnp.sum(stats.astype(jnp.float32), axis=0)        # (2, Cout_p)
    mean = tot[0] / count
    var = jnp.maximum(tot[1] / count - mean * mean, 0.0)     # biased variance
    g = jnp.pad(gamma.astype(jnp.float32), (0, cout_p - cout), constant_values=1.0)
    b = jnp.pad(beta.astype(jnp.float32), (0, cout_p - cout))
    scale = g * jax.lax.rsqrt(var + EPS)
    shift = b - mean * scale
    return scale.reshape(1, cout_p), shift.reshape(1, cout_p)


def _valid_mask(Ho, Wq, Wo):
    return (jnp.arange(Ho * Wq) % Wq < Wo).astype(jnp.float32).reshape(Ho * Wq, 1)


@functools.partial(jax.jit, static_argnames=("s", "is1x1"))
def resnet_block_forward(x_nchw, params, s=1, is1x1=True):
    """Pallas implementation of resnet_block.forward. Input/output: NCHW float32.

    NOTE: params may contain conv biases b1/b2; they are intentionally ignored
    because a per-channel bias before training-mode BatchNorm cancels exactly.
    """
    x = jnp.transpose(x_nchw, (0, 2, 3, 1)).astype(jnp.float32)   # NHWC
    N, H, W, Cin = x.shape
    Cout = params["w1"].shape[0]
    Cin_p = _round_up(Cin, LANE)
    Cout_p = _round_up(Cout, LANE)

    x_b = jnp.pad(x, ((0, 0), (0, 0), (0, 0), (0, Cin_p - Cin))).astype(jnp.bfloat16)

    # ---- conv1 (3x3, stride s, pad 1) + fused BN1 partial stats ----
    xp1, Ho, Wo, Wq1 = _phase_flat(x_b, s)
    y1, st1 = _conv3x3_call(xp1, _w3x3_mat(params["w1"], Cin_p, Cout_p),
                            _valid_mask(Ho, Wq1, Wo), s=s, Ho=Ho, Wq=Wq1)
    count = N * Ho * Wo
    sc1, sh1 = _bn_scale_shift(st1, params["g1"], params["be1"], count, Cout, Cout_p)

    # ---- BN1 apply + ReLU (emits bf16 for conv2's MXU pass) ----
    z1 = _bn_relu_call(y1, sc1, sh1)

    # ---- conv2 (3x3, stride 1, pad 1) + fused BN2 partial stats ----
    z1v = z1.reshape(N, Ho, Wq1, Cout_p)[:, :, :Wo, :]            # drop junk cols
    xp2, _, _, Wq2 = _phase_flat(z1v, 1)
    y2, st2 = _conv3x3_call(xp2, _w3x3_mat(params["w2"], Cout_p, Cout_p),
                            _valid_mask(Ho, Wq2, Wo), s=1, Ho=Ho, Wq=Wq2)
    sc2, sh2 = _bn_scale_shift(st2, params["g2"], params["be2"], count, Cout, Cout_p)

    M2 = Ho * Wq2
    # ---- shortcut + BN2 apply + residual add + ReLU (single fused kernel) ----
    if is1x1:
        xs = x_b[:, ::s, ::s, :]                                  # (N, Ho, Wo, Cin_p)
        xs = jnp.pad(xs, ((0, 0), (0, 0), (0, Wq2 - Wo), (0, 0))).reshape(N, M2, Cin_p)
        out = _bn_sc1x1_add_relu_call(
            y2, xs, _w1x1_mat(params["w3"], Cin_p, Cout_p), sc2, sh2)
    else:
        if s != 1 or Cin != Cout:
            raise ValueError("identity shortcut requires s == 1 and Cin == Cout")
        xid = jnp.pad(x, ((0, 0), (0, 0), (0, Wq2 - W), (0, Cout_p - Cin)))
        out = _bn_id_add_relu_call(y2, xid.reshape(N, M2, Cout_p), sc2, sh2)

    out = out.reshape(N, Ho, Wq2, Cout_p)[:, :, :Wo, :Cout]
    return jnp.transpose(out, (0, 3, 1, 2))                       # back to NCHW


# --------------------------- pure-JAX reference ---------------------------

def _ref_forward(x, params, s, is1x1):
    def conv(x, w, b, stride, pad):
        y = jax.lax.conv_general_dilated(
            x, w, (stride, stride), [(pad, pad), (pad, pad)],
            dimension_numbers=("NCHW", "OIHW", "NCHW"))
        if b is not None:
            y = y + b[None, :, None, None]
        return y

    def bn(y, g, b):
        mean = y.mean(axis=(0, 2, 3), keepdims=True)
        var = ((y - mean) ** 2).mean(axis=(0, 2, 3), keepdims=True)
        return (y - mean) / jnp.sqrt(var + EPS) * g[None, :, None, None] + b[None, :, None, None]

    y = jax.nn.relu(bn(conv(x, params["w1"], params["b1"], s, 1), params["g1"], params["be1"]))
    y = bn(conv(y, params["w2"], params["b2"], 1, 1), params["g2"], params["be2"])
    sc = conv(x, params["w3"], None, s, 0) if is1x1 else x
    return jax.nn.relu(y + sc)


# ---------------------------------- main -----------------------------------

if __name__ == "__main__":
    key = jax.random.PRNGKey(0)

    def make_params(k, cin, cout, is1x1):
        ks = jax.random.split(k, 9)
        p = {
            "w1": 0.1 * jax.random.normal(ks[0], (cout, cin, 3, 3), jnp.float32),
            "b1": 0.1 * jax.random.normal(ks[1], (cout,), jnp.float32),
            "w2": 0.1 * jax.random.normal(ks[2], (cout, cout, 3, 3), jnp.float32),
            "b2": 0.1 * jax.random.normal(ks[3], (cout,), jnp.float32),
            "g1": 1.0 + 0.1 * jax.random.normal(ks[4], (cout,), jnp.float32),
            "be1": 0.1 * jax.random.normal(ks[5], (cout,), jnp.float32),
            "g2": 1.0 + 0.1 * jax.random.normal(ks[6], (cout,), jnp.float32),
            "be2": 0.1 * jax.random.normal(ks[7], (cout,), jnp.float32),
        }
        if is1x1:
            p["w3"] = 0.1 * jax.random.normal(ks[8], (cout, cin, 1, 1), jnp.float32)
        return p

    configs = [
        # (N, Cin, Cout, H, W, s, is1x1)
        (2, 4, 8, 16, 16, 1, True),    # projection shortcut, stride 1
        (2, 4, 8, 16, 16, 2, True),    # projection shortcut, stride 2
        (2, 8, 8, 16, 16, 1, False),   # identity shortcut
    ]
    for i, (N, Cin, Cout, H, W, s, is1x1) in enumerate(configs):
        kp, kx = jax.random.split(jax.random.fold_in(key, i))
        params = make_params(kp, Cin, Cout, is1x1)
        x = jax.random.normal(kx, (N, Cin, H, W), jnp.float32)

        out = jax.block_until_ready(resnet_block_forward(x, params, s=s, is1x1=is1x1))
        ref = _ref_forward(x, params, s, is1x1)
        Ho = (H - 1) // s + 1
        assert out.shape == ref.shape == (N, Cout, Ho, Ho), (out.shape, ref.shape)
        err = float(jnp.max(jnp.abs(out - ref)))
        # bf16 MXU operands (f32 accumulation) -> allow a few 1e-2 abs error on O(1) outputs
        assert err < 5e-2, f"config {i}: max abs err {err}"

    print("KERNEL_OK")
</pallas_src>

<mosaic_0001>
module attributes {stable_mosaic.version = 11 : i64} {
  func.func @_conv3x3_stats_kernel(%arg0: i32, %arg1: memref<1x1x342x128xbf16, #tpu.memory_space<vmem>>, %arg2: memref<9x128x128xbf16, #tpu.memory_space<vmem>>, %arg3: memref<288x1xf32, #tpu.memory_space<vmem>>, %arg4: memref<1x288x128xf32, #tpu.memory_space<vmem>>, %arg5: memref<1x2x128xf32, #tpu.memory_space<vmem>>) attributes {dimension_semantics = [#tpu.dimension_semantics<parallel>], iteration_bounds = array<i64: 2>, scalar_prefetch = 0 : i64, scratch_operands = 0 : i64, tpu.core_type = #tpu.core_type<tc>, window_params = [{transform_indices = @transform_0, window_bounds = array<i64: 1, 1, 342, 128>}, {pipeline_mode = #tpu.pipeline_mode<synchronous>, transform_indices = @transform_1, window_bounds = array<i64: 9, 128, 128>}, {pipeline_mode = #tpu.pipeline_mode<synchronous>, transform_indices = @transform_2, window_bounds = array<i64: 288, 1>}, {transform_indices = @transform_3, window_bounds = array<i64: 1, 288, 128>}, {transform_indices = @transform_4, window_bounds = array<i64: 1, 2, 128>}]} {
    %c0 = arith.constant 0 : index
    %c0_0 = arith.constant 0 : index
    %c0_1 = arith.constant 0 : index
    %c0_2 = arith.constant 0 : index
    %0 = vector.load %arg1[%c0, %c0_0, %c0_1, %c0_2] : memref<1x1x342x128xbf16, #tpu.memory_space<vmem>>, vector<1x1x288x128xbf16>
    %1 = vector.shape_cast %0 : vector<1x1x288x128xbf16> to vector<288x128xbf16>
    %c0_3 = arith.constant 0 : index
    %c0_4 = arith.constant 0 : index
    %c0_5 = arith.constant 0 : index
    %2 = vector.load %arg2[%c0_3, %c0_4, %c0_5] : memref<9x128x128xbf16, #tpu.memory_space<vmem>>, vector<1x128x128xbf16>
    %3 = vector.shape_cast %2 : vector<1x128x128xbf16> to vector<128x128xbf16>
    %cst = arith.constant dense<0.000000e+00> : vector<288x128xf32>
    %4 = tpu.matmul %1, %3, %cst {dimension_numbers = #tpu.dot_dimension_numbers<[1], [0], [0], [1], [0, 0, 1, 1], [], []>} : vector<288x128xbf16>, vector<128x128xbf16>, vector<288x128xf32> -> vector<288x128xf32>
    %c0_6 = arith.constant 0 : index
    %c0_7 = arith.constant 0 : index
    %c1 = arith.constant 1 : index
    %c0_8 = arith.constant 0 : index
    %5 = vector.load %arg1[%c0_6, %c0_7, %c1, %c0_8] : memref<1x1x342x128xbf16, #tpu.memory_space<vmem>>, vector<1x1x288x128xbf16>
    %6 = vector.shape_cast %5 : vector<1x1x288x128xbf16> to vector<288x128xbf16>
    %c1_9 = arith.constant 1 : index
    %c0_10 = arith.constant 0 : index
    %c0_11 = arith.constant 0 : index
    %7 = vector.load %arg2[%c1_9, %c0_10, %c0_11] : memref<9x128x128xbf16, #tpu.memory_space<vmem>>, vector<1x128x128xbf16>
    %8 = vector.shape_cast %7 : vector<1x128x128xbf16> to vector<128x128xbf16>
    %cst_12 = arith.constant dense<0.000000e+00> : vector<288x128xf32>
    %9 = tpu.matmul %6, %8, %cst_12 {dimension_numbers = #tpu.dot_dimension_numbers<[1], [0], [0], [1], [0, 0, 1, 1], [], []>} : vector<288x128xbf16>, vector<128x128xbf16>, vector<288x128xf32> -> vector<288x128xf32>
    %10 = arith.addf %4, %9 : vector<288x128xf32>
    %c0_13 = arith.constant 0 : index
    %c0_14 = arith.constant 0 : index
    %c2 = arith.constant 2 : index
    %c0_15 = arith.constant 0 : index
    %11 = vector.load %arg1[%c0_13, %c0_14, %c2, %c0_15] : memref<1x1x342x128xbf16, #tpu.memory_space<vmem>>, vector<1x1x288x128xbf16>
    %12 = vector.shape_cast %11 : vector<1x1x288x128xbf16> to vector<288x128xbf16>
    %c2_16 = arith.constant 2 : index
    %c0_17 = arith.constant 0 : index
    %c0_18 = arith.constant 0 : index
    %13 = vector.load %arg2[%c2_16, %c0_17, %c0_18] : memref<9x128x128xbf16, #tpu.memory_space<vmem>>, vector<1x128x128xbf16>
    %14 = vector.shape_cast %13 : vector<1x128x128xbf16> to vector<128x128xbf16>
    %cst_19 = arith.constant dense<0.000000e+00> : vector<288x128xf32>
    %15 = tpu.matmul %12, %14, %cst_19 {dimension_numbers = #tpu.dot_dimension_numbers<[1], [0], [0], [1], [0, 0, 1, 1], [], []>} : vector<288x128xbf16>, vector<128x128xbf16>, vector<288x128xf32> -> vector<288x128xf32>
    %16 = arith.addf %10, %15 : vector<288x128xf32>
    %c0_20 = arith.constant 0 : index
    %c0_21 = arith.constant 0 : index
    %c18 = arith.constant 18 : index
    %c0_22 = arith.constant 0 : index
    %17 = vector.load %arg1[%c0_20, %c0_21, %c18, %c0_22] : memref<1x1x342x128xbf16, #tpu.memory_space<vmem>>, vector<1x1x288x128xbf16>
    %18 = vector.shape_cast %17 : vector<1x1x288x128xbf16> to vector<288x128xbf16>
    %c3 = arith.constant 3 : index
    %c0_23 = arith.constant 0 : index
    %c0_24 = arith.constant 0 : index
    %19 = vector.load %arg2[%c3, %c0_23, %c0_24] : memref<9x128x128xbf16, #tpu.memory_space<vmem>>, vector<1x128x128xbf16>
    %20 = vector.shape_cast %19 : vector<1x128x128xbf16> to vector<128x128xbf16>
    %cst_25 = arith.constant dense<0.000000e+00> : vector<288x128xf32>
    %21 = tpu.matmul %18, %20, %cst_25 {dimension_numbers = #tpu.dot_dimension_numbers<[1], [0], [0], [1], [0, 0, 1, 1], [], []>} : vector<288x128xbf16>, vector<128x128xbf16>, vector<288x128xf32> -> vector<288x128xf32>
    %22 = arith.addf %16, %21 : vector<288x128xf32>
    %c0_26 = arith.constant 0 : index
    %c0_27 = arith.constant 0 : index
    %c19 = arith.constant 19 : index
    %c0_28 = arith.constant 0 : index
    %23 = vector.load %arg1[%c0_26, %c0_27, %c19, %c0_28] : memref<1x1x342x128xbf16, #tpu.memory_space<vmem>>, vector<1x1x288x128xbf16>
    %24 = vector.shape_cast %23 : vector<1x1x288x128xbf16> to vector<288x128xbf16>
    %c4 = arith.constant 4 : index
    %c0_29 = arith.constant 0 : index
    %c0_30 = arith.constant 0 : index
    %25 = vector.load %arg2[%c4, %c0_29, %c0_30] : memref<9x128x128xbf16, #tpu.memory_space<vmem>>, vector<1x128x128xbf16>
    %26 = vector.shape_cast %25 : vector<1x128x128xbf16> to vector<128x128xbf16>
    %cst_31 = arith.constant dense<0.000000e+00> : vector<288x128xf32>
    %27 = tpu.matmul %24, %26, %cst_31 {dimension_numbers = #tpu.dot_dimension_numbers<[1], [0], [0], [1], [0, 0, 1, 1], [], []>} : vector<288x128xbf16>, vector<128x128xbf16>, vector<288x128xf32> -> vector<288x128xf32>
    %28 = arith.addf %22, %27 : vector<288x128xf32>
    %c0_32 = arith.constant 0 : index
    %c0_33 = arith.constant 0 : index
    %c20 = arith.constant 20 : index
    %c0_34 = arith.constant 0 : index
    %29 = vector.load %arg1[%c0_32, %c0_33, %c20, %c0_34] : memref<1x1x342x128xbf16, #tpu.memory_space<vmem>>, vector<1x1x288x128xbf16>
    %30 = vector.shape_cast %29 : vector<1x1x288x128xbf16> to vector<288x128xbf16>
    %c5 = arith.constant 5 : index
    %c0_35 = arith.constant 0 : index
    %c0_36 = arith.constant 0 : index
    %31 = vector.load %arg2[%c5, %c0_35, %c0_36] : memref<9x128x128xbf16, #tpu.memory_space<vmem>>, vector<1x128x128xbf16>
    %32 = vector.shape_cast %31 : vector<1x128x128xbf16> to vector<128x128xbf16>
    %cst_37 = arith.constant dense<0.000000e+00> : vector<288x128xf32>
    %33 = tpu.matmul %30, %32, %cst_37 {dimension_numbers = #tpu.dot_dimension_numbers<[1], [0], [0], [1], [0, 0, 1, 1], [], []>} : vector<288x128xbf16>, vector<128x128xbf16>, vector<288x128xf32> -> vector<288x128xf32>
    %34 = arith.addf %28, %33 : vector<288x128xf32>
    %c0_38 = arith.constant 0 : index
    %c0_39 = arith.constant 0 : index
    %c36 = arith.constant 36 : index
    %c0_40 = arith.constant 0 : index
    %35 = vector.load %arg1[%c0_38, %c0_39, %c36, %c0_40] : memref<1x1x342x128xbf16, #tpu.memory_space<vmem>>, vector<1x1x288x128xbf16>
    %36 = vector.shape_cast %35 : vector<1x1x288x128xbf16> to vector<288x128xbf16>
    %c6 = arith.constant 6 : index
    %c0_41 = arith.constant 0 : index
    %c0_42 = arith.constant 0 : index
    %37 = vector.load %arg2[%c6, %c0_41, %c0_42] : memref<9x128x128xbf16, #tpu.memory_space<vmem>>, vector<1x128x128xbf16>
    %38 = vector.shape_cast %37 : vector<1x128x128xbf16> to vector<128x128xbf16>
    %cst_43 = arith.constant dense<0.000000e+00> : vector<288x128xf32>
    %39 = tpu.matmul %36, %38, %cst_43 {dimension_numbers = #tpu.dot_dimension_numbers<[1], [0], [0], [1], [0, 0, 1, 1], [], []>} : vector<288x128xbf16>, vector<128x128xbf16>, vector<288x128xf32> -> vector<288x128xf32>
    %40 = arith.addf %34, %39 : vector<288x128xf32>
    %c0_44 = arith.constant 0 : index
    %c0_45 = arith.constant 0 : index
    %c37 = arith.constant 37 : index
    %c0_46 = arith.constant 0 : index
    %41 = vector.load %arg1[%c0_44, %c0_45, %c37, %c0_46] : memref<1x1x342x128xbf16, #tpu.memory_space<vmem>>, vector<1x1x288x128xbf16>
    %42 = vector.shape_cast %41 : vector<1x1x288x128xbf16> to vector<288x128xbf16>
    %c7 = arith.constant 7 : index
    %c0_47 = arith.constant 0 : index
    %c0_48 = arith.constant 0 : index
    %43 = vector.load %arg2[%c7, %c0_47, %c0_48] : memref<9x128x128xbf16, #tpu.memory_space<vmem>>, vector<1x128x128xbf16>
    %44 = vector.shape_cast %43 : vector<1x128x128xbf16> to vector<128x128xbf16>
    %cst_49 = arith.constant dense<0.000000e+00> : vector<288x128xf32>
    %45 = tpu.matmul %42, %44, %cst_49 {dimension_numbers = #tpu.dot_dimension_numbers<[1], [0], [0], [1], [0, 0, 1, 1], [], []>} : vector<288x128xbf16>, vector<128x128xbf16>, vector<288x128xf32> -> vector<288x128xf32>
    %46 = arith.addf %40, %45 : vector<288x128xf32>
    %c0_50 = arith.constant 0 : index
    %c0_51 = arith.constant 0 : index
    %c38 = arith.constant 38 : index
    %c0_52 = arith.constant 0 : index
    %47 = vector.load %arg1[%c0_50, %c0_51, %c38, %c0_52] : memref<1x1x342x128xbf16, #tpu.memory_space<vmem>>, vector<1x1x288x128xbf16>
    %48 = vector.shape_cast %47 : vector<1x1x288x128xbf16> to vector<288x128xbf16>
    %c8 = arith.constant 8 : index
    %c0_53 = arith.constant 0 : index
    %c0_54 = arith.constant 0 : index
    %49 = vector.load %arg2[%c8, %c0_53, %c0_54] : memref<9x128x128xbf16, #tpu.memory_space<vmem>>, vector<1x128x128xbf16>
    %50 = vector.shape_cast %49 : vector<1x128x128xbf16> to vector<128x128xbf16>
    %cst_55 = arith.constant dense<0.000000e+00> : vector<288x128xf32>
    %51 = tpu.matmul %48, %50, %cst_55 {dimension_numbers = #tpu.dot_dimension_numbers<[1], [0], [0], [1], [0, 0, 1, 1], [], []>} : vector<288x128xbf16>, vector<128x128xbf16>, vector<288x128xf32> -> vector<288x128xf32>
    %52 = arith.addf %46, %51 : vector<288x128xf32>
    %c0_56 = arith.constant 0 : index
    %c0_57 = arith.constant 0 : index
    %c0_58 = arith.constant 0 : index
    %53 = vector.load %arg4[%c0_56, %c0_57, %c0_58] : memref<1x288x128xf32, #tpu.memory_space<vmem>>, vector<1x288x128xf32>
    %54 = vector.shape_cast %53 : vector<1x288x128xf32> to vector<288x128xf32>
    %55 = vector.shape_cast %52 : vector<288x128xf32> to vector<1x288x128xf32>
    tpu.vector_store %arg4[%c0_56, %c0_57, %c0_58], %55 {strides = array<i32>} : memref<1x288x128xf32, #tpu.memory_space<vmem>>, vector<1x288x128xf32>,
    %c0_59 = arith.constant 0 : index
    %c0_60 = arith.constant 0 : index
    %56 = vector.load %arg3[%c0_59, %c0_60] : memref<288x1xf32, #tpu.memory_space<vmem>>, vector<288x1xf32>
    %57 = vector.broadcast %56 : vector<288x1xf32> to vector<288x128xf32>
    %58 = arith.mulf %52, %57 : vector<288x128xf32>
    %cst_61 = arith.constant dense<0.000000e+00> : vector<128xf32>
    %59 = vector.multi_reduction <add>, %58, %cst_61 [0] : vector<288x128xf32> to vector<128xf32>
    %60 = vector.shape_cast %59 : vector<128xf32> to vector<1x128xf32>
    %c0_62 = arith.constant 0 : index
    %c0_63 = arith.constant 0 : index
    %c0_64 = arith.constant 0 : index
    %61 = vector.load %arg5[%c0_62, %c0_63, %c0_64] : memref<1x2x128xf32, #tpu.memory_space<vmem>>, vector<1x1x128xf32>
    %62 = vector.shape_cast %61 : vector<1x1x128xf32> to vector<1x128xf32>
    %63 = vector.shape_cast %60 : vector<1x128xf32> to vector<1x1x128xf32>
    tpu.vector_store %arg5[%c0_62, %c0_63, %c0_64], %63 {strides = array<i32>} : memref<1x2x128xf32, #tpu.memory_space<vmem>>, vector<1x1x128xf32>,
    %64 = arith.mulf %58, %52 : vector<288x128xf32>
    %cst_65 = arith.constant dense<0.000000e+00> : vector<128xf32>
    %65 = vector.multi_reduction <add>, %64, %cst_65 [0] : vector<288x128xf32> to vector<128xf32>
    %66 = vector.shape_cast %65 : vector<128xf32> to vector<1x128xf32>
    %c0_66 = arith.constant 0 : index
    %c1_67 = arith.constant 1 : index
    %c0_68 = arith.constant 0 : index
    %67 = vector.load %arg5[%c0_66, %c1_67, %c0_68] : memref<1x2x128xf32, #tpu.memory_space<vmem>>, vector<1x1x128xf32>
    %68 = vector.shape_cast %67 : vector<1x1x128xf32> to vector<1x128xf32>
    %69 = vector.shape_cast %66 : vector<1x128xf32> to vector<1x1x128xf32>
    tpu.vector_store %arg5[%c0_66, %c1_67, %c0_68], %69 {strides = array<i32>} : memref<1x2x128xf32, #tpu.memory_space<vmem>>, vector<1x1x128xf32>,
    return
  }
  func.func @transform_0(%arg0: i32) -> (i32, i32, i32, i32) {
    %c0_i32 = arith.constant 0 : i32
    %c0_i32_0 = arith.constant 0 : i32
    %c0_i32_1 = arith.constant 0 : i32
    %c0_i32_2 = arith.constant 0 : i32
    return %c0_i32, %arg0, %c0_i32_0, %c0_i32_1 : i32, i32, i32, i32
  }
  func.func @transform_1(%arg0: i32) -> (i32, i32, i32) {
    %c0_i32 = arith.constant 0 : i32
    %c0_i32_0 = arith.constant 0 : i32
    %c0_i32_1 = arith.constant 0 : i32
    %c0_i32_2 = arith.constant 0 : i32
    return %c0_i32, %c0_i32_0, %c0_i32_1 : i32, i32, i32
  }
  func.func @transform_2(%arg0: i32) -> (i32, i32) {
    %c0_i32 = arith.constant 0 : i32
    %c0_i32_0 = arith.constant 0 : i32
    %c0_i32_1 = arith.constant 0 : i32
    return %c0_i32, %c0_i32_0 : i32, i32
  }
  func.func @transform_3(%arg0: i32) -> (i32, i32, i32) {
    %c0_i32 = arith.constant 0 : i32
    %c0_i32_0 = arith.constant 0 : i32
    %c0_i32_1 = arith.constant 0 : i32
    return %arg0, %c0_i32, %c0_i32_0 : i32, i32, i32
  }
  func.func @transform_4(%arg0: i32) -> (i32, i32, i32) {
    %c0_i32 = arith.constant 0 : i32
    %c0_i32_0 = arith.constant 0 : i32
    %c0_i32_1 = arith.constant 0 : i32
    return %arg0, %c0_i32, %c0_i32_0 : i32, i32, i32
  }
}

module attributes {stable_mosaic.version = 11 : i64} {
  func.func @_bn_relu_kernel(%arg0: i32, %arg1: memref<1x288x128xf32, #tpu.memory_space<vmem>>, %arg2: memref<1x128xf32, #tpu.memory_space<vmem>>, %arg3: memref<1x128xf32, #tpu.memory_space<vmem>>, %arg4: memref<1x288x128xbf16, #tpu.memory_space<vmem>>) attributes {dimension_semantics = [#tpu.dimension_semantics<parallel>], iteration_bounds = array<i64: 2>, scalar_prefetch = 0 : i64, scratch_operands = 0 : i64, tpu.core_type = #tpu.core_type<tc>, window_params = [{transform_indices = @transform_0, window_bounds = array<i64: 1, 288, 128>}, {pipeline_mode = #tpu.pipeline_mode<synchronous>, transform_indices = @transform_1, window_bounds = array<i64: 1, 128>}, {pipeline_mode = #tpu.pipeline_mode<synchronous>, transform_indices = @transform_2, window_bounds = array<i64: 1, 128>}, {transform_indices = @transform_3, window_bounds = array<i64: 1, 288, 128>}]} {
    %c0 = arith.constant 0 : index
    %c0_0 = arith.constant 0 : index
    %c0_1 = arith.constant 0 : index
    %0 = vector.load %arg1[%c0, %c0_0, %c0_1] : memref<1x288x128xf32, #tpu.memory_space<vmem>>, vector<1x288x128xf32>
    %1 = vector.shape_cast %0 : vector<1x288x128xf32> to vector<288x128xf32>
    %c0_2 = arith.constant 0 : index
    %c0_3 = arith.constant 0 : index
    %2 = vector.load %arg2[%c0_2, %c0_3] : memref<1x128xf32, #tpu.memory_space<vmem>>, vector<1x128xf32>
    %3 = vector.broadcast %2 : vector<1x128xf32> to vector<288x128xf32>
    %4 = arith.mulf %1, %3 : vector<288x128xf32>
    %c0_4 = arith.constant 0 : index
    %c0_5 = arith.constant 0 : index
    %5 = vector.load %arg3[%c0_4, %c0_5] : memref<1x128xf32, #tpu.memory_space<vmem>>, vector<1x128xf32>
    %6 = vector.broadcast %5 : vector<1x128xf32> to vector<288x128xf32>
    %7 = arith.addf %4, %6 : vector<288x128xf32>
    %cst = arith.constant 0.000000e+00 : f32
    %8 = vector.broadcast %cst : f32 to vector<288x128xf32>
    %9 = arith.maximumf %7, %8 : vector<288x128xf32>
    %10 = arith.truncf %9 : vector<288x128xf32> to vector<288x128xbf16>
    %c0_6 = arith.constant 0 : index
    %c0_7 = arith.constant 0 : index
    %c0_8 = arith.constant 0 : index
    %11 = vector.load %arg4[%c0_6, %c0_7, %c0_8] : memref<1x288x128xbf16, #tpu.memory_space<vmem>>, vector<1x288x128xbf16>
    %12 = vector.shape_cast %11 : vector<1x288x128xbf16> to vector<288x128xbf16>
    %13 = vector.shape_cast %10 : vector<288x128xbf16> to vector<1x288x128xbf16>
    tpu.vector_store %arg4[%c0_6, %c0_7, %c0_8], %13 {strides = array<i32>} : memref<1x288x128xbf16, #tpu.memory_space<vmem>>, vector<1x288x128xbf16>,
    return
  }
  func.func @transform_0(%arg0: i32) -> (i32, i32, i32) {
    %c0_i32 = arith.constant 0 : i32
    %c0_i32_0 = arith.constant 0 : i32
    %c0_i32_1 = arith.constant 0 : i32
    return %arg0, %c0_i32, %c0_i32_0 : i32, i32, i32
  }
  func.func @transform_1(%arg0: i32) -> (i32, i32) {
    %c0_i32 = arith.constant 0 : i32
    %c0_i32_0 = arith.constant 0 : i32
    %c0_i32_1 = arith.constant 0 : i32
    return %c0_i32, %c0_i32_0 : i32, i32
  }
  func.func @transform_2(%arg0: i32) -> (i32, i32) {
    %c0_i32 = arith.constant 0 : i32
    %c0_i32_0 = arith.constant 0 : i32
    %c0_i32_1 = arith.constant 0 : i32
    return %c0_i32, %c0_i32_0 : i32, i32
  }
  func.func @transform_3(%arg0: i32) -> (i32, i32, i32) {
    %c0_i32 = arith.constant 0 : i32
    %c0_i32_0 = arith.constant 0 : i32
    %c0_i32_1 = arith.constant 0 : i32
    return %arg0, %c0_i32, %c0_i32_0 : i32, i32, i32
  }
}

module attributes {stable_mosaic.version = 11 : i64} {
  func.func @_bn_sc1x1_add_relu_kernel(%arg0: i32, %arg1: memref<1x288x128xf32, #tpu.memory_space<vmem>>, %arg2: memref<1x288x128xbf16, #tpu.memory_space<vmem>>, %arg3: memref<128x128xbf16, #tpu.memory_space<vmem>>, %arg4: memref<1x128xf32, #tpu.memory_space<vmem>>, %arg5: memref<1x128xf32, #tpu.memory_space<vmem>>, %arg6: memref<1x288x128xf32, #tpu.memory_space<vmem>>) attributes {dimension_semantics = [#tpu.dimension_semantics<parallel>], iteration_bounds = array<i64: 2>, scalar_prefetch = 0 : i64, scratch_operands = 0 : i64, tpu.core_type = #tpu.core_type<tc>, window_params = [{transform_indices = @transform_0, window_bounds = array<i64: 1, 288, 128>}, {transform_indices = @transform_1, window_bounds = array<i64: 1, 288, 128>}, {pipeline_mode = #tpu.pipeline_mode<synchronous>, transform_indices = @transform_2, window_bounds = array<i64: 128, 128>}, {pipeline_mode = #tpu.pipeline_mode<synchronous>, transform_indices = @transform_3, window_bounds = array<i64: 1, 128>}, {pipeline_mode = #tpu.pipeline_mode<synchronous>, transform_indices = @transform_4, window_bounds = array<i64: 1, 128>}, {transform_indices = @transform_5, window_bounds = array<i64: 1, 288, 128>}]} {
    %c0 = arith.constant 0 : index
    %c0_0 = arith.constant 0 : index
    %c0_1 = arith.constant 0 : index
    %0 = vector.load %arg2[%c0, %c0_0, %c0_1] : memref<1x288x128xbf16, #tpu.memory_space<vmem>>, vector<1x288x128xbf16>
    %1 = vector.shape_cast %0 : vector<1x288x128xbf16> to vector<288x128xbf16>
    %c0_2 = arith.constant 0 : index
    %c0_3 = arith.constant 0 : index
    %2 = vector.load %arg3[%c0_2, %c0_3] : memref<128x128xbf16, #tpu.memory_space<vmem>>, vector<128x128xbf16>
    %cst = arith.constant dense<0.000000e+00> : vector<288x128xf32>
    %3 = tpu.matmul %1, %2, %cst {dimension_numbers = #tpu.dot_dimension_numbers<[1], [0], [0], [1], [0, 0, 1, 1], [], []>} : vector<288x128xbf16>, vector<128x128xbf16>, vector<288x128xf32> -> vector<288x128xf32>
    %c0_4 = arith.constant 0 : index
    %c0_5 = arith.constant 0 : index
    %c0_6 = arith.constant 0 : index
    %4 = vector.load %arg1[%c0_4, %c0_5, %c0_6] : memref<1x288x128xf32, #tpu.memory_space<vmem>>, vector<1x288x128xf32>
    %5 = vector.shape_cast %4 : vector<1x288x128xf32> to vector<288x128xf32>
    %c0_7 = arith.constant 0 : index
    %c0_8 = arith.constant 0 : index
    %6 = vector.load %arg4[%c0_7, %c0_8] : memref<1x128xf32, #tpu.memory_space<vmem>>, vector<1x128xf32>
    %7 = vector.broadcast %6 : vector<1x128xf32> to vector<288x128xf32>
    %8 = arith.mulf %5, %7 : vector<288x128xf32>
    %c0_9 = arith.constant 0 : index
    %c0_10 = arith.constant 0 : index
    %9 = vector.load %arg5[%c0_9, %c0_10] : memref<1x128xf32, #tpu.memory_space<vmem>>, vector<1x128xf32>
    %10 = vector.broadcast %9 : vector<1x128xf32> to vector<288x128xf32>
    %11 = arith.addf %8, %10 : vector<288x128xf32>
    %12 = arith.addf %11, %3 : vector<288x128xf32>
    %cst_11 = arith.constant 0.000000e+00 : f32
    %13 = vector.broadcast %cst_11 : f32 to vector<288x128xf32>
    %14 = arith.maximumf %12, %13 : vector<288x128xf32>
    %c0_12 = arith.constant 0 : index
    %c0_13 = arith.constant 0 : index
    %c0_14 = arith.constant 0 : index
    %15 = vector.load %arg6[%c0_12, %c0_13, %c0_14] : memref<1x288x128xf32, #tpu.memory_space<vmem>>, vector<1x288x128xf32>
    %16 = vector.shape_cast %15 : vector<1x288x128xf32> to vector<288x128xf32>
    %17 = vector.shape_cast %14 : vector<288x128xf32> to vector<1x288x128xf32>
    tpu.vector_store %arg6[%c0_12, %c0_13, %c0_14], %17 {strides = array<i32>} : memref<1x288x128xf32, #tpu.memory_space<vmem>>, vector<1x288x128xf32>,
    return
  }
  func.func @transform_0(%arg0: i32) -> (i32, i32, i32) {
    %c0_i32 = arith.constant 0 : i32
    %c0_i32_0 = arith.constant 0 : i32
    %c0_i32_1 = arith.constant 0 : i32
    return %arg0, %c0_i32, %c0_i32_0 : i32, i32, i32
  }
  func.func @transform_1(%arg0: i32) -> (i32, i32, i32) {
    %c0_i32 = arith.constant 0 : i32
    %c0_i32_0 = arith.constant 0 : i32
    %c0_i32_1 = arith.constant 0 : i32
    return %arg0, %c0_i32, %c0_i32_0 : i32, i32, i32
  }
  func.func @transform_2(%arg0: i32) -> (i32, i32) {
    %c0_i32 = arith.constant 0 : i32
    %c0_i32_0 = arith.constant 0 : i32
    %c0_i32_1 = arith.constant 0 : i32
    return %c0_i32, %c0_i32_0 : i32, i32
  }
  func.func @transform_3(%arg0: i32) -> (i32, i32) {
    %c0_i32 = arith.constant 0 : i32
    %c0_i32_0 = arith.constant 0 : i32
    %c0_i32_1 = arith.constant 0 : i32
    return %c0_i32, %c0_i32_0 : i32, i32
  }
  func.func @transform_4(%arg0: i32) -> (i32, i32) {
    %c0_i32 = arith.constant 0 : i32
    %c0_i32_0 = arith.constant 0 : i32
    %c0_i32_1 = arith.constant 0 : i32
    return %c0_i32, %c0_i32_0 : i32, i32
  }
  func.func @transform_5(%arg0: i32) -> (i32, i32, i32) {
    %c0_i32 = arith.constant 0 : i32
    %c0_i32_0 = arith.constant 0 : i32
    %c0_i32_1 = arith.constant 0 : i32
    return %arg0, %c0_i32, %c0_i32_0 : i32, i32, i32
  }
}

</mosaic_0001>

<bundles_post_ra>
// kernel: resnet_block_forward.5
= control target key start
LH: loop header
LB: loop body
LE: loop exit
PB: predicated region body
PF: predicated region fallthrough
CT: control target
= control target key end

     0   :  { %s606_s12 = smov 0   ;;  %s767_s0 = inlined_call_operand.vmem [shape: f32[2,288,128], index: 0, kind: input, shape index: {}]   ;;  %s768_s1 = inlined_call_operand.vmem [shape: f32[1,128], index: 1, kind: input, shape index: {}]   ;;  %s769_s2 = inlined_call_operand.vmem [shape: f32[1,128], index: 2, kind: input, shape index: {}]   ;;  %s770_s3 = inlined_call_operand.vmem [shape: bf16[2,288,128], index: 3, kind: output, shape index: {}]  }
   0x1 LB: > { %s450_s13 = sadd.s32 4294967295, %s584_s12   ;;  %p454_p0 = scmp.ge.s32.totalorder %s584_s12, 1  ;;  %s584_s12 = sphi %s606_s12, %s13_s12  }
   0x2   : > { %p137_p1 = scmp.lt.s32.totalorder %s584_s12, 3 }
   0x4   : > { %p138_p2 = pnand %p454_p0, %p137_p1 }
   0x5   : > { %p161_p3 = scmp.lt.s32.totalorder (!%p138_p2), %s450_s13, 1 }
   0x6   : > { %141 = sbr.rel (%p138_p2) target bundleno = 53 (0x35), region = 32 }
   0xb   : > { %s772_s13 = smov (!%p161_p3, %s450_s13), 1  ;;  %v620_v0 = vld [vmem:[%s768_s1] ss:$0 sm:$0xff] }
   0xc   : > { %s566_s14 = smul.u32 288, %s772_s13  ;;  %v630_v1 = vld [vmem:[%s769_s2] ss:$0 sm:$0xff] }
   0xd   : > { %s567_s22 = smul.u32 144, %s772_s13 }
   0xe   : > { %s625_s19 = scalar_lea.vmem %s767_s0, %s566_s14 }
   0xf   : > { %v171_v2 = vld [vmem:[%s625_s19] sm:$0xff]  ;;  %v172_v3 = vld [vmem:[%s625_s19 + $0x8] sm:$0xff]  ;;  %v173_v4 = vld [vmem:[%s625_s19 + $0x10] sm:$0xff]  ;;  %s662_s25 = scalar_lea.vmem %s770_s3, %s567_s22 }
  0x10   : > { %v211_v5 = vmul.f32 %v620_v0, %v171_v2  ;;  %v212_v6 = vmul.f32 %v620_v0, %v172_v3  ;;  %v174_v7 = vld [vmem:[%s625_s19 + $0x18] sm:$0xff]  ;;  %v213_v8 = vmul.f32 %v620_v0, %v173_v4  ;;  %v175_v9 = vld [vmem:[%s625_s19 + $0x20] sm:$0xff]  ;;  %v176_v10 = vld [vmem:[%s625_s19 + $0x28] sm:$0xff] }
  0x11   : > { %v214_v11 = vmul.f32 %v620_v0, %v174_v7  ;;  %v215_v12 = vmul.f32 %v620_v0, %v175_v9  ;;  %v216_v13 = vmul.f32 %v620_v0, %v176_v10  ;;  %v177_v14 = vld [vmem:[%s625_s19 + $0x30] sm:$0xff]  ;;  %v178_v15 = vld [vmem:[%s625_s19 + $0x38] sm:$0xff]  ;;  %v179_v24 = vld [vmem:[%s625_s19 + $0x40] sm:$0xff] }
  0x12   : > { %v251_v16 = vadd.f32 %v630_v1, %v211_v5  ;;  %v252_v17 = vadd.f32 %v630_v1, %v212_v6  ;;  %v253_v18 = vadd.f32 %v630_v1, %v213_v8  ;;  %v217_v19 = vmul.f32 %v620_v0, %v177_v14  ;;  %v180_v25 = vld [vmem:[%s625_s19 + $0x48] sm:$0xff]  ;;  %v181_v30 = vld [vmem:[%s625_s19 + $0x50] sm:$0xff]  ;;  %v182_v35 = vld [vmem:[%s625_s19 + $0x58] sm:$0xff] }
  0x13   : > { %v254_v20 = vadd.f32 %v630_v1, %v214_v11  ;;  %v255_v21 = vadd.f32 %v630_v1, %v215_v12  ;;  %v256_v22 = vadd.f32 %v630_v1, %v216_v13  ;;  %v218_v23 = vmul.f32 %v620_v0, %v178_v15  ;;  %v183_v36 = vld [vmem:[%s625_s19 + $0x60] sm:$0xff]  ;;  %v184_v41 = vld [vmem:[%s625_s19 + $0x68] sm:$0xff]  ;;  %v185_v42 = vld [vmem:[%s625_s19 + $0x70] sm:$0xff] }
  0x14   : > { %v287_v26 = vmax.f32 %v251_v16, 0.0  ;;  %v288_v27 = vmax.f32 %v252_v17, 0.0  ;;  %v289_v28 = vmax.f32 %v253_v18, 0.0  ;;  %v257_v29 = vadd.f32 %v630_v1, %v217_v19  ;;  %v186_v51 = vld [vmem:[%s625_s19 + $0x78] sm:$0xff]  ;;  %v187_v56 = vld [vmem:[%s625_s19 + $0x80] sm:$0xff]  ;;  %v188_v61 = vld [vmem:[%s625_s19 + $0x88] sm:$0xff] }
  0x15   : > { %v290_v31 = vmax.f32 %v254_v20, 0.0  ;;  %v291_v32 = vmax.f32 %v255_v21, 0.0  ;;  %v292_v33 = vmax.f32 %v256_v22, 0.0  ;;  %v258_v34 = vadd.f32 %v630_v1, %v218_v23  ;;  %v189_v4 = vld [vmem:[%s625_s19 + $0x90] sm:$0xff]  ;;  %v190_v5 = vld [vmem:[%s625_s19 + $0x98] sm:$0xff]  ;;  %v191_v10 = vld [vmem:[%s625_s19 + $0xa0] sm:$0xff] }
  0x16   : > { %v462_v37 = vpack.c.bf16 %v288_v27, %v287_v26  ;;  %v293_v38 = vmax.f32 %v257_v29, 0.0  ;;  %v219_v39 = vmul.f32 %v620_v0, %v179_v24  ;;  %v220_v40 = vmul.f32 %v620_v0, %v180_v25  ;;  %v192_v15 = vld [vmem:[%s625_s19 + $0xa8] sm:$0xff]  ;;  %v193_v20 = vld [vmem:[%s625_s19 + $0xb0] sm:$0xff]  ;;  %v194_v25 = vld [vmem:[%s625_s19 + $0xb8] sm:$0xff] }
  0x17   : > { %v467_v43 = vpack.c.bf16 %v290_v31, %v289_v28  ;;  %v472_v44 = vpack.c.bf16 %v292_v33, %v291_v32  ;;  %v294_v45 = vmax.f32 %v258_v34, 0.0  ;;  %v221_v46 = vmul.f32 %v620_v0, %v181_v30  ;;  %v195_v30 = vld [vmem:[%s625_s19 + $0xc0] sm:$0xff] }
  0x18   : > { %463 = vst [vmem:[%s662_s25] sm:$0xff] %v462_v37   ;;  %v259_v47 = vadd.f32 %v630_v1, %v219_v39  ;;  %v260_v48 = vadd.f32 %v630_v1, %v220_v40  ;;  %v222_v49 = vmul.f32 %v620_v0, %v182_v35  ;;  %v223_v50 = vmul.f32 %v620_v0, %v183_v36  ;;  %v196_v35 = vld [vmem:[%s625_s19 + $0xc8] sm:$0xff]  ;;  %v197_v40 = vld [vmem:[%s625_s19 + $0xd0] sm:$0xff] }
  0x19   : > { %549 = vst [vmem:[%s662_s25 + $0x8] sm:$0xff] %v467_v43   ;;  %v477_v52 = vpack.c.bf16 %v294_v45, %v293_v38  ;;  %v261_v53 = vadd.f32 %v630_v1, %v221_v46  ;;  %v224_v54 = vmul.f32 %v620_v0, %v184_v41  ;;  %v225_v55 = vmul.f32 %v620_v0, %v185_v42  ;;  %v198_v41 = vld [vmem:[%s625_s19 + $0xd8] sm:$0xff]  ;;  %v199_v46 = vld [vmem:[%s625_s19 + $0xe0] sm:$0xff] }
  0x1a   : > { %550 = vst [vmem:[%s662_s25 + $0x10] sm:$0xff] %v472_v44   ;;  %v295_v57 = vmax.f32 %v259_v47, 0.0  ;;  %v296_v58 = vmax.f32 %v260_v48, 0.0  ;;  %v262_v59 = vadd.f32 %v630_v1, %v222_v49  ;;  %v263_v60 = vadd.f32 %v630_v1, %v223_v50 }
  0x1b   : > { %551 = vst [vmem:[%s662_s25 + $0x18] sm:$0xff] %v477_v52   ;;  %v297_v62 = vmax.f32 %v261_v53, 0.0  ;;  %v264_v63 = vadd.f32 %v630_v1, %v224_v54  ;;  %v226_v2 = vmul.f32 %v620_v0, %v186_v51  ;;  %v265_v3 = vadd.f32 %v630_v1, %v225_v55  ;;  %v200_v51 = vld [vmem:[%s625_s19 + $0xe8] sm:$0xff] }
  0x1c   : > { %v482_v6 = vpack.c.bf16 %v296_v58, %v295_v57  ;;  %v298_v7 = vmax.f32 %v262_v59, 0.0  ;;  %v299_v8 = vmax.f32 %v263_v60, 0.0  ;;  %v227_v9 = vmul.f32 %v620_v0, %v187_v56  ;;  %v201_v56 = vld [vmem:[%s625_s19 + $0xf0] sm:$0xff] }
  0x1d   : > { %v300_v11 = vmax.f32 %v264_v63, 0.0  ;;  %v266_v12 = vadd.f32 %v630_v1, %v226_v2  ;;  %v301_v13 = vmax.f32 %v265_v3, 0.0  ;;  %v228_v14 = vmul.f32 %v620_v0, %v188_v61  ;;  %v202_v61 = vld [vmem:[%s625_s19 + $0xf8] sm:$0xff] }
  0x1e   : > { %552 = vst [vmem:[%s662_s25 + $0x20] sm:$0xff] %v482_v6   ;;  %v487_v16 = vpack.c.bf16 %v298_v7, %v297_v62  ;;  %v267_v17 = vadd.f32 %v630_v1, %v227_v9  ;;  %v229_v18 = vmul.f32 %v620_v0, %v189_v4  ;;  %v230_v19 = vmul.f32 %v620_v0, %v190_v5  ;;  %v203_v4 = vld [vmem:[%s625_s19 + $0x100] sm:$0xff]  ;;  %v204_v9 = vld [vmem:[%s625_s19 + $0x108] sm:$0xff] }
  0x1f   : > { %v492_v21 = vpack.c.bf16 %v300_v11, %v299_v8  ;;  %v302_v22 = vmax.f32 %v266_v12, 0.0  ;;  %v268_v23 = vadd.f32 %v630_v1, %v228_v14  ;;  %v231_v24 = vmul.f32 %v620_v0, %v191_v10  ;;  %v205_v14 = vld [vmem:[%s625_s19 + $0x110] sm:$0xff] }
  0x20   : > { %553 = vst [vmem:[%s662_s25 + $0x28] sm:$0xff] %v487_v16   ;;  %v303_v26 = vmax.f32 %v267_v17, 0.0  ;;  %v269_v27 = vadd.f32 %v630_v1, %v229_v18  ;;  %v270_v28 = vadd.f32 %v630_v1, %v230_v19  ;;  %v232_v29 = vmul.f32 %v620_v0, %v192_v15  ;;  %v206_v15 = vld [vmem:[%s625_s19 + $0x118] sm:$0xff] }
  0x21   : > { %554 = vst [vmem:[%s662_s25 + $0x30] sm:$0xff] %v492_v21   ;;  %v497_v31 = vpack.c.bf16 %v302_v22, %v301_v13  ;;  %v304_v32 = vmax.f32 %v268_v23, 0.0  ;;  %v271_v33 = vadd.f32 %v630_v1, %v231_v24  ;;  %v233_v34 = vmul.f32 %v620_v0, %v193_v20 }
  0x22   : > { %v305_v36 = vmax.f32 %v269_v27, 0.0  ;;  %v306_v37 = vmax.f32 %v270_v28, 0.0  ;;  %v272_v38 = vadd.f32 %v630_v1, %v232_v29  ;;  %v234_v39 = vmul.f32 %v620_v0, %v194_v25 }
  0x23   : > { %555 = vst [vmem:[%s662_s25 + $0x38] sm:$0xff] %v497_v31   ;;  %v502_v42 = vpack.c.bf16 %v304_v32, %v303_v26  ;;  %v307_v43 = vmax.f32 %v271_v33, 0.0  ;;  %v273_v44 = vadd.f32 %v630_v1, %v233_v34  ;;  %v235_v45 = vmul.f32 %v620_v0, %v195_v30 }
  0x24   : > { %v507_v47 = vpack.c.bf16 %v306_v37, %v305_v36  ;;  %v308_v48 = vmax.f32 %v272_v38, 0.0  ;;  %v274_v49 = vadd.f32 %v630_v1, %v234_v39  ;;  %v236_v50 = vmul.f32 %v620_v0, %v196_v35 }
  0x25   : > { %556 = vst [vmem:[%s662_s25 + $0x40] sm:$0xff] %v502_v42   ;;  %v309_v52 = vmax.f32 %v273_v44, 0.0  ;;  %v275_v53 = vadd.f32 %v630_v1, %v235_v45  ;;  %v237_v54 = vmul.f32 %v620_v0, %v197_v40  ;;  %v238_v55 = vmul.f32 %v620_v0, %v198_v41 }
  0x26   : > { %557 = vst [vmem:[%s662_s25 + $0x48] sm:$0xff] %v507_v47   ;;  %v512_v57 = vpack.c.bf16 %v308_v48, %v307_v43  ;;  %v310_v58 = vmax.f32 %v274_v49, 0.0  ;;  %v276_v59 = vadd.f32 %v630_v1, %v236_v50  ;;  %v239_v60 = vmul.f32 %v620_v0, %v199_v46 }
  0x27   : > { %v311_v62 = vmax.f32 %v275_v53, 0.0  ;;  %v277_v63 = vadd.f32 %v630_v1, %v237_v54  ;;  %v278_v2 = vadd.f32 %v630_v1, %v238_v55  ;;  %v240_v3 = vmul.f32 %v620_v0, %v200_v51 }
  0x28   : > { %558 = vst [vmem:[%s662_s25 + $0x50] sm:$0xff] %v512_v57   ;;  %v517_v5 = vpack.c.bf16 %v310_v58, %v309_v52  ;;  %v312_v6 = vmax.f32 %v276_v59, 0.0  ;;  %v279_v7 = vadd.f32 %v630_v1, %v239_v60  ;;  %v241_v8 = vmul.f32 %v620_v0, %v201_v56 }
  0x29   : > { %v313_v10 = vmax.f32 %v277_v63, 0.0  ;;  %v314_v11 = vmax.f32 %v278_v2, 0.0  ;;  %v280_v12 = vadd.f32 %v630_v1, %v240_v3  ;;  %v242_v13 = vmul.f32 %v620_v0, %v202_v61 }
  0x2a   : > { %559 = vst [vmem:[%s662_s25 + $0x58] sm:$0xff] %v517_v5   ;;  %v522_v16 = vpack.c.bf16 %v312_v6, %v311_v62  ;;  %v315_v17 = vmax.f32 %v279_v7, 0.0  ;;  %v281_v18 = vadd.f32 %v630_v1, %v241_v8  ;;  %v243_v19 = vmul.f32 %v620_v0, %v203_v4 }
  0x2b   : > { %v527_v20 = vpack.c.bf16 %v314_v11, %v313_v10  ;;  %v316_v21 = vmax.f32 %v280_v12, 0.0  ;;  %v282_v22 = vadd.f32 %v630_v1, %v242_v13  ;;  %v244_v23 = vmul.f32 %v620_v0, %v204_v9 }
  0x2c   : > { %560 = vst [vmem:[%s662_s25 + $0x60] sm:$0xff] %v522_v16   ;;  %v317_v24 = vmax.f32 %v281_v18, 0.0  ;;  %v283_v25 = vadd.f32 %v630_v1, %v243_v19  ;;  %v245_v26 = vmul.f32 %v620_v0, %v205_v14  ;;  %v246_v27 = vmul.f32 %v620_v0, %v206_v15 }
  0x2d   : > { %561 = vst [vmem:[%s662_s25 + $0x68] sm:$0xff] %v527_v20   ;;  %v532_v28 = vpack.c.bf16 %v316_v21, %v315_v17  ;;  %v318_v29 = vmax.f32 %v282_v22, 0.0  ;;  %v284_v30 = vadd.f32 %v630_v1, %v244_v23 }
  0x2e   : > { %v319_v31 = vmax.f32 %v283_v25, 0.0  ;;  %v285_v32 = vadd.f32 %v630_v1, %v245_v26  ;;  %v286_v33 = vadd.f32 %v630_v1, %v246_v27 }
  0x2f   : > { %562 = vst [vmem:[%s662_s25 + $0x70] sm:$0xff] %v532_v28   ;;  %v537_v34 = vpack.c.bf16 %v318_v29, %v317_v24  ;;  %v320_v35 = vmax.f32 %v284_v30, 0.0 }
  0x30   : > { %v321_v36 = vmax.f32 %v285_v32, 0.0  ;;  %v322_v37 = vmax.f32 %v286_v33, 0.0 }
  0x31   : > { %563 = vst [vmem:[%s662_s25 + $0x78] sm:$0xff] %v537_v34   ;;  %v542_v38 = vpack.c.bf16 %v320_v35, %v319_v31 }
  0x32   : > { %v547_v0 = vpack.c.bf16 %v322_v37, %v321_v36 }
  0x33   : > { %564 = vst [vmem:[%s662_s25 + $0x80] sm:$0xff] %v542_v38  }
  0x34   : > { %565 = vst [vmem:[%s662_s25 + $0x88] sm:$0xff] %v547_v0  }
  0x35 PF: > { %s13_s12 = sadd.s32 1, %s584_s12  }
  0x36   : > { %p10_p4 = scmp.ge.s32.totalorder %s13_s12, 4  }
  0x38   :  { %12 = sbr.rel (!%p10_p4) target bundleno = 1 (0x1), region = 62 }

// kernel: resnet_block_forward.7
= control target key start
LH: loop header
LB: loop body
LE: loop exit
PB: predicated region body
PF: predicated region fallthrough
CT: control target
= control target key end

     0   :  { %s1057_s18 = smov 0   ;;  %s1287_s0 = inlined_call_operand.vmem [shape: f32[2,288,128], index: 0, kind: input, shape index: {}]   ;;  %s1288_s1 = inlined_call_operand.vmem [shape: bf16[2,288,128], index: 1, kind: input, shape index: {}]   ;;  %s1289_s2 = inlined_call_operand.vmem [shape: bf16[128,128], index: 2, kind: input, shape index: {}]   ;;  %s1290_s3 = inlined_call_operand.vmem [shape: f32[1,128], index: 3, kind: input, shape index: {}]   ;;  %s1291_s4 = inlined_call_operand.vmem [shape: f32[1,128], index: 4, kind: input, shape index: {}]   ;;  %s1292_s5 = inlined_call_operand.vmem [shape: f32[2,288,128], index: 5, kind: output, shape index: {}]  }
   0x1 LB: > { %s843_s19 = sadd.s32 4294967295, %s1025_s18   ;;  %p847_p0 = scmp.ge.s32.totalorder %s1025_s18, 1  ;;  %s1025_s18 = sphi %s1057_s18, %s15_s18  }
   0x2   : > { %p197_p1 = scmp.lt.s32.totalorder %s1025_s18, 3 }
   0x4   : > { %p198_p2 = pnand %p847_p0, %p197_p1 }
   0x5   : > { %p230_p3 = scmp.lt.s32.totalorder (!%p198_p2), %s843_s19, 1 }
   0x6   : > { %201 = sbr.rel (%p198_p2) target bundleno = 253 (0xfd), region = 40 }
   0xb   : > { %v982_v0 = vld [vmem:[%s1289_s2 + $0x38] sm:$0xff]  ;;  %v981_v1 = vld [vmem:[%s1289_s2 + $0x30] sm:$0xff]  ;;  %v980_v2 = vld [vmem:[%s1289_s2 + $0x28] sm:$0xff]  ;;  %s1294_s19 = smov (!%p230_p3, %s843_s19), 1 }
   0xc   : > { %984 = vmatpush.bf16.msra.mxu2 %v982_v0  ;;  %985 = vmatpush.bf16.msra.mxu3 %v982_v0  ;;  %v979_v3 = vld [vmem:[%s1289_s2 + $0x20] sm:$0xff]  ;;  %v978_v4 = vld [vmem:[%s1289_s2 + $0x18] sm:$0xff]  ;;  %v977_v5 = vld [vmem:[%s1289_s2 + $0x10] sm:$0xff]  ;;  %s1008_s9 = smul.u32 144, %s1294_s19 }
   0xd   : > { %453 = vmatpush.bf16.msra.mxu0 %v982_v0  ;;  %983 = vmatpush.bf16.msra.mxu1 %v982_v0  ;;  %v976_v6 = vld [vmem:[%s1289_s2 + $0x8] sm:$0xff]  ;;  %v975_v7 = vld [vmem:[%s1289_s2] sm:$0xff]  ;;  %s1007_s15 = smul.u32 288, %s1294_s19 }
   0xe   : > { %s1099_s14 = scalar_lea.vmem %s1288_s1, %s1008_s9  ;;  %v1130_v28 = vld [vmem:[%s1290_s3] ss:$0 sm:$0xff] }
   0xf   : > { %v965_v8 = vld [vmem:[%s1099_s14 + $0x40] sm:$0xff]  ;;  %v970_v9 = vld [vmem:[%s1099_s14 + $0x68] sm:$0xff]  ;;  %v971_v13 = vld [vmem:[%s1099_s14 + $0x70] sm:$0xff]  ;;  %s1123_s20 = scalar_lea.vmem %s1287_s0, %s1007_s15  ;;  %s1156_s26 = scalar_lea.vmem %s1292_s5, %s1007_s15 }
  0x10   : > { %987 = vmatpush.bf16.msra.mxu2 %v981_v1  ;;  %988 = vmatpush.bf16.msra.mxu3 %v981_v1  ;;  %v957_v10 = vld [vmem:[%s1099_s14] sm:$0xff]  ;;  %v966_v12 = vld [vmem:[%s1099_s14 + $0x48] sm:$0xff]  ;;  %v967_v16 = vld [vmem:[%s1099_s14 + $0x50] sm:$0xff] }
  0x11   : > { %454 = vmatpush.bf16.msra.mxu0 %v981_v1  ;;  %986 = vmatpush.bf16.msra.mxu1 %v981_v1  ;;  %v961_v11 = vld [vmem:[%s1099_s14 + $0x20] sm:$0xff]  ;;  %v958_v14 = vld [vmem:[%s1099_s14 + $0x8] sm:$0xff]  ;;  %v972_v17 = vld [vmem:[%s1099_s14 + $0x78] sm:$0xff] }
  0x12   : > { %v962_v15 = vld [vmem:[%s1099_s14 + $0x28] sm:$0xff]  ;;  %v959_v18 = vld [vmem:[%s1099_s14 + $0x10] sm:$0xff]  ;;  %v968_v20 = vld [vmem:[%s1099_s14 + $0x58] sm:$0xff] }
  0x13   : > { %v963_v19 = vld [vmem:[%s1099_s14 + $0x30] sm:$0xff]  ;;  %v973_v21 = vld [vmem:[%s1099_s14 + $0x80] sm:$0xff]  ;;  %v960_v22 = vld [vmem:[%s1099_s14 + $0x18] sm:$0xff] }
  0x14   : > { %990 = vmatpush.bf16.msra.mxu2 %v980_v2  ;;  %991 = vmatpush.bf16.msra.mxu3 %v980_v2  ;;  %v964_v23 = vld [vmem:[%s1099_s14 + $0x38] sm:$0xff]  ;;  %v969_v24 = vld [vmem:[%s1099_s14 + $0x60] sm:$0xff]  ;;  %v974_v25 = vld [vmem:[%s1099_s14 + $0x88] sm:$0xff] }
  0x15   : > { %455 = vmatpush.bf16.msra.mxu0 %v980_v2  ;;  %989 = vmatpush.bf16.msra.mxu1 %v980_v2  ;;  %v552_v26 = vld [vmem:[%s1123_s20] sm:$0xff]  ;;  %v578_v33 = vld [vmem:[%s1123_s20 + $0xd0] sm:$0xff]  ;;  %v553_v38 = vld [vmem:[%s1123_s20 + $0x8] sm:$0xff] }
  0x16   : > { %v560_v27 = vld [vmem:[%s1123_s20 + $0x40] sm:$0xff]  ;;  %v592_v29 = vmul.f32 %v1130_v28, %v552_v26  ;;  %v618_v37 = vmul.f32 %v1130_v28, %v578_v33  ;;  %v561_v39 = vld [vmem:[%s1123_s20 + $0x48] sm:$0xff]  ;;  %v593_v44 = vmul.f32 %v1130_v28, %v553_v38  ;;  %v579_v51 = vld [vmem:[%s1123_s20 + $0xd8] sm:$0xff] }
  0x17   : > { %v600_v30 = vmul.f32 %v1130_v28, %v560_v27  ;;  %v568_v31 = vld [vmem:[%s1123_s20 + $0x80] sm:$0xff]  ;;  %v601_v45 = vmul.f32 %v1130_v28, %v561_v39  ;;  %v569_v50 = vld [vmem:[%s1123_s20 + $0x88] sm:$0xff]  ;;  %v619_v59 = vmul.f32 %v1130_v28, %v579_v51  ;;  %v554_v60 = vld [vmem:[%s1123_s20 + $0x10] sm:$0xff] }
  0x18   : > { %993 = vmatpush.bf16.msra.mxu2 %v979_v3  ;;  %994 = vmatpush.bf16.msra.mxu3 %v979_v3  ;;  %v1138_v32 = vld [vmem:[%s1291_s4] ss:$0 sm:$0xff]  ;;  %v608_v36 = vmul.f32 %v1130_v28, %v568_v31  ;;  %v609_v58 = vmul.f32 %v1130_v28, %v569_v50  ;;  %v562_v61 = vld [vmem:[%s1123_s20 + $0x50] sm:$0xff] }
  0x19   : > { %456 = vmatpush.bf16.msra.mxu0 %v979_v3  ;;  %992 = vmatpush.bf16.msra.mxu1 %v979_v3  ;;  %v632_v34 = vadd.f32 %v1138_v32, %v592_v29  ;;  %v640_v35 = vadd.f32 %v1138_v32, %v600_v30  ;;  %v658_v47 = vadd.f32 %v1138_v32, %v618_v37  ;;  %v581_v37 = vld [vmem:[%s1123_s20 + $0xe8] sm:$0xff] }
  0x1a   : > { %v648_v46 = vadd.f32 %v1138_v32, %v608_v36  ;;  %v633_v54 = vadd.f32 %v1138_v32, %v593_v44  ;;  %v641_v55 = vadd.f32 %v1138_v32, %v601_v45  ;;  %v571_v36 = vld [vmem:[%s1123_s20 + $0x98] sm:$0xff]  ;;  %v621_v45 = vmul.f32 %v1130_v28, %v581_v37 }
  0x1b   : > { %v611_v44 = vmul.f32 %v1130_v28, %v571_v36 }
  0x1c   : > { %996 = vmatpush.bf16.msra.mxu2 %v978_v4  ;;  %997 = vmatpush.bf16.msra.mxu3 %v978_v4 }
  0x1d   : > { %457 = vmatpush.bf16.msra.mxu0 %v978_v4  ;;  %995 = vmatpush.bf16.msra.mxu1 %v978_v4  ;;  %v594_v4 = vmul.f32 %v1130_v28, %v554_v60  ;;  %v572_v60 = vld [vmem:[%s1123_s20 + $0xa0] sm:$0xff] }
  0x20   : > { %999 = vmatpush.bf16.msra.mxu2 %v977_v5  ;;  %1000 = vmatpush.bf16.msra.mxu3 %v977_v5 }
  0x21   : > { %458 = vmatpush.bf16.msra.mxu0 %v977_v5  ;;  %998 = vmatpush.bf16.msra.mxu1 %v977_v5  ;;  %v602_v5 = vmul.f32 %v1130_v28, %v562_v61  ;;  %v582_v61 = vld [vmem:[%s1123_s20 + $0xf0] sm:$0xff] }
  0x24   : > { %1002 = vmatpush.bf16.msra.mxu2 %v976_v6  ;;  %1003 = vmatpush.bf16.msra.mxu3 %v976_v6 }
  0x25   : > { %459 = vmatpush.bf16.msra.mxu0 %v976_v6  ;;  %1001 = vmatpush.bf16.msra.mxu1 %v976_v6  ;;  %v649_v6 = vadd.f32 %v1138_v32, %v609_v58 }
  0x28   : > { %1005 = vmatpush.bf16.msra.mxu2 %v975_v7  ;;  %1006 = vmatpush.bf16.msra.mxu3 %v975_v7 }
  0x29   : > { %460 = vmatpush.bf16.msra.mxu0 %v975_v7  ;;  %1004 = vmatpush.bf16.msra.mxu1 %v975_v7  ;;  %v659_v7 = vadd.f32 %v1138_v32, %v619_v59 }
  0x2b   : > { %501 = vmatmul.bf16.vlgmr.msra.gmra.mxu2 %v965_v8  ;;  %526 = vmatmul.bf16.vlgmr.msra.gmra.mxu3 %v970_v9 }
  0x2c   : > { %461 = vmatmul.bf16.vlgmr.msra.gmra.mxu0 %v957_v10  ;;  %481 = vmatmul.bf16.vlgmr.msra.gmra.mxu1 %v961_v11  ;;  %v570_v10 = vld [vmem:[%s1123_s20 + $0x90] sm:$0xff]  ;;  %v580_v11 = vld [vmem:[%s1123_s20 + $0xe0] sm:$0xff] }
  0x3b   : > { %506 = vmatmul.bf16.gmra.mxu2 %v966_v12  ;;  %531 = vmatmul.bf16.gmra.mxu3 %v971_v13 }
  0x3c   : > { %466 = vmatmul.bf16.gmra.mxu0 %v958_v14  ;;  %486 = vmatmul.bf16.gmra.mxu1 %v962_v15  ;;  %v634_v14 = vadd.f32 %v1138_v32, %v594_v4  ;;  %v642_v15 = vadd.f32 %v1138_v32, %v602_v5  ;;  %v612_v4 = vmul.f32 %v1130_v28, %v572_v60 }
  0x3d   : > { %v622_v5 = vmul.f32 %v1130_v28, %v582_v61 }
  0x4b   : > { %511 = vmatmul.bf16.gmra.mxu2 %v967_v16  ;;  %536 = vmatmul.bf16.gmra.mxu3 %v972_v17 }
  0x4c   : > { %471 = vmatmul.bf16.gmra.mxu0 %v959_v18  ;;  %491 = vmatmul.bf16.gmra.mxu1 %v963_v19  ;;  %v610_v18 = vmul.f32 %v1130_v28, %v570_v10  ;;  %v620_v19 = vmul.f32 %v1130_v28, %v580_v11 }
  0x4e   : > { %v650_v31 = vadd.f32 %v1138_v32, %v610_v18  ;;  %v660_v33 = vadd.f32 %v1138_v32, %v620_v19 }
  0x5b   : > { %516 = vmatmul.bf16.gmra.mxu2 %v968_v20  ;;  %541 = vmatmul.bf16.gmra.mxu3 %v973_v21  ;;  %v555_v20 = vld [vmem:[%s1123_s20 + $0x18] sm:$0xff] }
  0x5c   : > { %476 = vmatmul.bf16.gmra.mxu0 %v960_v22  ;;  %496 = vmatmul.bf16.gmra.mxu1 %v964_v23  ;;  %v563_v21 = vld [vmem:[%s1123_s20 + $0x58] sm:$0xff]  ;;  %v595_v29 = vmul.f32 %v1130_v28, %v555_v20  ;;  %v573_v20 = vld [vmem:[%s1123_s20 + $0xa8] sm:$0xff] }
  0x5d   : > { %v603_v30 = vmul.f32 %v1130_v28, %v563_v21  ;;  %v583_v21 = vld [vmem:[%s1123_s20 + $0xf8] sm:$0xff] }
  0x6b   : > { %521 = vmatmul.bf16.gmra.mxu2 %v969_v24  ;;  %546 = vmatmul.bf16.gmra.mxu3 %v974_v25 }
  0xa9   : > { %v462_v40 = vpop.f32.mrf.mxu0  ;;  %v482_v41 = vpop.f32.mrf.mxu1 }
  0xaa   : > { %v668_v42 = vadd.f32 %v632_v34, %v462_v40  ;;  %v676_v43 = vadd.f32 %v640_v35, %v482_v41  ;;  %v635_v40 = vadd.f32 %v1138_v32, %v595_v29  ;;  %v643_v41 = vadd.f32 %v1138_v32, %v603_v30 }
  0xab   : > { %v613_v29 = vmul.f32 %v1130_v28, %v573_v20  ;;  %v623_v30 = vmul.f32 %v1130_v28, %v583_v21 }
  0xac   : > { %v704_v48 = vmax.f32 %v668_v42, 0.0  ;;  %v712_v49 = vmax.f32 %v676_v43, 0.0 }
  0xae   : > { %v502_v52 = vpop.f32.mrf.mxu2  ;;  %v527_v53 = vpop.f32.mrf.mxu3  ;;  %740 = vst [vmem:[%s1156_s26] sm:$0xff] %v704_v48 }
  0xaf   : > { %v684_v56 = vadd.f32 %v648_v46, %v502_v52  ;;  %v694_v57 = vadd.f32 %v658_v47, %v527_v53  ;;  %748 = vst [vmem:[%s1156_s26 + $0x40] sm:$0xff] %v712_v49  ;;  %v556_v46 = vld [vmem:[%s1123_s20 + $0x20] sm:$0xff] }
  0xb0   : > { %v564_v47 = vld [vmem:[%s1123_s20 + $0x60] sm:$0xff] }
  0xb1   : > { %v720_v62 = vmax.f32 %v684_v56, 0.0  ;;  %v730_v63 = vmax.f32 %v694_v57, 0.0  ;;  %v464_v0 = vpop.f32.mrf.mxu0  ;;  %v484_v1 = vpop.f32.mrf.mxu1  ;;  %v651_v56 = vadd.f32 %v1138_v32, %v611_v44  ;;  %v661_v57 = vadd.f32 %v1138_v32, %v621_v45 }
  0xb2   : > { %v669_v2 = vadd.f32 %v633_v54, %v464_v0  ;;  %v677_v3 = vadd.f32 %v641_v55, %v484_v1  ;;  %v596_v54 = vmul.f32 %v1130_v28, %v556_v46  ;;  %v604_v55 = vmul.f32 %v1130_v28, %v564_v47  ;;  %v574_v46 = vld [vmem:[%s1123_s20 + $0xb0] sm:$0xff]  ;;  %v584_v47 = vld [vmem:[%s1123_s20 + $0x100] sm:$0xff] }
  0xb3   : > { %756 = vst [vmem:[%s1156_s26 + $0x80] sm:$0xff] %v720_v62 }
  0xb4   : > { %766 = vst [vmem:[%s1156_s26 + $0xd0] sm:$0xff] %v730_v63  ;;  %v705_v8 = vmax.f32 %v669_v2, 0.0  ;;  %v713_v9 = vmax.f32 %v677_v3, 0.0  ;;  %v636_v0 = vadd.f32 %v1138_v32, %v596_v54  ;;  %v644_v1 = vadd.f32 %v1138_v32, %v604_v55 }
  0xb5   : > { %v614_v54 = vmul.f32 %v1130_v28, %v574_v46  ;;  %v624_v55 = vmul.f32 %v1130_v28, %v584_v47 }
  0xb6   : > { %v504_v12 = vpop.f32.mrf.mxu2  ;;  %v529_v13 = vpop.f32.mrf.mxu3  ;;  %741 = vst [vmem:[%s1156_s26 + $0x8] sm:$0xff] %v705_v8 }
  0xb7   : > { %v685_v16 = vadd.f32 %v649_v6, %v504_v12  ;;  %v695_v17 = vadd.f32 %v659_v7, %v529_v13  ;;  %749 = vst [vmem:[%s1156_s26 + $0x48] sm:$0xff] %v713_v9  ;;  %v557_v6 = vld [vmem:[%s1123_s20 + $0x28] sm:$0xff] }
  0xb8   : > { %v565_v7 = vld [vmem:[%s1123_s20 + $0x68] sm:$0xff] }
  0xb9   : > { %v721_v22 = vmax.f32 %v685_v16, 0.0  ;;  %v731_v23 = vmax.f32 %v695_v17, 0.0  ;;  %v467_v24 = vpop.f32.mrf.mxu0  ;;  %v487_v25 = vpop.f32.mrf.mxu1  ;;  %v652_v16 = vadd.f32 %v1138_v32, %v612_v4  ;;  %v662_v17 = vadd.f32 %v1138_v32, %v622_v5 }
  0xba   : > { %v670_v26 = vadd.f32 %v634_v14, %v467_v24  ;;  %v678_v27 = vadd.f32 %v642_v15, %v487_v25  ;;  %v597_v14 = vmul.f32 %v1130_v28, %v557_v6  ;;  %v605_v15 = vmul.f32 %v1130_v28, %v565_v7  ;;  %v575_v6 = vld [vmem:[%s1123_s20 + $0xb8] sm:$0xff]  ;;  %v585_v7 = vld [vmem:[%s1123_s20 + $0x108] sm:$0xff] }
  0xbb   : > { %757 = vst [vmem:[%s1156_s26 + $0x88] sm:$0xff] %v721_v22 }
  0xbc   : > { %767 = vst [vmem:[%s1156_s26 + $0xd8] sm:$0xff] %v731_v23  ;;  %v706_v34 = vmax.f32 %v670_v26, 0.0  ;;  %v714_v35 = vmax.f32 %v678_v27, 0.0  ;;  %v637_v24 = vadd.f32 %v1138_v32, %v597_v14  ;;  %v645_v25 = vadd.f32 %v1138_v32, %v605_v15 }
  0xbd   : > { %v615_v14 = vmul.f32 %v1130_v28, %v575_v6  ;;  %v625_v15 = vmul.f32 %v1130_v28, %v585_v7 }
  0xbe   : > { %v507_v38 = vpop.f32.mrf.mxu2  ;;  %v532_v39 = vpop.f32.mrf.mxu3  ;;  %742 = vst [vmem:[%s1156_s26 + $0x10] sm:$0xff] %v706_v34 }
  0xbf   : > { %v686_v42 = vadd.f32 %v650_v31, %v507_v38  ;;  %v696_v43 = vadd.f32 %v660_v33, %v532_v39  ;;  %750 = vst [vmem:[%s1156_s26 + $0x50] sm:$0xff] %v714_v35  ;;  %v558_v31 = vld [vmem:[%s1123_s20 + $0x30] sm:$0xff] }
  0xc0   : > { %v566_v33 = vld [vmem:[%s1123_s20 + $0x70] sm:$0xff] }
  0xc1   : > { %v722_v48 = vmax.f32 %v686_v42, 0.0  ;;  %v732_v49 = vmax.f32 %v696_v43, 0.0  ;;  %v469_v50 = vpop.f32.mrf.mxu0  ;;  %v489_v51 = vpop.f32.mrf.mxu1  ;;  %v653_v42 = vadd.f32 %v1138_v32, %v613_v29  ;;  %v663_v43 = vadd.f32 %v1138_v32, %v623_v30 }
  0xc2   : > { %v671_v52 = vadd.f32 %v635_v40, %v469_v50  ;;  %v679_v53 = vadd.f32 %v643_v41, %v489_v51  ;;  %v598_v40 = vmul.f32 %v1130_v28, %v558_v31  ;;  %v606_v41 = vmul.f32 %v1130_v28, %v566_v33 }
  0xc3   : > { %758 = vst [vmem:[%s1156_s26 + $0x90] sm:$0xff] %v722_v48 }
  0xc4   : > { %768 = vst [vmem:[%s1156_s26 + $0xe0] sm:$0xff] %v732_v49  ;;  %v707_v58 = vmax.f32 %v671_v52, 0.0  ;;  %v715_v59 = vmax.f32 %v679_v53, 0.0  ;;  %v638_v50 = vadd.f32 %v1138_v32, %v598_v40  ;;  %v646_v51 = vadd.f32 %v1138_v32, %v606_v41  ;;  %v577_v40 = vld [vmem:[%s1123_s20 + $0xc8] sm:$0xff]  ;;  %v587_v41 = vld [vmem:[%s1123_s20 + $0x118] sm:$0xff] }
  0xc5   : > { %v617_v46 = vmul.f32 %v1130_v28, %v577_v40  ;;  %v627_v47 = vmul.f32 %v1130_v28, %v587_v41 }
  0xc6   : > { %v509_v62 = vpop.f32.mrf.mxu2  ;;  %v534_v63 = vpop.f32.mrf.mxu3  ;;  %743 = vst [vmem:[%s1156_s26 + $0x18] sm:$0xff] %v707_v58 }
  0xc7   : > { %v687_v2 = vadd.f32 %v651_v56, %v509_v62  ;;  %v697_v3 = vadd.f32 %v661_v57, %v534_v63  ;;  %751 = vst [vmem:[%s1156_s26 + $0x58] sm:$0xff] %v715_v59  ;;  %v559_v56 = vld [vmem:[%s1123_s20 + $0x38] sm:$0xff] }
  0xc8   : > { %v567_v57 = vld [vmem:[%s1123_s20 + $0x78] sm:$0xff] }
  0xc9   : > { %v723_v8 = vmax.f32 %v687_v2, 0.0  ;;  %v733_v9 = vmax.f32 %v697_v3, 0.0  ;;  %v472_v10 = vpop.f32.mrf.mxu0  ;;  %v492_v11 = vpop.f32.mrf.mxu1  ;;  %v654_v2 = vadd.f32 %v1138_v32, %v614_v54  ;;  %v664_v3 = vadd.f32 %v1138_v32, %v624_v55 }
  0xca   : > { %v672_v12 = vadd.f32 %v636_v0, %v472_v10  ;;  %v680_v13 = vadd.f32 %v644_v1, %v492_v11  ;;  %v599_v0 = vmul.f32 %v1130_v28, %v559_v56  ;;  %v607_v1 = vmul.f32 %v1130_v28, %v567_v57 }
  0xcb   : > { %759 = vst [vmem:[%s1156_s26 + $0x98] sm:$0xff] %v723_v8 }
  0xcc   : > { %769 = vst [vmem:[%s1156_s26 + $0xe8] sm:$0xff] %v733_v9  ;;  %v708_v18 = vmax.f32 %v672_v12, 0.0  ;;  %v716_v19 = vmax.f32 %v680_v13, 0.0  ;;  %v639_v10 = vadd.f32 %v1138_v32, %v599_v0  ;;  %v647_v11 = vadd.f32 %v1138_v32, %v607_v1 }
  0xce   : > { %v512_v22 = vpop.f32.mrf.mxu2  ;;  %v537_v23 = vpop.f32.mrf.mxu3  ;;  %744 = vst [vmem:[%s1156_s26 + $0x20] sm:$0xff] %v708_v18 }
  0xcf   : > { %v688_v26 = vadd.f32 %v652_v16, %v512_v22  ;;  %v698_v27 = vadd.f32 %v662_v17, %v537_v23  ;;  %752 = vst [vmem:[%s1156_s26 + $0x60] sm:$0xff] %v716_v19  ;;  %v655_v22 = vadd.f32 %v1138_v32, %v615_v14  ;;  %v665_v23 = vadd.f32 %v1138_v32, %v625_v15 }
  0xd1   : > { %v724_v34 = vmax.f32 %v688_v26, 0.0  ;;  %v734_v35 = vmax.f32 %v698_v27, 0.0  ;;  %v474_v36 = vpop.f32.mrf.mxu0  ;;  %v494_v37 = vpop.f32.mrf.mxu1  ;;  %v576_v26 = vld [vmem:[%s1123_s20 + $0xc0] sm:$0xff]  ;;  %v586_v27 = vld [vmem:[%s1123_s20 + $0x110] sm:$0xff] }
  0xd2   : > { %v673_v38 = vadd.f32 %v637_v24, %v474_v36  ;;  %v681_v39 = vadd.f32 %v645_v25, %v494_v37 }
  0xd3   : > { %760 = vst [vmem:[%s1156_s26 + $0xa0] sm:$0xff] %v724_v34  ;;  %v616_v34 = vmul.f32 %v1130_v28, %v576_v26 }
  0xd4   : > { %770 = vst [vmem:[%s1156_s26 + $0xf0] sm:$0xff] %v734_v35  ;;  %v709_v44 = vmax.f32 %v673_v38, 0.0  ;;  %v717_v45 = vmax.f32 %v681_v39, 0.0  ;;  %v626_v35 = vmul.f32 %v1130_v28, %v586_v27 }
  0xd5   : > { %v656_v38 = vadd.f32 %v1138_v32, %v616_v34 }
  0xd6   : > { %v514_v48 = vpop.f32.mrf.mxu2  ;;  %v539_v49 = vpop.f32.mrf.mxu3  ;;  %745 = vst [vmem:[%s1156_s26 + $0x28] sm:$0xff] %v709_v44  ;;  %v666_v39 = vadd.f32 %v1138_v32, %v626_v35 }
  0xd7   : > { %v689_v52 = vadd.f32 %v653_v42, %v514_v48  ;;  %v699_v53 = vadd.f32 %v663_v43, %v539_v49  ;;  %753 = vst [vmem:[%s1156_s26 + $0x68] sm:$0xff] %v717_v45 }
  0xd9   : > { %v725_v58 = vmax.f32 %v689_v52, 0.0  ;;  %v735_v59 = vmax.f32 %v699_v53, 0.0  ;;  %v477_v60 = vpop.f32.mrf.mxu0  ;;  %v497_v61 = vpop.f32.mrf.mxu1 }
  0xda   : > { %v674_v62 = vadd.f32 %v638_v50, %v477_v60  ;;  %v682_v63 = vadd.f32 %v646_v51, %v497_v61  ;;  %v657_v50 = vadd.f32 %v1138_v32, %v617_v46  ;;  %v667_v51 = vadd.f32 %v1138_v32, %v627_v47 }
  0xdb   : > { %761 = vst [vmem:[%s1156_s26 + $0xa8] sm:$0xff] %v725_v58 }
  0xdc   : > { %771 = vst [vmem:[%s1156_s26 + $0xf8] sm:$0xff] %v735_v59  ;;  %v710_v4 = vmax.f32 %v674_v62, 0.0  ;;  %v718_v5 = vmax.f32 %v682_v63, 0.0 }
  0xde   : > { %v517_v8 = vpop.f32.mrf.mxu2  ;;  %v542_v9 = vpop.f32.mrf.mxu3  ;;  %746 = vst [vmem:[%s1156_s26 + $0x30] sm:$0xff] %v710_v4 }
  0xdf   : > { %v690_v12 = vadd.f32 %v654_v2, %v517_v8  ;;  %v700_v13 = vadd.f32 %v664_v3, %v542_v9  ;;  %754 = vst [vmem:[%s1156_s26 + $0x70] sm:$0xff] %v718_v5 }
  0xe1   : > { %v726_v16 = vmax.f32 %v690_v12, 0.0  ;;  %v736_v17 = vmax.f32 %v700_v13, 0.0  ;;  %v479_v18 = vpop.f32.mrf.mxu0  ;;  %v499_v19 = vpop.f32.mrf.mxu1 }
  0xe2   : > { %v675_v20 = vadd.f32 %v639_v10, %v479_v18  ;;  %v683_v21 = vadd.f32 %v647_v11, %v499_v19 }
  0xe3   : > { %762 = vst [vmem:[%s1156_s26 + $0xb0] sm:$0xff] %v726_v16 }
  0xe4   : > { %772 = vst [vmem:[%s1156_s26 + $0x100] sm:$0xff] %v736_v17  ;;  %v711_v24 = vmax.f32 %v675_v20, 0.0  ;;  %v719_v25 = vmax.f32 %v683_v21, 0.0 }
  0xe6   : > { %v519_v29 = vpop.f32.mrf.mxu2  ;;  %v544_v30 = vpop.f32.mrf.mxu3  ;;  %747 = vst [vmem:[%s1156_s26 + $0x38] sm:$0xff] %v711_v24 }
  0xe7   : > { %v691_v31 = vadd.f32 %v655_v22, %v519_v29  ;;  %v701_v33 = vadd.f32 %v665_v23, %v544_v30  ;;  %755 = vst [vmem:[%s1156_s26 + $0x78] sm:$0xff] %v719_v25 }
  0xe9   : > { %v727_v36 = vmax.f32 %v691_v31, 0.0  ;;  %v737_v37 = vmax.f32 %v701_v33, 0.0 }
  0xeb   : > { %763 = vst [vmem:[%s1156_s26 + $0xb8] sm:$0xff] %v727_v36 }
  0xec   : > { %773 = vst [vmem:[%s1156_s26 + $0x108] sm:$0xff] %v737_v37 }
  0xee   : > { %v522_v42 = vpop.f32.mrf.mxu2  ;;  %v547_v43 = vpop.f32.mrf.mxu3 }
  0xef   : > { %v692_v44 = vadd.f32 %v656_v38, %v522_v42  ;;  %v702_v45 = vadd.f32 %v666_v39, %v547_v43 }
  0xf1   : > { %v728_v48 = vmax.f32 %v692_v44, 0.0  ;;  %v738_v49 = vmax.f32 %v702_v45, 0.0 }
  0xf3   : > { %764 = vst [vmem:[%s1156_s26 + $0xc0] sm:$0xff] %v728_v48 }
  0xf4   : > { %774 = vst [vmem:[%s1156_s26 + $0x110] sm:$0xff] %v738_v49 }
  0xf6   : > { %v524_v52 = vpop.f32.mrf.mxu2  ;;  %v549_v53 = vpop.f32.mrf.mxu3 }
  0xf7   : > { %v693_v54 = vadd.f32 %v657_v50, %v524_v52  ;;  %v703_v55 = vadd.f32 %v667_v51, %v549_v53 }
  0xf9   : > { %v729_v56 = vmax.f32 %v693_v54, 0.0  ;;  %v739_v57 = vmax.f32 %v703_v55, 0.0 }
  0xfb   : > { %765 = vst [vmem:[%s1156_s26 + $0xc8] sm:$0xff] %v729_v56 }
  0xfc   : > { %775 = vst [vmem:[%s1156_s26 + $0x118] sm:$0xff] %v739_v57 }
  0xfd PF: > { %s15_s18 = sadd.s32 1, %s1025_s18  }
  0xfe   : > { %p12_p4 = scmp.ge.s32.totalorder %s15_s18, 4  }
 0x100   :  { %14 = sbr.rel (!%p12_p4) target bundleno = 1 (0x1), region = 73 }

// kernel: resnet_block_forward.4
= control target key start
LH: loop header
LB: loop body
LE: loop exit
PB: predicated region body
PF: predicated region fallthrough
CT: control target
= control target key end

     0   :  { %s4536_s15 = smov 0   ;;  %s5895_s0 = inlined_call_operand.vmem [shape: bf16[1,2,342,128], index: 0, kind: input, shape index: {}]   ;;  %s5896_s1 = inlined_call_operand.vmem [shape: bf16[9,128,128], index: 1, kind: input, shape index: {}]   ;;  %s5897_s2 = inlined_call_operand.vmem [shape: f32[288,1], index: 2, kind: input, shape index: {}]   ;;  %s5898_s3 = inlined_call_operand.vmem [shape: f32[2,288,128], index: 3, kind: output, shape index: {0}]   ;;  %s5899_s4 = inlined_call_operand.vmem [shape: f32[2,2,128], index: 4, kind: output, shape index: {1}]  }
   0x1 LB: > { %s3681_s16 = sadd.s32 4294967295, %s4508_s15   ;;  %p3685_p0 = scmp.ge.s32.totalorder %s4508_s15, 1  ;;  %s4508_s15 = sphi %s4536_s15, %s15_s15  }
   0x2   : > { %p165_p1 = scmp.lt.s32.totalorder %s4508_s15, 3 }
   0x4   : > { %p166_p2 = pnand %p3685_p0, %p165_p1 }
   0x6   : > { %169 = sbr.rel (%p166_p2) target bundleno = 848 (0x350), region = 32 }
   0xb   : > { %v4343_v0 = vld [vmem:[%s5896_s1 + $0x78] sm:$0xff]  ;;  %p195_p3 = scmp.lt.s32.totalorder %s3681_s16, 1  ;;  %v4342_v1 = vld [vmem:[%s5896_s1 + $0x70] sm:$0xff]  ;;  %v4341_v2 = vld [vmem:[%s5896_s1 + $0x68] sm:$0xff]  ;;  %vm372_vm0 = vsmask.f32 7424 }
   0xc   : > { %4441 = vmatpush.bf16.msra.mxu1 %v4343_v0  ;;  %4442 = vmatpush.bf16.msra.mxu2 %v4343_v0  ;;  %v4340_v3 = vld [vmem:[%s5896_s1 + $0x60] sm:$0xff]  ;;  %v4339_v5 = vld [vmem:[%s5896_s1 + $0x58] sm:$0xff]  ;;  %v4338_v11 = vld [vmem:[%s5896_s1 + $0x50] sm:$0xff]  ;;  %vm872_vm1 = vcmask 1046528   ;;  %vm1517_vm2 = vsmask.f32 6400 }
   0xd   : > { %s5927_s16 = smov (!%p195_p3, %s3681_s16), 1  ;;  %587 = vmatpush.bf16.msra.mxu0 %v4343_v0  ;;  %4443 = vmatpush.bf16.msra.mxu3 %v4343_v0  ;;  %v4337_v20 = vld [vmem:[%s5896_s1 + $0x48] sm:$0xff]  ;;  %v4336_v31 = vld [vmem:[%s5896_s1 + $0x40] sm:$0xff]  ;;  %v4351_v36 = vld [vmem:[%s5896_s1 + $0xb8] sm:$0xff]  ;;  %vm2555_vm3 = vsmask.f32 5376 }
   0xe   : > { %s4465_s23 = smul.u32 172, %s5927_s16  ;;  %v4335_v39 = vld [vmem:[%s5896_s1 + $0x38] sm:$0xff]  ;;  %v4350_v46 = vld [vmem:[%s5896_s1 + $0xb0] sm:$0xff]  ;;  %v4349_v54 = vld [vmem:[%s5896_s1 + $0xa8] sm:$0xff]  ;;  %vm1910_vm4 = vcmask 1045504   ;;  %vm2948_vm5 = vcmask 1044480  }
   0xf   : > { %v4384_v40 = vld [vmem:[%s5896_s1 + $0x138] sm:$0xff]  ;;  %v4334_v47 = vld [vmem:[%s5896_s1 + $0x30] sm:$0xff]  ;;  %v4333_v55 = vld [vmem:[%s5896_s1 + $0x28] sm:$0xff]  ;;  %s4466_s12 = smul.u32 288, %s5927_s16 }
  0x10   : > { %4444 = vmatpush.bf16.msra.mxu1 %v4342_v1  ;;  %4445 = vmatpush.bf16.msra.mxu2 %v4342_v1  ;;  %s4562_s28 = scalar_lea.vmem %s5895_s0, %s4465_s23  ;;  %v4383_v48 = vld [vmem:[%s5896_s1 + $0x130] sm:$0xff]  ;;  %v4376_v52 = vld [vmem:[%s5896_s1 + $0xf8] sm:$0xff]  ;;  %v4382_v56 = vld [vmem:[%s5896_s1 + $0x128] sm:$0xff] }
  0x11   : > { %588 = vmatpush.bf16.msra.mxu0 %v4342_v1  ;;  %4446 = vmatpush.bf16.msra.mxu3 %v4342_v1  ;;  %v4565_v4 = vld [vmem:[%s4562_s28 + $0x28] sm:$0xff]  ;;  %v4571_v6 = vld [vmem:[%s4562_s28 + $0x50] sm:$0xff]  ;;  %v4574_v7 = vld [vmem:[%s4562_s28] sm:$0xff]   ;;  %s5537_s19 = scalar_lea.vmem %s5898_s3, %s4466_s12 }
  0x12   : > { %v4577_v8 = vld [vmem:[%s4562_s28 + $0x30] sm:$0xff]  ;;  %v413_v9 = vshll.u32 %v4565_v4, 16  ;;  %v4581_v10 = vld [vmem:[%s4562_s28 + $0x58] sm:$0xff]  ;;  %v453_v12 = vshll.u32 %v4571_v6, 16  ;;  %v4588_v13 = vld [vmem:[%s4562_s28 + $0x8] sm:$0xff]  ;;  %v376_v14 = vshll.u32 %v4574_v7, 16 }
  0x13   : > { %v4325_v15 = vld [vmem:[%s4562_s28 + $0x78] sm:$0xff]  ;;  %v417_v17 = vshrl.u32 %v4565_v4, 16  ;;  %v421_v18 = vshll.u32 %v4577_v8, 16  ;;  %v461_v19 = vshll.u32 %v4581_v10, 16  ;;  %v457_v22 = vshrl.u32 %v4571_v6, 16  ;;  %v4604_v23 = vld [vmem:[%s4562_s28 + $0x80] sm:$0xff] }
  0x14   : > { %4447 = vmatpush.bf16.msra.mxu1 %v4341_v2  ;;  %4448 = vmatpush.bf16.msra.mxu2 %v4341_v2  ;;  %v4592_v16 = vrot.slane %v413_v9, 1  ;;  %v4600_v21 = vrot.slane %v453_v12, 1  ;;  %v493_v24 = vshll.u32 %v4325_v15, 16  ;;  %v374_v25 = vshrl.u32 %v4574_v7, 16  ;;  %v4642_v49 = vld [vmem:[%s4562_s28 + $0x38] sm:$0xff]  ;;  %v4645_v50 = vld [vmem:[%s4562_s28 + $0x60] sm:$0xff] }
  0x15   : > { %589 = vmatpush.bf16.msra.mxu0 %v4341_v2  ;;  %4449 = vmatpush.bf16.msra.mxu3 %v4341_v2  ;;  %v378_v26 = vrot.slane %v376_v14, 1  ;;  %v381_v27 = vshll.u32 %v4588_v13, 16  ;;  %v423_v29 = vrot.slane %v421_v18, 1  ;;  %v4609_v30 = vrot.slane %v461_v19, 1  ;;  %v4652_v53 = vld [vmem:[%s4562_s28 + $0x10] sm:$0xff]  ;;  %v4671_v62 = vld [vmem:[%s4562_s28 + $0x88] sm:$0xff] }
  0x16   : > { %v419_v28 = vor.u32 %v417_v17, %v4592_v16  ;;  %v459_v32 = vor.u32 %v457_v22, %v4600_v21  ;;  %v4615_v33 = vrot.slane %v493_v24, 1  ;;  %v497_v34 = vshrl.u32 %v4325_v15, 16  ;;  %v4375_v61 = vld [vmem:[%s5896_s1 + $0xf0] sm:$0xff]  ;;  %v4348_v1 = vld [vmem:[%s5896_s1 + $0xa0] sm:$0xff]  ;;  %v4374_v17 = vld [vmem:[%s5896_s1 + $0xe8] sm:$0xff] }
  0x17   : > { %v501_v35 = vshll.u32 %v4604_v23, 16  ;;  %v379_v37 = vor.u32 %v378_v26, %v374_v25  ;;  %v383_v38 = vrot.slane %v381_v27, 1  ;;  %v425_v57 = vshrl.u32 %v4577_v8, 16  ;;  %v4332_v2 = vld [vmem:[%s5896_s1 + $0x20] sm:$0xff]  ;;  %v4691_v18 = vld [vmem:[%s4562_s28 + $0x48] sm:$0xff]  ;;  %v4347_v22 = vld [vmem:[%s5896_s1 + $0x98] sm:$0xff] }
  0x18   : > { %4450 = vmatpush.bf16.msra.mxu1 %v4340_v3  ;;  %4451 = vmatpush.bf16.msra.mxu2 %v4340_v3  ;;  %v424_v41 = vsel %vm372_vm0, %v419_v28, %v423_v29  ;;  %v464_v42 = vsel %vm372_vm0, %v459_v32, %v4609_v30  ;;  %v499_v43 = vor.u32 %v497_v34, %v4615_v33  ;;  %v429_v58 = vshll.u32 %v4642_v49, 16  ;;  %v261_v32 = vld [vmem:[%s4562_s28 + $0x90] sm:$0x1] }
  0x19   : > { %590 = vmatpush.bf16.msra.mxu0 %v4340_v3  ;;  %4452 = vmatpush.bf16.msra.mxu3 %v4340_v3  ;;  %v503_v44 = vrot.slane %v501_v35, 1  ;;  %v384_v45 = vsel %vm372_vm0, %v379_v37, %v383_v38  ;;  %v465_v59 = vshrl.u32 %v4581_v10, 16  ;;  %v469_v60 = vshll.u32 %v4645_v50, 16  ;;  %v4381_v3 = vld [vmem:[%s5896_s1 + $0x120] sm:$0xff]  ;;  %v4380_v37 = vld [vmem:[%s5896_s1 + $0x118] sm:$0xff] }
  0x1a   : > { %v385_v63 = vshrl.u32 %v4588_v13, 16  ;;  %v389_v0 = vshll.u32 %v4652_v53, 16  ;;  %v431_v9 = vrot.slane %v429_v58, 1  ;;  %v505_v14 = vshrl.u32 %v4604_v23, 16  ;;  %v4331_v23 = vld [vmem:[%s5896_s1 + $0x18] sm:$0xff] }
  0x1b   : > { %v504_v51 = vsel %vm372_vm0, %v499_v43, %v503_v44  ;;  %v471_v12 = vrot.slane %v469_v60, 1  ;;  %v509_v15 = vshll.u32 %v4671_v62, 16  ;;  %v445_v28 = vshll.u32 %v4691_v18, 16  ;;  %v4345_v43 = vld [vmem:[%s5896_s1 + $0x88] sm:$0xff] }
  0x1c   : > { %4453 = vmatpush.bf16.msra.mxu1 %v4339_v5  ;;  %4454 = vmatpush.bf16.msra.mxu2 %v4339_v5  ;;  %v387_v19 = vor.u32 %v385_v63, %v383_v38  ;;  %v507_v26 = vor.u32 %v505_v14, %v503_v44  ;;  %v4373_v38 = vld [vmem:[%s5896_s1 + $0xe0] sm:$0xff]  ;;  %v4379_v44 = vld [vmem:[%s5896_s1 + $0x110] sm:$0xff] }
  0x1d   : > { %591 = vmatpush.bf16.msra.mxu0 %v4339_v5  ;;  %4455 = vmatpush.bf16.msra.mxu3 %v4339_v5  ;;  %v427_v5 = vor.u32 %v425_v57, %v423_v29  ;;  %v511_v27 = vrot.slane %v509_v15, 1  ;;  %v4711_v35 = vrot.slane %v445_v28, 1  ;;  %v393_v57 = vshrl.u32 %v4652_v53, 16  ;;  %v4328_v28 = vld [vmem:[%s5896_s1] sm:$0xff] }
  0x1f   : > { %v432_v24 = vsel %vm372_vm0, %v427_v5, %v431_v9  ;;  %v512_v34 = vsel %vm372_vm0, %v507_v26, %v511_v27  ;;  %v4344_v26 = vld [vmem:[%s5896_s1 + $0x80] sm:$0xff] }
  0x20   : > { %4456 = vmatpush.bf16.msra.mxu1 %v4338_v11  ;;  %4457 = vmatpush.bf16.msra.mxu2 %v4338_v11 }
  0x21   : > { %592 = vmatpush.bf16.msra.mxu0 %v4338_v11  ;;  %4458 = vmatpush.bf16.msra.mxu3 %v4338_v11  ;;  %v467_v11 = vor.u32 %v465_v59, %v4609_v30  ;;  %v4704_v30 = vld [vmem:[%s4562_s28 + $0x40] sm:$0xff] }
  0x23   : > { %v472_v25 = vsel %vm372_vm0, %v467_v11, %v471_v12 }
  0x24   : > { %4459 = vmatpush.bf16.msra.mxu1 %v4337_v20  ;;  %4460 = vmatpush.bf16.msra.mxu2 %v4337_v20 }
  0x25   : > { %593 = vmatpush.bf16.msra.mxu0 %v4337_v20  ;;  %4461 = vmatpush.bf16.msra.mxu3 %v4337_v20  ;;  %v391_v20 = vrot.slane %v389_v0, 1 }
  0x27   : > { %v392_v29 = vsel %vm372_vm0, %v387_v19, %v391_v20 }
  0x28   : > { %4462 = vmatpush.bf16.msra.mxu1 %v4336_v31  ;;  %4463 = vmatpush.bf16.msra.mxu2 %v4336_v31 }
  0x29   : > { %594 = vmatpush.bf16.msra.mxu0 %v4336_v31  ;;  %4464 = vmatpush.bf16.msra.mxu3 %v4336_v31  ;;  %v4707_v31 = vld [vmem:[%s4562_s28 + $0x68] sm:$0xff] }
  0x2b   : > { %620 = vmatmul.bf16.vlgmr.msra.gmra.mxu1 %v424_v41  ;;  %645 = vmatmul.bf16.vlgmr.msra.gmra.mxu2 %v464_v42  ;;  %v4724_v41 = vld [vmem:[%s4562_s28 + $0x18] sm:$0xff]  ;;  %v4330_v42 = vld [vmem:[%s5896_s1 + $0x10] sm:$0xff] }
  0x2c   : > { %976 = vmatpush.bf16.msrb.mxu2 %v4351_v36  ;;  %752 = vmatpush.bf16.msrb.mxu1 %v4335_v39  ;;  %v4346_v36 = vld [vmem:[%s5896_s1 + $0x90] sm:$0xff]  ;;  %v352_v39 = vunpack.c.l.b16 %v261_v32  ;;  %v397_v58 = vshll.u32 %v4724_v41, 16  ;;  %v4790_v32 = vld [vmem:[%s4562_s28 + $0xc] sm:$0xf] }
  0x2d   : > { %1754 = vmatpush.bf16.msrb.mxu0 %v4384_v40  ;;  %670 = vmatmul.bf16.vlgmr.msra.gmra.mxu3 %v504_v51  ;;  %v449_v40 = vshrl.u32 %v4691_v18, 16  ;;  %v477_v51 = vshll.u32 %v4707_v31, 16 }
  0x2e   : > { %595 = vmatmul.bf16.vlgmr.msra.gmra.mxu0 %v384_v45  ;;  %1361 = vmatpush.bf16.msrb.mxu3 %v4376_v52  ;;  %v4741_v52 = vld [vmem:[%s4562_s28 + $0x20] sm:$0xff]  ;;  %v399_v5 = vrot.slane %v397_v58, 1 }
  0x2f   : > { %v451_v45 = vor.u32 %v449_v40, %v4711_v35  ;;  %v479_v63 = vrot.slane %v477_v51, 1  ;;  %v405_v0 = vshll.u32 %v4741_v52, 16  ;;  %v5900_v40 = vunpack.c.l.b16 %v4790_v32 }
  0x30   : > { %977 = vmatpush.bf16.msrb.mxu2 %v4350_v46  ;;  %753 = vmatpush.bf16.msrb.mxu1 %v4334_v47  ;;  %v433_v46 = vshrl.u32 %v4642_v49, 16  ;;  %v437_v47 = vshll.u32 %v4704_v30, 16 }
  0x31   : > { %1755 = vmatpush.bf16.msrb.mxu0 %v4383_v48  ;;  %v473_v48 = vshrl.u32 %v4645_v50, 16 }
  0x32   : > { %1362 = vmatpush.bf16.msrb.mxu3 %v4375_v61  ;;  %v435_v59 = vor.u32 %v433_v46, %v431_v9  ;;  %v439_v60 = vrot.slane %v437_v47, 1  ;;  %v4352_v46 = vld [vmem:[%s4562_s28 + $0x10] sm:$0xff] }
  0x33   : > { %v475_v61 = vor.u32 %v473_v48, %v471_v12  ;;  %v407_v12 = vrot.slane %v405_v0, 1  ;;  %v1259_v58 = vrot.slane %v4352_v46, 1  ;;  %v4433_v0 = vld [vmem:[%s5896_s1 + $0x238] sm:$0xff] }
  0x34   : > { %978 = vmatpush.bf16.msrb.mxu2 %v4349_v54  ;;  %754 = vmatpush.bf16.msrb.mxu1 %v4333_v55  ;;  %v4743_v54 = vpack.c.b16 %v352_v39, %v352_v39  ;;  %v4372_v55 = vld [vmem:[%s5896_s1 + $0xd8] sm:$0xff]  ;;  %v440_v11 = vsel %vm372_vm0, %v435_v59, %v439_v60 }
  0x35   : > { %1756 = vmatpush.bf16.msrb.mxu0 %v4382_v56  ;;  %v4750_v56 = vsel %vm372_vm0, %v451_v45, %v4600_v21  ;;  %v4371_v21 = vld [vmem:[%s5896_s1 + $0xd0] sm:$0xff]  ;;  %v480_v9 = vsel %vm372_vm0, %v475_v61, %v479_v63 }
  0x36   : > { %1363 = vmatpush.bf16.msrb.mxu3 %v4374_v17 }
  0x38   : > { %979 = vmatpush.bf16.msrb.mxu2 %v4348_v1  ;;  %755 = vmatpush.bf16.msrb.mxu1 %v4332_v2  ;;  %v513_v1 = vshrl.u32 %v4671_v62, 16  ;;  %v517_v2 = vshll.u32 %v4743_v54, 16  ;;  %v409_v62 = vshrl.u32 %v4741_v52, 16 }
  0x39   : > { %1757 = vmatpush.bf16.msrb.mxu0 %v4381_v3  ;;  %v395_v3 = vor.u32 %v393_v57, %v391_v20  ;;  %v4329_v20 = vld [vmem:[%s5896_s1 + $0x8] sm:$0xff] }
  0x3a   : > { %1364 = vmatpush.bf16.msrb.mxu3 %v4373_v38  ;;  %v515_v14 = vor.u32 %v513_v1, %v511_v27  ;;  %v519_v15 = vrot.slane %v517_v2, 1  ;;  %v411_v19 = vor.u32 %v409_v62, %v407_v12  ;;  %v4378_v27 = vld [vmem:[%s5896_s1 + $0x108] sm:$0xff]  ;;  %v1527_v62 = vshrl.u32 %v4352_v46, 16 }
  0x3b   : > { %625 = vmatmul.bf16.gmra.mxu1 %v432_v24  ;;  %650 = vmatmul.bf16.gmra.mxu2 %v472_v25  ;;  %v400_v17 = vsel %vm372_vm0, %v395_v3, %v399_v5  ;;  %v4370_v25 = vld [vmem:[%s5896_s1 + $0xc8] sm:$0xff] }
  0x3c   : > { %980 = vmatpush.bf16.msrb.mxu2 %v4347_v22  ;;  %756 = vmatpush.bf16.msrb.mxu1 %v4331_v23  ;;  %v4765_v22 = vld [vmem:[%s4562_s28 + $0x70] sm:$0xff]  ;;  %v520_v23 = vsel %vm372_vm0, %v515_v14, %v519_v15  ;;  %v416_v24 = vsel %vm372_vm0, %v411_v19, %v4592_v16  ;;  %v4369_v16 = vld [vmem:[%s5896_s1 + $0xc0] sm:$0xff] }
  0x3d   : > { %1758 = vmatpush.bf16.msrb.mxu0 %v4380_v37  ;;  %675 = vmatmul.bf16.gmra.mxu3 %v512_v34  ;;  %v441_v34 = vshrl.u32 %v4704_v30, 16  ;;  %v481_v37 = vshrl.u32 %v4707_v31, 16  ;;  %v485_v38 = vshll.u32 %v4765_v22, 16  ;;  %v489_v1 = vshrl.u32 %v4765_v22, 16 }
  0x3e   : > { %600 = vmatmul.bf16.gmra.mxu0 %v392_v29  ;;  %1365 = vmatpush.bf16.msrb.mxu3 %v4372_v55  ;;  %v1111_v29 = vld [vmem:[%s4562_s28 + $0x8] sm:$0xe] }
  0x3f   : > { %v1202_v39 = vunpack.c.l.b16 %v1111_v29  ;;  %v487_v45 = vrot.slane %v485_v38, 1  ;;  %v4424_v38 = vld [vmem:[%s5896_s1 + $0x1f0] sm:$0xff] }
  0x40   : > { %981 = vmatpush.bf16.msrb.mxu2 %v4346_v36  ;;  %757 = vmatpush.bf16.msrb.mxu1 %v4330_v42  ;;  %v4377_v36 = vld [vmem:[%s5896_s1 + $0x100] sm:$0xff]  ;;  %v401_v42 = vshrl.u32 %v4724_v41, 16 }
  0x41   : > { %1759 = vmatpush.bf16.msrb.mxu0 %v4379_v44  ;;  %v483_v44 = vor.u32 %v481_v37, %v479_v63  ;;  %v1239_v47 = vpack.c.b16 %v5900_v40, %v1202_v39  ;;  %v4392_v63 = vld [vmem:[%s5896_s1 + $0x178] sm:$0xff]  ;;  %v491_v2 = vor.u32 %v489_v1, %v487_v45  ;;  %v4416_v37 = vld [vmem:[%s5896_s1 + $0x1b0] sm:$0xff] }
  0x42   : > { %1366 = vmatpush.bf16.msrb.mxu3 %v4371_v21  ;;  %v403_v48 = vor.u32 %v401_v42, %v399_v5  ;;  %v4353_v21 = vld [vmem:[%s4562_s28 + $0x18] sm:$0xff]  ;;  %v4391_v39 = vld [vmem:[%s5896_s1 + $0x170] sm:$0xff] }
  0x43   : > { %v488_v55 = vsel %vm372_vm0, %v483_v44, %v487_v45  ;;  %v1258_v57 = vrot.slane %v1239_v47, 1  ;;  %v496_v3 = vsel %vm372_vm0, %v491_v2, %v4615_v33  ;;  %v1261_v5 = vrot.slane %v4353_v21, 1 }
  0x44   : > { %982 = vmatpush.bf16.msrb.mxu2 %v4345_v43  ;;  %758 = vmatpush.bf16.msrb.mxu1 %v4329_v20  ;;  %v443_v43 = vor.u32 %v441_v34, %v439_v60  ;;  %v408_v59 = vsel %vm372_vm0, %v403_v48, %v407_v12  ;;  %v4417_v60 = vld [vmem:[%s5896_s1 + $0x1b8] sm:$0xff]  ;;  %v4439_v12 = vld [vmem:[%s4562_s28] sm:$0xe]  ;;  %v1519_v14 = vshrl.u32 %v1239_v47, 16  ;;  %v1522_v15 = vshll.u32 %v1239_v47, 16 }
  0x45   : > { %1760 = vmatpush.bf16.msrb.mxu0 %v4378_v27  ;;  %v1260_v61 = vsel %vm872_vm1, %v1258_v57, %v1259_v58  ;;  %v4354_v27 = vld [vmem:[%s4562_s28 + $0x20] sm:$0xff]  ;;  %v1536_v42 = vshrl.u32 %v4353_v21, 16  ;;  %v876_v45 = vrot.slane %v4652_v53, 1 }
  0x46   : > { %1367 = vmatpush.bf16.msrb.mxu3 %v4370_v25  ;;  %v448_v51 = vsel %vm372_vm0, %v443_v43, %v4711_v35  ;;  %v4425_v35 = vld [vmem:[%s5896_s1 + $0x1f8] sm:$0xff]  ;;  %v1521_v20 = vrot.slane %v1519_v14, 1  ;;  %v1529_v25 = vrot.slane %v1527_v62, 1  ;;  %v1539_v43 = vshll.u32 %v4353_v21, 16  ;;  %v4415_v14 = vld [vmem:[%s5896_s1 + $0x1a8] sm:$0xff] }
  0x47   : > { %v4357_v62 = vld [vmem:[%s4562_s28 + $0x38] sm:$0xff] }
  0x48   : > { %983 = vmatpush.bf16.msrb.mxu2 %v4344_v26  ;;  %759 = vmatpush.bf16.msrb.mxu1 %v4328_v28  ;;  %v1541_v44 = vrot.slane %v1539_v43, 2 }
  0x49   : > { %1761 = vmatpush.bf16.msrb.mxu0 %v4377_v36 }
  0x4a   : > { %1368 = vmatpush.bf16.msrb.mxu3 %v4369_v16  ;;  %v1263_v16 = vrot.slane %v4354_v27, 1 }
  0x4b   : > { %630 = vmatmul.bf16.gmra.mxu1 %v440_v11  ;;  %655 = vmatmul.bf16.gmra.mxu2 %v480_v9  ;;  %v4438_v11 = vld [vmem:[%s4562_s28] sm:$0xf0]  ;;  %v1262_v9 = vsel %vm872_vm1, %v1259_v58, %v1261_v5 }
  0x4c   : > { %2399 = vmatpush.bf16.msra.mxu2 %v4417_v60  ;;  %2014 = vmatpush.bf16.msra.mxu1 %v4392_v63  ;;  %v4440_v19 = vor.u32 %v4439_v12, %v4438_v11  ;;  %v1264_v36 = vsel %vm872_vm1, %v1261_v5, %v1263_v16  ;;  %v1548_v60 = vshll.u32 %v4354_v27, 16  ;;  %v878_v63 = vrot.slane %v4724_v41, 1 }
  0x4d   : > { %680 = vmatmul.bf16.gmra.mxu3 %v520_v23  ;;  %3052 = vmatpush.bf16.msra.mxu0 %v4433_v0  ;;  %v1524_v23 = vrot.slane %v1522_v15, 2  ;;  %v4356_v0 = vld [vmem:[%s4562_s28 + $0x30] sm:$0xff]  ;;  %v4423_v15 = vld [vmem:[%s5896_s1 + $0x1e8] sm:$0xff] }
  0x4e   : > { %605 = vmatmul.bf16.gmra.mxu0 %v400_v17  ;;  %2792 = vmatpush.bf16.msra.mxu3 %v4425_v35  ;;  %v1530_v17 = vshll.u32 %v4352_v46, 16  ;;  %v873_v26 = vrot.slane %v4440_v19, 1  ;;  %v4355_v46 = vld [vmem:[%s4562_s28 + $0x28] sm:$0xff]  ;;  %v1550_v35 = vrot.slane %v1548_v60, 2  ;;  %v879_v2 = vsel %vm872_vm1, %v876_v45, %v878_v63 }
  0x4f   : > { %v1267_v21 = vrot.slane %v4356_v0, 1  ;;  %v1554_v5 = vshrl.u32 %v4355_v46, 16  ;;  %v1557_v11 = vshll.u32 %v4355_v46, 16  ;;  %v4390_v19 = vld [vmem:[%s5896_s1 + $0x168] sm:$0xff] }
  0x50   : > { %v1532_v33 = vrot.slane %v1530_v17, 2  ;;  %2400 = vmatpush.bf16.msra.mxu2 %v4416_v37  ;;  %2015 = vmatpush.bf16.msra.mxu1 %v4391_v39  ;;  %v4358_v39 = vld [vmem:[%s4562_s28 + $0x40] sm:$0xff] }
  0x51   : > { %v1559_v12 = vrot.slane %v1557_v11, 2  ;;  %v4422_v11 = vld [vmem:[%s5896_s1 + $0x1e0] sm:$0xff] }
  0x52   : > { %v1533_v28 = vor.u32 %v1532_v33, %v1529_v25  ;;  %2793 = vmatpush.bf16.msra.mxu3 %v4424_v38  ;;  %v1269_v25 = vrot.slane %v4357_v62, 1  ;;  %v882_v38 = vrot.slane %v4565_v4, 1 }
  0x54   : > { %2401 = vmatpush.bf16.msra.mxu2 %v4415_v14  ;;  %2016 = vmatpush.bf16.msra.mxu1 %v4390_v19 }
  0x56   : > { %2794 = vmatpush.bf16.msra.mxu3 %v4423_v15  ;;  %v4389_v15 = vld [vmem:[%s5896_s1 + $0x160] sm:$0xff] }
  0x58   : > { %2017 = vmatpush.bf16.msra.mxu1 %v4389_v15 }
  0x5a   : > { %2795 = vmatpush.bf16.msra.mxu3 %v4422_v11  ;;  %v888_v11 = vrot.slane %v4704_v30, 1 }
  0x5b   : > { %635 = vmatmul.bf16.gmra.mxu1 %v448_v51  ;;  %660 = vmatmul.bf16.gmra.mxu2 %v488_v55  ;;  %v1265_v51 = vrot.slane %v4355_v46, 1  ;;  %v4432_v55 = vld [vmem:[%s5896_s1 + $0x230] sm:$0xff] }
  0x5c   : > { %3053 = vmatpush.bf16.msra.mxu0 %v4432_v55  ;;  %v1572_v55 = vshrl.u32 %v4357_v62, 16 }
  0x5d   : > { %1369 = vmatmul.bf16.vlgmr.msrb.gmra.mxu3 %v1260_v61  ;;  %v1266_v58 = vsel %vm872_vm1, %v1263_v16, %v1265_v51 }
  0x5e   : > { %610 = vmatmul.bf16.gmra.mxu0 %v408_v59  ;;  %v1545_v59 = vshrl.u32 %v4354_v27, 16  ;;  %v4431_v27 = vld [vmem:[%s5896_s1 + $0x228] sm:$0xff] }
  0x60   : > { %v1547_v61 = vrot.slane %v1545_v59, 1  ;;  %3054 = vmatpush.bf16.msra.mxu0 %v4431_v27 }
  0x62   : > { %v1551_v1 = vor.u32 %v1550_v35, %v1547_v61  ;;  %v1574_v61 = vrot.slane %v1572_v55, 1 }
  0x6b   : > { %640 = vmatmul.bf16.gmra.mxu1 %v4750_v56  ;;  %665 = vmatmul.bf16.gmra.mxu2 %v496_v3  ;;  %v874_v56 = vrot.slane %v4588_v13, 1 }
  0x6d   : > { %1374 = vmatmul.bf16.gmra.mxu3 %v1262_v9  ;;  %v875_v29 = vsel %vm872_vm1, %v873_v26, %v874_v56  ;;  %v877_v48 = vsel %vm872_vm1, %v874_v56, %v876_v45  ;;  %v1556_v9 = vrot.slane %v1554_v5, 1  ;;  %v1270_v56 = vsel %vm872_vm1, %v1267_v21, %v1269_v25 }
  0x6e   : > { %615 = vmatmul.bf16.gmra.mxu0 %v416_v24  ;;  %v1525_v24 = vor.u32 %v1524_v23, %v1521_v20  ;;  %v1271_v45 = vrot.slane %v4358_v39, 1 }
  0x6f   : > { %v1560_v17 = vor.u32 %v1559_v12, %v1556_v9 }
  0x70   : > { %v1534_v34 = vsel %vm1517_vm2, %v1525_v24, %v1533_v28  ;;  %v1563_v24 = vshrl.u32 %v4356_v0, 16 }
  0x71   : > { %v1561_v26 = vsel %vm1517_vm2, %v1551_v1, %v1560_v17 }
  0x7b   : > { %760 = vmatmul.bf16.vlgmr.msrb.gmra.mxu1 %v4574_v7  ;;  %984 = vmatmul.bf16.vlgmr.msrb.gmra.mxu2 %v875_v29  ;;  %v1538_v7 = vrot.slane %v1536_v42, 1 }
  0x7d   : > { %1379 = vmatmul.bf16.gmra.mxu3 %v1264_v36  ;;  %v1542_v47 = vor.u32 %v1541_v44, %v1538_v7 }
  0x7e   : > { %1762 = vmatmul.bf16.vlgmr.msrb.gmra.mxu0 %v1534_v34 }
  0x7f   : > { %v1543_v57 = vsel %vm1517_vm2, %v1533_v28, %v1542_v47  ;;  %v1552_v3 = vsel %vm1517_vm2, %v1542_v47, %v1551_v1  ;;  %v1566_v28 = vshll.u32 %v4356_v0, 16  ;;  %v884_v0 = vrot.slane %v4577_v8, 1 }
  0x81   : > { %v1568_v36 = vrot.slane %v1566_v28, 2  ;;  %v4360_v28 = vld [vmem:[%s4562_s28 + $0x50] sm:$0xff] }
  0x8b   : > { %765 = vmatmul.bf16.gmra.mxu1 %v4588_v13  ;;  %989 = vmatmul.bf16.gmra.mxu2 %v877_v48  ;;  %v1268_v13 = vsel %vm872_vm1, %v1265_v51, %v1267_v21  ;;  %v1272_v51 = vsel %vm872_vm1, %v1269_v25, %v1271_v45  ;;  %v4414_v21 = vld [vmem:[%s5896_s1 + $0x1a0] sm:$0xff] }
  0x8c   : > { %2402 = vmatpush.bf16.msra.mxu2 %v4414_v21 }
  0x8d   : > { %1384 = vmatmul.bf16.gmra.mxu3 %v1266_v58 }
  0x8e   : > { %1767 = vmatmul.bf16.gmra.mxu0 %v1543_v57  ;;  %v1575_v57 = vshll.u32 %v4357_v62, 16  ;;  %v1581_v62 = vshrl.u32 %v4358_v39, 16 }
  0x90   : > { %v1577_v35 = vrot.slane %v1575_v57, 2 }
  0x92   : > { %v1578_v1 = vor.u32 %v1577_v35, %v1574_v61 }
  0x9b   : > { %770 = vmatmul.bf16.gmra.mxu1 %v4652_v53  ;;  %994 = vmatmul.bf16.gmra.mxu2 %v879_v2  ;;  %v880_v53 = vrot.slane %v4741_v52, 1 }
  0x9d   : > { %1389 = vmatmul.bf16.gmra.mxu3 %v1268_v13  ;;  %v881_v23 = vsel %vm872_vm1, %v878_v63, %v880_v53  ;;  %v883_v44 = vsel %vm872_vm1, %v880_v53, %v882_v38  ;;  %v885_v13 = vsel %vm872_vm1, %v882_v38, %v884_v0 }
  0x9e   : > { %1772 = vmatmul.bf16.gmra.mxu0 %v1552_v3 }
  0xa8   : > { %v4869_v20 = vpop.f32.mrf.mxu1 }
  0xab   : > { %v4872_v33 = vpop.f32.mrf.mxu0  ;;  %775 = vmatmul.bf16.gmra.mxu1 %v4724_v41  ;;  %999 = vmatmul.bf16.gmra.mxu2 %v881_v23  ;;  %v1565_v41 = vrot.slane %v1563_v24, 1  ;;  %v886_v24 = vrot.slane %v4642_v49, 1 }
  0xad   : > { %1394 = vmatmul.bf16.gmra.mxu3 %v1270_v56  ;;  %v1569_v42 = vor.u32 %v1568_v36, %v1565_v41 }
  0xae   : > { %1777 = vmatmul.bf16.gmra.mxu0 %v1561_v26  ;;  %v4880_v29 = vpop.f32.mrf.mxu2  ;;  %v1583_v26 = vrot.slane %v1581_v62, 1 }
  0xaf   : > { %v1570_v47 = vsel %vm1517_vm2, %v1560_v17, %v1569_v42  ;;  %v1579_v12 = vsel %vm1517_vm2, %v1569_v42, %v1578_v1  ;;  %v1584_v17 = vshll.u32 %v4358_v39, 16  ;;  %v887_v39 = vsel %vm872_vm1, %v884_v0, %v886_v24 }
  0xb0   : > { %v4882_v16 = vpop.f32.mrf.mxu1  ;;  %v4886_v37 = vpop.f32.mrf.mxu3  ;;  %v1275_v42 = vrot.slane %v4360_v28, 1 }
  0xb1   : > { %5902 = vst [vmem:[#allocation2_spill] sm:$0xff] %v4886_v37  ;;  %v1586_v56 = vrot.slane %v1584_v17, 2 }
  0xb3   : > { %v4884_v34 = vpop.f32.mrf.mxu0  ;;  %v1587_v41 = vor.u32 %v1586_v56, %v1583_v26  ;;  %v4413_v26 = vld [vmem:[%s5896_s1 + $0x198] sm:$0xff] }
  0xb4   : > { %2403 = vmatpush.bf16.msra.mxu2 %v4413_v26 }
  0xb6   : > { %v4890_v43 = vpop.f32.mrf.mxu2 }
  0xb8   : > { %v4892_v7 = vpop.f32.mrf.mxu1  ;;  %v4898_v48 = vpop.f32.mrf.mxu3 }
  0xb9   : > { %5903 = vst [vmem:[#allocation3_spill] sm:$0xff] %v4898_v48 }
  0xbb   : > { %v4895_v46 = vpop.f32.mrf.mxu0  ;;  %780 = vmatmul.bf16.gmra.mxu1 %v4741_v52  ;;  %1004 = vmatmul.bf16.gmra.mxu2 %v883_v44  ;;  %v4359_v52 = vld [vmem:[%s4562_s28 + $0x48] sm:$0xff] }
  0xbc   : > { %v1273_v5 = vrot.slane %v4359_v52, 1  ;;  %v1590_v55 = vshrl.u32 %v4359_v52, 16  ;;  %v1593_v57 = vshll.u32 %v4359_v52, 16  ;;  %v889_v52 = vsel %vm872_vm1, %v886_v24, %v888_v11  ;;  %v4421_v24 = vld [vmem:[%s5896_s1 + $0x1d8] sm:$0xff] }
  0xbd   : > { %1399 = vmatmul.bf16.gmra.mxu3 %v1272_v51 }
  0xbe   : > { %1782 = vmatmul.bf16.gmra.mxu0 %v1570_v47  ;;  %v4902_v58 = vpop.f32.mrf.mxu2  ;;  %v1274_v53 = vsel %vm872_vm1, %v1271_v45, %v1273_v5  ;;  %v1588_v45 = vsel %vm1517_vm2, %v1578_v1, %v1587_v41  ;;  %v1276_v51 = vsel %vm872_vm1, %v1273_v5, %v1275_v42  ;;  %v1592_v21 = vrot.slane %v1590_v55, 1  ;;  %2796 = vmatpush.bf16.msra.mxu3 %v4421_v24 }
  0xbf   : > { %v1595_v1 = vrot.slane %v1593_v57, 2 }
  0xc0   : > { %v4904_v59 = vpop.f32.mrf.mxu1  ;;  %v4908_v63 = vpop.f32.mrf.mxu3 }
  0xc1   : > { %5904 = vst [vmem:[#allocation4_spill] sm:$0xff] %v4908_v63 }
  0xc3   : > { %v4906_v60 = vpop.f32.mrf.mxu0 }
  0xc6   : > { %v4912_v2 = vpop.f32.mrf.mxu2 }
  0xc8   : > { %v4917_v3 = vpop.f32.mrf.mxu1  ;;  %v4926_v14 = vpop.f32.mrf.mxu3 }
  0xc9   : > { %5905 = vst [vmem:[#allocation5_spill] sm:$0xff] %v4926_v14 }
  0xcb   : > { %v4923_v9 = vpop.f32.mrf.mxu0  ;;  %785 = vmatmul.bf16.gmra.mxu1 %v4565_v4  ;;  %1009 = vmatmul.bf16.gmra.mxu2 %v885_v13  ;;  %v4430_v4 = vld [vmem:[%s5896_s1 + $0x220] sm:$0xff] }
  0xcc   : > { %3055 = vmatpush.bf16.msra.mxu0 %v4430_v4 }
  0xcd   : > { %1404 = vmatmul.bf16.gmra.mxu3 %v1274_v53 }
  0xce   : > { %1787 = vmatmul.bf16.gmra.mxu0 %v1579_v12  ;;  %v4933_v19 = vpop.f32.mrf.mxu2  ;;  %v4361_v12 = vld [vmem:[%s4562_s28 + $0x58] sm:$0xff] }
  0xcf   : > { %v1277_v5 = vrot.slane %v4361_v12, 1 }
  0xd0   : > { %v4935_v23 = vpop.f32.mrf.mxu1  ;;  %v4942_v27 = vpop.f32.mrf.mxu3 }
  0xd1   : > { %5906 = vst [vmem:[#allocation6_spill] sm:$0xff] %v4942_v27  ;;  %v1278_v56 = vsel %vm872_vm1, %v1275_v42, %v1277_v5  ;;  %v4388_v42 = vld [vmem:[%s5896_s1 + $0x158] sm:$0xff] }
  0xd2   : > { %2018 = vmatpush.bf16.msra.mxu1 %v4388_v42 }
  0xd3   : > { %v4940_v25 = vpop.f32.mrf.mxu0 }
  0xd6   : > { %v4946_v36 = vpop.f32.mrf.mxu2 }
  0xd8   : > { %v4948_v38 = vpop.f32.mrf.mxu1  ;;  %v4954_v47 = vpop.f32.mrf.mxu3 }
  0xd9   : > { %5907 = vst [vmem:[#allocation7_spill] sm:$0xff] %v4954_v47 }
  0xdb   : > { %v4951_v44 = vpop.f32.mrf.mxu0  ;;  %790 = vmatmul.bf16.gmra.mxu1 %v4577_v8  ;;  %1014 = vmatmul.bf16.gmra.mxu2 %v887_v39  ;;  %v1596_v8 = vor.u32 %v1595_v1, %v1592_v21  ;;  %v1599_v39 = vshrl.u32 %v4360_v28, 16  ;;  %v4429_v21 = vld [vmem:[%s5896_s1 + $0x218] sm:$0xff]  ;;  %v890_v1 = vrot.slane %v4691_v18, 1 }
  0xdc   : > { %3056 = vmatpush.bf16.msra.mxu0 %v4429_v21  ;;  %v1611_v21 = vshll.u32 %v4361_v12, 16 }
  0xdd   : > { %1409 = vmatmul.bf16.gmra.mxu3 %v1276_v51  ;;  %v1597_v17 = vsel %vm1517_vm2, %v1587_v41, %v1596_v8  ;;  %v1601_v55 = vrot.slane %v1599_v39, 1  ;;  %v891_v24 = vsel %vm872_vm1, %v888_v11, %v890_v1 }
  0xde   : > { %1792 = vmatmul.bf16.gmra.mxu0 %v1588_v45  ;;  %v4958_v61 = vpop.f32.mrf.mxu2  ;;  %v1602_v45 = vshll.u32 %v4360_v28, 16  ;;  %v1613_v37 = vrot.slane %v1611_v21, 2 }
  0xe0   : > { %v4960_v35 = vpop.f32.mrf.mxu1  ;;  %v1370_v13 = vpop.f32.mrf.mxu3  ;;  %v1604_v57 = vrot.slane %v1602_v45, 2 }
  0xe3   : > { %v4962_v0 = vpop.f32.mrf.mxu0 }
  0xe6   : > { %v4966_v15 = vpop.f32.mrf.mxu2 }
  0xe8   : > { %v4968_v53 = vpop.f32.mrf.mxu1  ;;  %v1372_v4 = vpop.f32.mrf.mxu3 }
  0xeb   : > { %v4971_v62 = vpop.f32.mrf.mxu0  ;;  %795 = vmatmul.bf16.gmra.mxu1 %v4642_v49  ;;  %1019 = vmatmul.bf16.gmra.mxu2 %v889_v52  ;;  %v4362_v52 = vld [vmem:[%s4562_s28 + $0x60] sm:$0xff] }
  0xec   : > { %v1279_v39 = vrot.slane %v4362_v52, 1 }
  0xed   : > { %1414 = vmatmul.bf16.gmra.mxu3 %v1278_v56 }
  0xee   : > { %1797 = vmatmul.bf16.gmra.mxu0 %v1597_v17  ;;  %v4982_v41 = vpop.f32.mrf.mxu2  ;;  %v1605_v17 = vor.u32 %v1604_v57, %v1601_v55  ;;  %v1280_v42 = vsel %vm872_vm1, %v1277_v5, %v1279_v39  ;;  %v1608_v57 = vshrl.u32 %v4361_v12, 16 }
  0xf0   : > { %v4984_v49 = vpop.f32.mrf.mxu1  ;;  %v1375_v28 = vpop.f32.mrf.mxu3  ;;  %v1606_v40 = vsel %vm1517_vm2, %v1596_v8, %v1605_v17  ;;  %v1610_v8 = vrot.slane %v1608_v57, 1 }
  0xf2   : > { %v1614_v5 = vor.u32 %v1613_v37, %v1610_v8 }
  0xf3   : > { %v4986_v51 = vpop.f32.mrf.mxu0 }
  0xf4   : > { %v1615_v57 = vsel %vm1517_vm2, %v1605_v17, %v1614_v5 }
  0xf6   : > { %v4996_v26 = vpop.f32.mrf.mxu2 }
  0xf7   : > { %5908 = vst [vmem:[#allocation8_spill] sm:$0xff] %v4996_v26 }
  0xf8   : > { %v761_v56 = vpop.f32.mrf.mxu1  ;;  %v5000_v47 = vpop.f32.mrf.mxu3 }
  0xf9   : > { %v762_v55 = vadd.f32 %v761_v56, %v4872_v33 }
  0xfb   : > { %v1763_v45 = vpop.f32.mrf.mxu0  ;;  %800 = vmatmul.bf16.gmra.mxu1 %v4704_v30  ;;  %1024 = vmatmul.bf16.gmra.mxu2 %v891_v24  ;;  %v5011_v24 = vld [vmem:[%s4562_s28 + $0x68] sm:$0xff] }
  0xfd   : > { %1419 = vmatmul.bf16.gmra.mxu3 %v1280_v42 }
  0xfe   : > { %1802 = vmatmul.bf16.gmra.mxu0 %v1606_v40  ;;  %v985_v27 = vpop.f32.mrf.mxu2  ;;  %v892_v40 = vrot.slane %v4571_v6, 1 }
  0xff   : > { %v1075_v14 = vadd.f32 %v985_v27, %v762_v55 }
 0x100   : > { %v763_v11 = vpop.f32.mrf.mxu1  ;;  %v5005_v26 = vpop.f32.mrf.mxu3  ;;  %v893_v42 = vsel %vm872_vm1, %v890_v1, %v892_v40  ;;  %v1620_v1 = vshll.u32 %v4362_v52, 16 }
 0x101   : > { %v1460_v63 = vadd.f32 %v1370_v13, %v1075_v14  ;;  %v764_v33 = vadd.f32 %v763_v11, %v4884_v34  ;;  %v1281_v14 = vrot.slane %v5011_v24, 1 }
 0x103   : > { %v1765_v48 = vpop.f32.mrf.mxu0  ;;  %v5007_v30 = vadd.f32 %v1763_v45, %v1460_v63  ;;  %v1282_v34 = vsel %vm872_vm1, %v1279_v39, %v1281_v14  ;;  %v1617_v45 = vshrl.u32 %v4362_v52, 16  ;;  %v894_v39 = vrot.slane %v4581_v10, 1  ;;  %v4428_v10 = vld [vmem:[%s5896_s1 + $0x210] sm:$0xff] }
 0x104   : > { %3057 = vmatpush.bf16.msra.mxu0 %v4428_v10 }
 0x106   : > { %v987_v12 = vpop.f32.mrf.mxu2 }
 0x107   : > { %v1076_v56 = vadd.f32 %v987_v12, %v764_v33  ;;  %v1619_v33 = vrot.slane %v1617_v45, 1  ;;  %v1622_v12 = vrot.slane %v1620_v1, 2 }
 0x108   : > { %v766_v27 = vpop.f32.mrf.mxu1  ;;  %v5017_v63 = vpop.f32.mrf.mxu3 }
 0x109   : > { %v1461_v13 = vadd.f32 %v1372_v4, %v1076_v56  ;;  %v767_v37 = vadd.f32 %v766_v27, %v4895_v46  ;;  %v4387_v46 = vld [vmem:[%s5896_s1 + $0x150] sm:$0xff] }
 0x10a   : > { %2019 = vmatpush.bf16.msra.mxu1 %v4387_v46  ;;  %v4364_v56 = vld [vmem:[%s4562_s28 + $0x70] sm:$0xff] }
 0x10b   : > { %v1768_v55 = vpop.f32.mrf.mxu0  ;;  %805 = vmatmul.bf16.gmra.mxu1 %v4691_v18  ;;  %1029 = vmatmul.bf16.gmra.mxu2 %v893_v42  ;;  %v5020_v6 = vadd.f32 %v1765_v48, %v1461_v13  ;;  %v4412_v18 = vld [vmem:[%s5896_s1 + $0x190] sm:$0xff]  ;;  %v1623_v42 = vor.u32 %v1622_v12, %v1619_v33  ;;  %v1283_v45 = vrot.slane %v4364_v56, 1 }
 0x10c   : > { %v4420_v48 = vld [vmem:[%s5896_s1 + $0x1d0] sm:$0xff]  ;;  %2404 = vmatpush.bf16.msra.mxu2 %v4412_v18 }
 0x10d   : > { %1424 = vmatmul.bf16.gmra.mxu3 %v1282_v34 }
 0x10e   : > { %1807 = vmatmul.bf16.gmra.mxu0 %v1615_v57  ;;  %v990_v21 = vpop.f32.mrf.mxu2  ;;  %2797 = vmatpush.bf16.msra.mxu3 %v4420_v48 }
 0x10f   : > { %v1077_v11 = vadd.f32 %v990_v21, %v767_v37  ;;  %v895_v37 = vsel %vm872_vm1, %v892_v40, %v894_v39  ;;  %v1284_v40 = vsel %vm872_vm1, %v1281_v14, %v1283_v45 }
 0x110   : > { %v768_v4 = vpop.f32.mrf.mxu1  ;;  %v5033_v52 = vpop.f32.mrf.mxu3 }
 0x111   : > { %v1462_v17 = vadd.f32 %v1375_v28, %v1077_v11  ;;  %v769_v27 = vadd.f32 %v768_v4, %v4906_v60  ;;  %v1626_v4 = vshrl.u32 %v5011_v24, 16 }
 0x113   : > { %v1770_v8 = vpop.f32.mrf.mxu0  ;;  %v5035_v28 = vadd.f32 %v1768_v55, %v1462_v17  ;;  %v1624_v55 = vsel %vm1517_vm2, %v1614_v5, %v1623_v42  ;;  %v4479_v17 = vld [vmem:[%s4562_s28 + $0x50] sm:$0xff]  ;;  %v1629_v5 = vshll.u32 %v5011_v24, 16 }
 0x116   : > { %v992_v13 = vpop.f32.mrf.mxu2 }
 0x117   : > { %v1078_v57 = vadd.f32 %v992_v13, %v769_v27  ;;  %v1631_v27 = vrot.slane %v1629_v5, 2 }
 0x118   : > { %v771_v34 = vpop.f32.mrf.mxu1  ;;  %v5046_v11 = vpop.f32.mrf.mxu3 }
 0x119   : > { %v1463_v1 = vadd.f32 %v5000_v47, %v1078_v57  ;;  %v772_v47 = vadd.f32 %v771_v34, %v4923_v9  ;;  %v896_v9 = vrot.slane %v4645_v50, 1  ;;  %v5062_v57 = vld [vmem:[%s4562_s28 + $0x78] sm:$0xff] }
 0x11a   : > { %v1285_v10 = vrot.slane %v5062_v57, 1  ;;  %v4480_v50 = vld [vmem:[%s4562_s28 + $0x58] sm:$0xff] }
 0x11b   : > { %v1773_v21 = vpop.f32.mrf.mxu0  ;;  %810 = vmatmul.bf16.gmra.mxu1 %v4479_v17  ;;  %1034 = vmatmul.bf16.gmra.mxu2 %v895_v37  ;;  %v5049_v60 = vadd.f32 %v1770_v8, %v1463_v1  ;;  %v1628_v8 = vrot.slane %v1626_v4, 1 }
 0x11d   : > { %1429 = vmatmul.bf16.gmra.mxu3 %v1284_v40  ;;  %v1632_v34 = vor.u32 %v1631_v27, %v1628_v8 }
 0x11e   : > { %1812 = vmatmul.bf16.gmra.mxu0 %v1624_v55  ;;  %v995_v33 = vpop.f32.mrf.mxu2 }
 0x11f   : > { %v1079_v12 = vadd.f32 %v995_v33, %v772_v47  ;;  %v1638_v33 = vshll.u32 %v4364_v56, 16 }
 0x120   : > { %v773_v18 = vpop.f32.mrf.mxu1  ;;  %v5056_v13 = vpop.f32.mrf.mxu3 }
 0x121   : > { %v1464_v48 = vadd.f32 %v5005_v26, %v1079_v12  ;;  %v774_v24 = vadd.f32 %v773_v18, %v4940_v25  ;;  %v897_v26 = vsel %vm872_vm1, %v894_v39, %v896_v9  ;;  %v1286_v25 = vsel %vm872_vm1, %v1283_v45, %v1285_v10 }
 0x122   : > { %v1635_v39 = vshrl.u32 %v4364_v56, 16  ;;  %v1640_v27 = vrot.slane %v1638_v33, 2 }
 0x123   : > { %v1775_v46 = vpop.f32.mrf.mxu0  ;;  %v5058_v14 = vadd.f32 %v1773_v21, %v1464_v48  ;;  %v1633_v21 = vsel %vm1517_vm2, %v1623_v42, %v1632_v34 }
 0x124   : > { %v1637_v8 = vrot.slane %v1635_v39, 1  ;;  %v4386_v39 = vld [vmem:[%s5896_s1 + $0x148] sm:$0xff] }
 0x125   : > { %2020 = vmatpush.bf16.msra.mxu1 %v4386_v39 }
 0x126   : > { %v997_v37 = vpop.f32.mrf.mxu2 }
 0x127   : > { %v1080_v1 = vadd.f32 %v997_v37, %v774_v24  ;;  %v5089_v24 = vld [vmem:[%s4562_s28 + $0x80] sm:$0xff] }
 0x128   : > { %v776_v55 = vpop.f32.mrf.mxu1  ;;  %v5069_v47 = vpop.f32.mrf.mxu3 }
 0x129   : > { %v1465_v17 = vadd.f32 %v5017_v63, %v1080_v1  ;;  %v777_v5 = vadd.f32 %v776_v55, %v4951_v44  ;;  %v4419_v44 = vld [vmem:[%s5896_s1 + $0x1c8] sm:$0xff]  ;;  %v1641_v1 = vor.u32 %v1640_v27, %v1637_v8 }
 0x12a   : > { %2798 = vmatpush.bf16.msra.mxu3 %v4419_v44 }
 0x12b   : > { %v1778_v40 = vpop.f32.mrf.mxu0  ;;  %815 = vmatmul.bf16.gmra.mxu1 %v4480_v50  ;;  %1039 = vmatmul.bf16.gmra.mxu2 %v897_v26  ;;  %v5072_v4 = vadd.f32 %v1775_v46, %v1465_v17  ;;  %v4411_v46 = vld [vmem:[%s5896_s1 + $0x188] sm:$0xff]  ;;  %v1287_v50 = vrot.slane %v5089_v24, 1 }
 0x12c   : > { %2405 = vmatpush.bf16.msra.mxu2 %v4411_v46 }
 0x12d   : > { %1434 = vmatmul.bf16.gmra.mxu3 %v1286_v25 }
 0x12e   : > { %1817 = vmatmul.bf16.gmra.mxu0 %v1633_v21  ;;  %v1000_v12 = vpop.f32.mrf.mxu2 }
 0x12f   : > { %v1081_v63 = vadd.f32 %v1000_v12, %v777_v5 }
 0x130   : > { %v778_v18 = vpop.f32.mrf.mxu1  ;;  %v5083_v45 = vpop.f32.mrf.mxu3 }
 0x131   : > { %v1466_v42 = vadd.f32 %v5033_v52, %v1081_v63  ;;  %v898_v52 = vrot.slane %v4707_v31, 1  ;;  %v779_v37 = vadd.f32 %v778_v18, %v4962_v0  ;;  %v4481_v0 = vld [vmem:[%s4562_s28 + $0x60] sm:$0xff]  ;;  %v1644_v63 = vshrl.u32 %v5062_v57, 16 }
 0x132   : > { %v1647_v18 = vshll.u32 %v5062_v57, 16 }
 0x133   : > { %v1780_v48 = vpop.f32.mrf.mxu0  ;;  %v5085_v56 = vadd.f32 %v1778_v40, %v1466_v42  ;;  %v899_v21 = vsel %vm872_vm1, %v896_v9, %v898_v52  ;;  %v1642_v40 = vsel %vm1517_vm2, %v1632_v34, %v1641_v1  ;;  %v1288_v9 = vsel %vm872_vm1, %v1285_v10, %v1287_v50 }
 0x134   : > { %v1646_v46 = vrot.slane %v1644_v63, 1  ;;  %v1649_v44 = vrot.slane %v1647_v18, 2  ;;  %v1653_v63 = vshrl.u32 %v5089_v24, 16 }
 0x136   : > { %v1002_v55 = vpop.f32.mrf.mxu2 }
 0x137   : > { %v1082_v26 = vadd.f32 %v1002_v55, %v779_v37 }
 0x138   : > { %v781_v17 = vpop.f32.mrf.mxu1  ;;  %v5099_v33 = vpop.f32.mrf.mxu3 }
 0x139   : > { %v1467_v25 = vadd.f32 %v5046_v11, %v1082_v26  ;;  %v4427_v11 = vld [vmem:[%s5896_s1 + $0x208] sm:$0xff]  ;;  %v782_v34 = vadd.f32 %v781_v17, %v4971_v62  ;;  %v900_v62 = vrot.slane %v4765_v22, 1  ;;  %v1650_v17 = vor.u32 %v1649_v44, %v1646_v46 }
 0x13a   : > { %3058 = vmatpush.bf16.msra.mxu0 %v4427_v11  ;;  %v5118_v26 = vld [vmem:[%s4562_s28 + $0x88] sm:$0xff] }
 0x13b   : > { %v1783_v5 = vpop.f32.mrf.mxu0  ;;  %820 = vmatmul.bf16.gmra.mxu1 %v4481_v0  ;;  %1044 = vmatmul.bf16.gmra.mxu2 %v899_v21  ;;  %v5102_v12 = vadd.f32 %v1780_v48, %v1467_v25  ;;  %v901_v39 = vsel %vm872_vm1, %v898_v52, %v900_v62 }
 0x13d   : > { %1439 = vmatmul.bf16.gmra.mxu3 %v1288_v9 }
 0x13e   : > { %1822 = vmatmul.bf16.gmra.mxu0 %v1642_v40  ;;  %v1005_v42 = vpop.f32.mrf.mxu2 }
 0x13f   : > { %v1083_v8 = vadd.f32 %v1005_v42, %v782_v34 }
 0x140   : > { %v783_v48 = vpop.f32.mrf.mxu1  ;;  %v5112_v37 = vpop.f32.mrf.mxu3 }
 0x141   : > { %v1468_v27 = vadd.f32 %v5056_v13, %v1083_v8  ;;  %v784_v57 = vadd.f32 %v783_v48, %v4986_v51  ;;  %v1289_v13 = vrot.slane %v5118_v26, 1  ;;  %v1655_v48 = vrot.slane %v1653_v63, 1 }
 0x143   : > { %v1785_v10 = vpop.f32.mrf.mxu0  ;;  %v5114_v55 = vadd.f32 %v1783_v5, %v1468_v27  ;;  %v1651_v5 = vsel %vm1517_vm2, %v1641_v1, %v1650_v17  ;;  %v1290_v51 = vsel %vm872_vm1, %v1287_v50, %v1289_v13  ;;  %v4482_v50 = vld [vmem:[%s4562_s28 + $0x78] sm:$0xff] }
 0x144   : > { %v902_v44 = vrot.slane %v4482_v50, 1 }
 0x146   : > { %v1007_v21 = vpop.f32.mrf.mxu2 }
 0x147   : > { %v1084_v25 = vadd.f32 %v1007_v21, %v784_v57 }
 0x148   : > { %v786_v40 = vpop.f32.mrf.mxu1  ;;  %v5125_v11 = vpop.f32.mrf.mxu3 }
 0x149   : > { %v1469_v0 = vadd.f32 %v5069_v47, %v1084_v25  ;;  %v787_v52 = vadd.f32 %v786_v40, %v4869_v20  ;;  %v1656_v47 = vshll.u32 %v5089_v24, 16  ;;  %v5141_v20 = vld [vmem:[%s4562_s28 + $0x90] sm:$0xff] }
 0x14b   : > { %v1788_v9 = vpop.f32.mrf.mxu0  ;;  %825 = vmatmul.bf16.gmra.mxu1 %v4707_v31  ;;  %1049 = vmatmul.bf16.gmra.mxu2 %v901_v39  ;;  %v5128_v34 = vadd.f32 %v1785_v10, %v1469_v0  ;;  %v1658_v27 = vrot.slane %v1656_v47, 2  ;;  %v903_v39 = vsel %vm872_vm1, %v900_v62, %v902_v44  ;;  %v1662_v47 = vshrl.u32 %v5118_v26, 16 }
 0x14d   : > { %1444 = vmatmul.bf16.gmra.mxu3 %v1290_v51  ;;  %v1659_v24 = vor.u32 %v1658_v27, %v1655_v48  ;;  %v4410_v51 = vld [vmem:[%s5896_s1 + $0x180] sm:$0xff] }
 0x14e   : > { %1827 = vmatmul.bf16.gmra.mxu0 %v1651_v5  ;;  %v1010_v18 = vpop.f32.mrf.mxu2  ;;  %2406 = vmatpush.bf16.msra.mxu2 %v4410_v51 }
 0x14f   : > { %v1085_v1 = vadd.f32 %v1010_v18, %v787_v52  ;;  %v1665_v18 = vshll.u32 %v5118_v26, 16 }
 0x150   : > { %v788_v42 = vpop.f32.mrf.mxu1  ;;  %v5135_v10 = vpop.f32.mrf.mxu3 }
 0x151   : > { %v1470_v31 = vadd.f32 %v5083_v45, %v1085_v1  ;;  %v789_v57 = vadd.f32 %v788_v42, %v4882_v16  ;;  %v1291_v45 = vrot.slane %v5141_v20, 1  ;;  %v4418_v16 = vld [vmem:[%s5896_s1 + $0x1c0] sm:$0xff] }
 0x152   : > { %2799 = vmatpush.bf16.msra.mxu3 %v4418_v16 }
 0x153   : > { %v1790_v8 = vpop.f32.mrf.mxu0  ;;  %v5137_v46 = vadd.f32 %v1788_v9, %v1470_v31  ;;  %v1660_v9 = vsel %vm1517_vm2, %v1650_v17, %v1659_v24  ;;  %v1292_v17 = vsel %vm872_vm1, %v1289_v13, %v1291_v45  ;;  %v1664_v13 = vrot.slane %v1662_v47, 1 }
 0x155   : > { %5909 = vst [vmem:[#allocation9_spill] sm:$0xff] %v5137_v46 }
 0x156   : > { %v1012_v21 = vpop.f32.mrf.mxu2 }
 0x157   : > { %v1086_v25 = vadd.f32 %v1012_v21, %v789_v57  ;;  %v1667_v57 = vrot.slane %v1665_v18, 2  ;;  %v2149_v18 = vld [vmem:[%s4562_s28 + $0x10] sm:$0xc] }
 0x158   : > { %v791_v40 = vpop.f32.mrf.mxu1  ;;  %v5154_v52 = vpop.f32.mrf.mxu3 }
 0x159   : > { %v1471_v0 = vadd.f32 %v5099_v33, %v1086_v25  ;;  %v4385_v33 = vld [vmem:[%s5896_s1 + $0x140] sm:$0xff]  ;;  %v792_v63 = vadd.f32 %v791_v40, %v4892_v7 }
 0x15a   : > { %2021 = vmatpush.bf16.msra.mxu1 %v4385_v33  ;;  %v4426_v7 = vld [vmem:[%s5896_s1 + $0x200] sm:$0xff] }
 0x15b   : > { %v1793_v5 = vpop.f32.mrf.mxu0  ;;  %830 = vmatmul.bf16.gmra.mxu1 %v4765_v22  ;;  %1054 = vmatmul.bf16.gmra.mxu2 %v903_v39  ;;  %v5160_v62 = vadd.f32 %v1790_v8, %v1471_v0  ;;  %v1147_v22 = vld [vmem:[%s4562_s28 + $0x98] sm:$0x1]  ;;  %v5176_v25 = vld [vmem:[%s4562_s28 + $0x80] sm:$0xff]  ;;  %v1668_v0 = vor.u32 %v1667_v57, %v1664_v13 }
 0x15c   : > { %v1238_v8 = vunpack.c.l.b16 %v1147_v22  ;;  %3059 = vmatpush.bf16.msra.mxu0 %v4426_v7  ;;  %v904_v40 = vrot.slane %v5176_v25, 1  ;;  %v5185_v22 = vld [vmem:[%s4562_s28 + $0x14] sm:$0xf] }
 0x15d   : > { %5910 = vst [vmem:[#allocation10_spill] sm:$0xff] %v5160_v62  ;;  %1449 = vmatmul.bf16.gmra.mxu3 %v1292_v17 }
 0x15e   : > { %1832 = vmatmul.bf16.gmra.mxu0 %v1660_v9  ;;  %v1015_v1 = vpop.f32.mrf.mxu2  ;;  %v1257_v39 = vpack.c.b16 %v1238_v8, %v1238_v8  ;;  %v905_v33 = vsel %vm872_vm1, %v902_v44, %v904_v40  ;;  %v5194_v8 = vld [vmem:[%s4562_s28 + $0x18] sm:$0xff] }
 0x15f   : > { %v1087_v42 = vadd.f32 %v1015_v1, %v792_v63 }
 0x160   : > { %v793_v31 = vpop.f32.mrf.mxu1  ;;  %v5171_v21 = vpop.f32.mrf.mxu3  ;;  %v1293_v17 = vrot.slane %v1257_v39, 1  ;;  %v2565_v39 = vshrl.u32 %v5194_v8, 16 }
 0x161   : > { %v1472_v48 = vadd.f32 %v5112_v37, %v1087_v42  ;;  %v794_v37 = vadd.f32 %v793_v31, %v4904_v59  ;;  %v2240_v42 = vunpack.c.l.b16 %v2149_v18  ;;  %v5901_v59 = vunpack.c.l.b16 %v5185_v22 }
 0x162   : > { %v1294_v44 = vsel %vm872_vm1, %v1291_v45, %v1293_v17  ;;  %v4484_v17 = vld [vmem:[%s4562_s28 + $0x88] sm:$0xff] }
 0x163   : > { %v1795_v27 = vpop.f32.mrf.mxu0  ;;  %v5173_v26 = vadd.f32 %v1793_v5, %v1472_v48  ;;  %v1669_v5 = vsel %vm1517_vm2, %v1659_v24, %v1668_v0  ;;  %v1671_v48 = vshrl.u32 %v5141_v20, 16 }
 0x165   : > { %5911 = vst [vmem:[#allocation11_spill] sm:$0xff] %v5173_v26 }
 0x166   : > { %v1017_v9 = vpop.f32.mrf.mxu2 }
 0x167   : > { %v1088_v51 = vadd.f32 %v1017_v9, %v794_v37  ;;  %v2568_v37 = vshll.u32 %v5194_v8, 16 }
 0x168   : > { %v796_v16 = vpop.f32.mrf.mxu1  ;;  %v5187_v1 = vpop.f32.mrf.mxu3 }
 0x169   : > { %v1473_v63 = vadd.f32 %v5125_v11, %v1088_v51  ;;  %v5198_v11 = vpack.c.b16 %v5901_v59, %v2240_v42  ;;  %v797_v24 = vadd.f32 %v796_v16, %v4917_v3  ;;  %v1673_v51 = vrot.slane %v1671_v48, 1 }
 0x16b   : > { %v1798_v47 = vpop.f32.mrf.mxu0  ;;  %835 = vmatmul.bf16.gmra.mxu1 %v4482_v50  ;;  %1059 = vmatmul.bf16.gmra.mxu2 %v905_v33  ;;  %v5190_v31 = vadd.f32 %v1795_v27, %v1473_v63  ;;  %v1674_v50 = vshll.u32 %v5141_v20, 16  ;;  %v2557_v45 = vshrl.u32 %v5198_v11, 16  ;;  %v2560_v7 = vshll.u32 %v5198_v11, 16  ;;  %v1496_v20 = vld [vmem:[%s4562_s28 + $0x98] sm:$0x3] }
 0x16c   : > { %v906_v63 = vrot.slane %v4484_v17, 1 }
 0x16d   : > { %5912 = vst [vmem:[#allocation12_spill] sm:$0xff] %v5190_v31  ;;  %1454 = vmatmul.bf16.gmra.mxu3 %v1294_v44  ;;  %v1676_v16 = vrot.slane %v1674_v50, 2  ;;  %v2559_v18 = vrot.slane %v2557_v45, 2  ;;  %v2562_v42 = vrot.slane %v2560_v7, 3  ;;  %v2567_v44 = vrot.slane %v2565_v39, 2 }
 0x16e   : > { %1837 = vmatmul.bf16.gmra.mxu0 %v1669_v5  ;;  %v1020_v13 = vpop.f32.mrf.mxu2  ;;  %v1515_v31 = vunpack.c.l.b16 %v1496_v20  ;;  %v907_v50 = vsel %vm872_vm1, %v904_v40, %v906_v63  ;;  %v5227_v40 = vld [vmem:[%s4562_s28 + $0x20] sm:$0xff] }
 0x16f   : > { %v1089_v27 = vadd.f32 %v1020_v13, %v797_v24  ;;  %v2570_v24 = vrot.slane %v2568_v37, 3  ;;  %v1677_v59 = vor.u32 %v1676_v16, %v1673_v51 }
 0x170   : > { %v798_v57 = vpop.f32.mrf.mxu1  ;;  %v5208_v33 = vpop.f32.mrf.mxu3  ;;  %v5218_v7 = vpack.c.b16 %v1515_v31, %v1515_v31 }
 0x171   : > { %v1474_v3 = vadd.f32 %v5135_v10, %v1089_v27  ;;  %v799_v13 = vadd.f32 %v798_v57, %v4935_v23  ;;  %v2563_v27 = vor.u32 %v2562_v42, %v2559_v18  ;;  %v2571_v62 = vor.u32 %v2570_v24, %v2567_v44 }
 0x172   : > { %v1678_v45 = vsel %vm1517_vm2, %v1668_v0, %v1677_v59  ;;  %v1680_v57 = vshrl.u32 %v5218_v7, 16  ;;  %v1683_v0 = vshll.u32 %v5218_v7, 16  ;;  %v908_v42 = vrot.slane %v4743_v54, 1 }
 0x173   : > { %v1800_v9 = vpop.f32.mrf.mxu0  ;;  %v5212_v5 = vadd.f32 %v1798_v47, %v1474_v3 }
 0x174   : > { %v1682_v16 = vrot.slane %v1680_v57, 1  ;;  %v1685_v20 = vrot.slane %v1683_v0, 2  ;;  %v2927_v0 = vld [vmem:[%s4562_s28 + $0x10] sm:$0x8] }
 0x176   : > { %v1022_v26 = vpop.f32.mrf.mxu2 }
 0x177   : > { %v1090_v10 = vadd.f32 %v1022_v26, %v799_v13  ;;  %v2572_v26 = vsel %vm2555_vm3, %v2563_v27, %v2571_v62 }
 0x178   : > { %v801_v48 = vpop.f32.mrf.mxu1  ;;  %v5220_v39 = vpop.f32.mrf.mxu3 }
 0x179   : > { %v1475_v46 = vadd.f32 %v5154_v52, %v1090_v10  ;;  %v802_v52 = vadd.f32 %v801_v48, %v4948_v38  ;;  %v1686_v10 = vor.u32 %v1685_v20, %v1682_v16 }
 0x17b   : > { %v1803_v47 = vpop.f32.mrf.mxu0  ;;  %840 = vmatmul.bf16.gmra.mxu1 %v5176_v25  ;;  %1064 = vmatmul.bf16.gmra.mxu2 %v907_v50  ;;  %v5223_v23 = vadd.f32 %v1800_v9, %v1475_v46  ;;  %v2574_v25 = vshrl.u32 %v5227_v40, 16  ;;  %v2577_v46 = vshll.u32 %v5227_v40, 16 }
 0x17d   : > { %2800 = vmatmul.bf16.vlgmr.msra.gmra.mxu3 %v2572_v26  ;;  %v2576_v44 = vrot.slane %v2574_v25, 2  ;;  %v2579_v24 = vrot.slane %v2577_v46, 3  ;;  %v2946_v25 = vunpack.c.l.b16 %v2927_v0 }
 0x17e   : > { %1842 = vmatmul.bf16.gmra.mxu0 %v1678_v45  ;;  %v1025_v31 = vpop.f32.mrf.mxu2  ;;  %v1889_v45 = vld [vmem:[%s4562_s28 + $0x8] sm:$0xc] }
 0x17f   : > { %v1091_v37 = vadd.f32 %v1025_v31, %v802_v52  ;;  %v2580_v26 = vor.u32 %v2579_v24, %v2576_v44 }
 0x180   : > { %v803_v3 = vpop.f32.mrf.mxu1  ;;  %v5235_v18 = vpop.f32.mrf.mxu3 }
 0x181   : > { %v1476_v9 = vadd.f32 %v5171_v21, %v1091_v37  ;;  %v804_v13 = vadd.f32 %v803_v3, %v4960_v35  ;;  %v909_v21 = vsel %vm872_vm1, %v906_v63, %v908_v42  ;;  %v1908_v35 = vunpack.c.l.b16 %v1889_v45  ;;  %v5252_v3 = vld [vmem:[%s4562_s28 + $0x28] sm:$0xff] }
 0x182   : > { %v2581_v37 = vsel %vm2555_vm3, %v2571_v62, %v2580_v26  ;;  %v2583_v16 = vshrl.u32 %v5252_v3, 16  ;;  %v5914_v42 = vunpack.c.l.b16 %v5185_v22  ;;  %v2297_v22 = vrot.slane %v5194_v8, 2 }
 0x183   : > { %v1805_v51 = vpop.f32.mrf.mxu0  ;;  %v5237_v38 = vadd.f32 %v1803_v47, %v1476_v9  ;;  %v1687_v47 = vsel %vm1517_vm2, %v1677_v59, %v1686_v10  ;;  %v5913_v59 = vunpack.c.l.b16 %v4790_v32  ;;  %v3223_v32 = vld [vmem:[%s5897_s2] sm:$0xff]  ;;  %v4485_v10 = vld [vmem:[%s4562_s28 + $0x10] sm:$0xff] }
 0x184   : > { %v2947_v44 = vpack.c.b16 %v5914_v42, %v2946_v25 }
 0x185   : > { %v1909_v9 = vpack.c.b16 %v5913_v59, %v1908_v35 }
 0x186   : > { %v1027_v48 = vpop.f32.mrf.mxu2 }
 0x187   : > { %v1092_v50 = vadd.f32 %v1027_v48, %v804_v13  ;;  %v1911_v13 = vrot.slane %v1909_v9, 2  ;;  %v1912_v48 = vrot.slane %v4485_v10, 2 }
 0x188   : > { %v806_v27 = vpop.f32.mrf.mxu1  ;;  %v5246_v54 = vpop.f32.mrf.mxu3 }
 0x189   : > { %v1477_v52 = vadd.f32 %v5187_v1, %v1092_v50  ;;  %v807_v63 = vadd.f32 %v806_v27, %v4968_v53  ;;  %v4510_v53 = vmov 0   ;;  %v2585_v27 = vrot.slane %v2583_v16, 2 }
 0x18a   : > { %4476 = vset.pattern.permute.xlu0 %v4510_v53  ;;  %4477 = vset.pattern.permute.xlu1 %v4510_v53 }
 0x18b   : > { %v1808_v57 = vpop.f32.mrf.mxu0  ;;  %845 = vmatmul.bf16.gmra.mxu1 %v4484_v17  ;;  %1069 = vmatmul.bf16.gmra.mxu2 %v909_v21  ;;  %v5248_v31 = vadd.f32 %v1805_v51, %v1477_v52  ;;  %v2586_v51 = vshll.u32 %v5252_v3, 16  ;;  %v2949_v52 = vrot.slane %v2947_v44, 3 }
 0x18c   : > { %3261 = vperm.xlu0 %4476, %v3223_v32   ;;  %4478 = vset.pattern.permute.xlu2 %v4510_v53  ;;  %v3225_v32 = vld [vmem:[%s5897_s2 + $0x10] sm:$0xff] }
 0x18d   : > { %2805 = vmatmul.bf16.gmra.mxu3 %v2581_v37  ;;  %v2588_v21 = vrot.slane %v2586_v51, 3  ;;  %3271 = vperm.xlu1 %4477, %v3225_v32   ;;  %v2301_v32 = vrot.slane %v5252_v3, 2 }
 0x18e   : > { %1847 = vmatmul.bf16.gmra.mxu0 %v1687_v47  ;;  %v1030_v1 = vpop.f32.mrf.mxu2  ;;  %v2950_v47 = vrot.slane %v5194_v8, 3 }
 0x18f   : > { %v1093_v46 = vadd.f32 %v1030_v1, %v807_v63 }
 0x190   : > { %v808_v17 = vpop.f32.mrf.mxu1  ;;  %v5265_v24 = vpop.f32.mrf.mxu3 }
 0x191   : > { %v1478_v20 = vadd.f32 %v5208_v33, %v1093_v46  ;;  %v2296_v33 = vrot.slane %v5198_v11, 2  ;;  %v809_v45 = vadd.f32 %v808_v17, %v4984_v49  ;;  %v2589_v11 = vor.u32 %v2588_v21, %v2585_v27  ;;  %v3224_v49 = vld [vmem:[%s5897_s2 + $0x8] sm:$0xff]  ;;  %v5287_v17 = vld [vmem:[%s4562_s28 + $0x30] sm:$0xff] }
 0x192   : > { %v2951_v46 = vsel %vm2948_vm5, %v2949_v52, %v2950_v47  ;;  %v2592_v42 = vshrl.u32 %v5287_v17, 16  ;;  %v2595_v44 = vshll.u32 %v5287_v17, 16 }
 0x193   : > { %v1810_v62 = vpop.f32.mrf.mxu0  ;;  %v5268_v50 = vadd.f32 %v1808_v57, %v1478_v20  ;;  %v1913_v57 = vsel %vm1910_vm4, %v1911_v13, %v1912_v48  ;;  %v2298_v63 = vsel %vm1910_vm4, %v2296_v33, %v2297_v22  ;;  %v2590_v9 = vsel %vm2555_vm3, %v2580_v26, %v2589_v11 }
 0x194   : > { %3266 = vperm.xlu0 %4476, %v3224_v49   ;;  %v2299_v33 = vrot.slane %v5227_v40, 2  ;;  %v2594_v27 = vrot.slane %v2592_v42, 2  ;;  %v2597_v21 = vrot.slane %v2595_v44, 3 }
 0x196   : > { %v1032_v0 = vpop.f32.mrf.mxu2 }
 0x197   : > { %v1094_v35 = vadd.f32 %v1032_v0, %v809_v45 }
 0x198   : > { %v811_v37 = vpop.f32.mrf.mxu1  ;;  %v5281_v8 = vpop.f32.mrf.mxu3 }
 0x199   : > { %v1479_v25 = vadd.f32 %v5220_v39, %v1094_v35  ;;  %v812_v39 = vadd.f32 %v811_v37, %v4880_v29  ;;  %v4486_v29 = vld [vmem:[%s4562_s28 + $0x18] sm:$0xff] }
 0x19a   : > { %v1914_v10 = vrot.slane %v4486_v29, 2 }
 0x19b   : > { %v1813_v1 = vpop.f32.mrf.mxu0  ;;  %2022 = vmatmul.bf16.vlgmr.msra.gmra.mxu1 %v1913_v57  ;;  %2407 = vmatmul.bf16.vlgmr.msra.gmra.mxu2 %v2298_v63  ;;  %v5283_v59 = vadd.f32 %v1810_v62, %v1479_v25  ;;  %v2300_v57 = vsel %vm1910_vm4, %v2297_v22, %v2299_v33  ;;  %v2598_v63 = vor.u32 %v2597_v21, %v2594_v27  ;;  %v5317_v22 = vld [vmem:[%s4562_s28 + $0x38] sm:$0xff]  ;;  %v2954_v21 = vrot.slane %v5252_v3, 3 }
 0x19c   : > { %v1915_v37 = vsel %vm1910_vm4, %v1912_v48, %v1914_v10 }
 0x19d   : > { %2810 = vmatmul.bf16.gmra.mxu3 %v2590_v9  ;;  %v2599_v48 = vsel %vm2555_vm3, %v2589_v11, %v2598_v63  ;;  %v4487_v11 = vld [vmem:[%s4562_s28 + $0x20] sm:$0xff] }
 0x19e   : > { %3060 = vmatmul.bf16.vlgmr.msra.gmra.mxu0 %v2951_v46  ;;  %v1035_v16 = vpop.f32.mrf.mxu2 }
 0x19f   : > { %v1095_v51 = vadd.f32 %v1035_v16, %v812_v39  ;;  %v2601_v16 = vshrl.u32 %v5317_v22, 16 }
 0x1a0   : > { %v813_v20 = vpop.f32.mrf.mxu1  ;;  %v5296_v26 = vpop.f32.mrf.mxu3 }
 0x1a1   : > { %v1480_v53 = vadd.f32 %v5235_v18, %v1095_v51  ;;  %v814_v45 = vadd.f32 %v813_v20, %v4890_v43  ;;  %v2952_v18 = vrot.slane %v5227_v40, 3  ;;  %v3226_v43 = vld [vmem:[%s5897_s2 + $0x18] sm:$0xff]  ;;  %v2604_v51 = vshll.u32 %v5317_v22, 16 }
 0x1a2   : > { %3276 = vperm.xlu1 %4477, %v3226_v43   ;;  %v5341_v43 = vld [vmem:[%s4562_s28 + $0x40] sm:$0xff] }
 0x1a3   : > { %v1815_v62 = vpop.f32.mrf.mxu0  ;;  %v5298_v13 = vadd.f32 %v1813_v1, %v1480_v53  ;;  %v2953_v46 = vsel %vm2948_vm5, %v2950_v47, %v2952_v18  ;;  %v2606_v29 = vrot.slane %v2604_v51, 3 }
 0x1a6   : > { %v1037_v52 = vpop.f32.mrf.mxu2 }
 0x1a7   : > { %v1096_v0 = vadd.f32 %v1037_v52, %v814_v45 }
 0x1a8   : > { %v816_v35 = vpop.f32.mrf.mxu1  ;;  %v5311_v49 = vpop.f32.mrf.mxu3 }
 0x1a9   : > { %v1481_v25 = vadd.f32 %v5246_v54, %v1096_v0  ;;  %v817_v54 = vadd.f32 %v816_v35, %v4902_v58  ;;  %v2603_v58 = vrot.slane %v2601_v16, 2  ;;  %v2302_v35 = vsel %vm1910_vm4, %v2299_v33, %v2301_v32 }
 0x1ab   : > { %v1818_v1 = vpop.f32.mrf.mxu0  ;;  %2027 = vmatmul.bf16.gmra.mxu1 %v1915_v37  ;;  %2412 = vmatmul.bf16.gmra.mxu2 %v2300_v57  ;;  %v5313_v40 = vadd.f32 %v1815_v62, %v1481_v25  ;;  %v1916_v62 = vrot.slane %v4487_v11, 2  ;;  %v2607_v37 = vor.u32 %v2606_v29, %v2603_v58 }
 0x1ad   : > { %2815 = vmatmul.bf16.gmra.mxu3 %v2599_v48  ;;  %v2608_v3 = vsel %vm2555_vm3, %v2598_v63, %v2607_v37 }
 0x1ae   : > { %3065 = vmatmul.bf16.gmra.mxu0 %v2953_v46  ;;  %v1040_v47 = vpop.f32.mrf.mxu2 }
 0x1af   : > { %v1097_v9 = vadd.f32 %v1040_v47, %v817_v54  ;;  %v2613_v54 = vshll.u32 %v5341_v43, 16 }
 0x1b0   : > { %v818_v39 = vpop.f32.mrf.mxu1  ;;  %v5323_v44 = vpop.f32.mrf.mxu3 }
 0x1b1   : > { %v1482_v20 = vadd.f32 %v5265_v24, %v1097_v9  ;;  %v819_v27 = vadd.f32 %v818_v39, %v4912_v2  ;;  %v1917_v24 = vsel %vm1910_vm4, %v1914_v10, %v1916_v62  ;;  %v3229_v39 = vld [vmem:[%s5897_s2 + $0x30] sm:$0xff]  ;;  %v2615_v11 = vrot.slane %v2613_v54, 3 }
 0x1b2   : > { %3291 = vperm.xlu0 %4476, %v3229_v39  }
 0x1b3   : > { %v1820_v42 = vpop.f32.mrf.mxu0  ;;  %v5325_v53 = vadd.f32 %v1818_v1, %v1482_v20  ;;  %v2955_v1 = vsel %vm2948_vm5, %v2952_v18, %v2954_v21  ;;  %v2610_v18 = vshrl.u32 %v5341_v43, 16  ;;  %v2303_v20 = vrot.slane %v5287_v17, 2 }
 0x1b6   : > { %v1042_v45 = vpop.f32.mrf.mxu2 }
 0x1b7   : > { %v1098_v52 = vadd.f32 %v1042_v45, %v819_v27 }
 0x1b8   : > { %v821_v0 = vpop.f32.mrf.mxu1  ;;  %v5335_v46 = vpop.f32.mrf.mxu3 }
 0x1b9   : > { %v1483_v57 = vadd.f32 %v5281_v8, %v1098_v52  ;;  %v822_v10 = vadd.f32 %v821_v0, %v4933_v19  ;;  %v4488_v19 = vld [vmem:[%s4562_s28 + $0x28] sm:$0xff]  ;;  %v2304_v0 = vsel %vm1910_vm4, %v2301_v32, %v2303_v20 }
 0x1ba   : > { %v1918_v51 = vrot.slane %v4488_v19, 2  ;;  %v5374_v32 = vld [vmem:[%s4562_s28 + $0x48] sm:$0xff]  ;;  %v2305_v19 = vrot.slane %v5317_v22, 2 }
 0x1bb   : > { %v1823_v25 = vpop.f32.mrf.mxu0  ;;  %2032 = vmatmul.bf16.gmra.mxu1 %v1917_v24  ;;  %2417 = vmatmul.bf16.gmra.mxu2 %v2302_v35  ;;  %v5337_v2 = vadd.f32 %v1820_v42, %v1483_v57  ;;  %v2612_v42 = vrot.slane %v2610_v18, 2 }
 0x1bc   : > { %v1919_v52 = vsel %vm1910_vm4, %v1916_v62, %v1918_v51 }
 0x1bd   : > { %2820 = vmatmul.bf16.gmra.mxu3 %v2608_v3  ;;  %v2616_v24 = vor.u32 %v2615_v11, %v2612_v42 }
 0x1be   : > { %3070 = vmatmul.bf16.gmra.mxu0 %v2955_v1  ;;  %v1045_v33 = vpop.f32.mrf.mxu2 }
 0x1bf   : > { %v1099_v48 = vadd.f32 %v1045_v33, %v822_v10 }
 0x1c0   : > { %v823_v8 = vpop.f32.mrf.mxu1  ;;  %v5350_v63 = vpop.f32.mrf.mxu3 }
 0x1c1   : > { %v1484_v47 = vadd.f32 %v5296_v26, %v1099_v48  ;;  %v824_v58 = vadd.f32 %v823_v8, %v4946_v36  ;;  %v2956_v26 = vrot.slane %v5287_v17, 3  ;;  %v3227_v36 = vld [vmem:[%s5897_s2 + $0x20] sm:$0xff]  ;;  %v3230_v17 = vld [vmem:[%s5897_s2 + $0x38] sm:$0xff]  ;;  %v2619_v48 = vshrl.u32 %v5374_v32, 16 }
 0x1c2   : > { %3281 = vperm.xlu2 %4478, %v3227_v36   ;;  %3296 = vperm.xlu1 %4477, %v3230_v17   ;;  %v2622_v8 = vshll.u32 %v5374_v32, 16 }
 0x1c3   : > { %v1825_v9 = vpop.f32.mrf.mxu0  ;;  %v5352_v16 = vadd.f32 %v1823_v25, %v1484_v47  ;;  %v2957_v25 = vsel %vm2948_vm5, %v2954_v21, %v2956_v26  ;;  %v3228_v47 = vld [vmem:[%s5897_s2 + $0x28] sm:$0xff]  ;;  %v2621_v42 = vrot.slane %v2619_v48, 2 }
 0x1c4   : > { %v2624_v11 = vrot.slane %v2622_v8, 3  ;;  %v3233_v8 = vld [vmem:[%s5897_s2 + $0x50] sm:$0xff] }
 0x1c6   : > { %v1047_v29 = vpop.f32.mrf.mxu2 }
 0x1c7   : > { %v1100_v27 = vadd.f32 %v1047_v29, %v824_v58 }
 0x1c8   : > { %v826_v45 = vpop.f32.mrf.mxu1  ;;  %v5368_v1 = vpop.f32.mrf.mxu3 }
 0x1c9   : > { %v1485_v35 = vadd.f32 %v5311_v49, %v1100_v27  ;;  %v2617_v49 = vsel %vm2555_vm3, %v2607_v37, %v2616_v24  ;;  %v827_v21 = vadd.f32 %v826_v45, %v4958_v61  ;;  %v4489_v61 = vld [vmem:[%s4562_s28 + $0x30] sm:$0xff] }
 0x1ca   : > { %3286 = vperm.xlu2 %4478, %v3228_v47   ;;  %v1920_v39 = vrot.slane %v4489_v61, 2  ;;  %3311 = vperm.xlu1 %4477, %v3233_v8   ;;  %v2307_v47 = vrot.slane %v5341_v43, 2  ;;  %v3235_v8 = vld [vmem:[%s5897_s2 + $0x60] sm:$0xff] }
 0x1cb   : > { %v1828_v57 = vpop.f32.mrf.mxu0  ;;  %2037 = vmatmul.bf16.gmra.mxu1 %v1919_v52  ;;  %2422 = vmatmul.bf16.gmra.mxu2 %v2304_v0  ;;  %v5370_v62 = vadd.f32 %v1825_v9, %v1485_v35  ;;  %v2306_v0 = vsel %vm1910_vm4, %v2303_v20, %v2305_v19  ;;  %v2625_v35 = vor.u32 %v2624_v11, %v2621_v42  ;;  %v5404_v20 = vld [vmem:[%s4562_s28 + $0x50] sm:$0xff] }
 0x1cc   : > { %v1921_v52 = vsel %vm1910_vm4, %v1918_v51, %v1920_v39  ;;  %v5915_v11 = vld [vmem:[#allocation8_spill] sm:$0xff] }
 0x1cd   : > { %2825 = vmatmul.bf16.gmra.mxu3 %v2617_v49  ;;  %v2626_v51 = vsel %vm2555_vm3, %v2616_v24, %v2625_v35 }
 0x1ce   : > { %3075 = vmatmul.bf16.gmra.mxu0 %v2957_v25  ;;  %v1050_v3 = vpop.f32.mrf.mxu2 }
 0x1cf   : > { %v1101_v10 = vadd.f32 %v1050_v3, %v827_v21  ;;  %v2628_v3 = vshrl.u32 %v5404_v20, 16 }
 0x1d0   : > { %v828_v33 = vpop.f32.mrf.mxu1  ;;  %v5383_v37 = vpop.f32.mrf.mxu3 }
 0x1d1   : > { %v1486_v18 = vadd.f32 %v5323_v44, %v1101_v10  ;;  %v829_v58 = vadd.f32 %v828_v33, %v4966_v15  ;;  %v2958_v44 = vrot.slane %v5317_v22, 3  ;;  %v3232_v15 = vld [vmem:[%s5897_s2 + $0x48] sm:$0xff]  ;;  %v2631_v10 = vshll.u32 %v5404_v20, 16 }
 0x1d2   : > { %3306 = vperm.xlu0 %4476, %v3232_v15   ;;  %v2630_v61 = vrot.slane %v2628_v3, 2 }
 0x1d3   : > { %v1830_v54 = vpop.f32.mrf.mxu0  ;;  %v5385_v9 = vadd.f32 %v1828_v57, %v1486_v18  ;;  %v2959_v36 = vsel %vm2948_vm5, %v2956_v26, %v2958_v44  ;;  %v2633_v42 = vrot.slane %v2631_v10, 3 }
 0x1d6   : > { %v1052_v29 = vpop.f32.mrf.mxu2 }
 0x1d7   : > { %v1102_v27 = vadd.f32 %v1052_v29, %v829_v58 }
 0x1d8   : > { %v831_v45 = vpop.f32.mrf.mxu1  ;;  %v5398_v17 = vpop.f32.mrf.mxu3 }
 0x1d9   : > { %v1487_v57 = vadd.f32 %v5335_v46, %v1102_v27  ;;  %v832_v46 = vadd.f32 %v831_v45, %v4982_v41  ;;  %v4490_v41 = vld [vmem:[%s4562_s28 + $0x38] sm:$0xff] }
 0x1da   : > { %3321 = vperm.xlu0 %4476, %v3235_v8  }
 0x1db   : > { %v1833_v25 = vpop.f32.mrf.mxu0  ;;  %2042 = vmatmul.bf16.gmra.mxu1 %v1921_v52  ;;  %2427 = vmatmul.bf16.gmra.mxu2 %v2306_v0  ;;  %v5400_v22 = vadd.f32 %v1830_v54, %v1487_v57  ;;  %v1922_v54 = vrot.slane %v4490_v41, 2  ;;  %v2308_v0 = vsel %vm1910_vm4, %v2305_v19, %v2307_v47  ;;  %v2634_v57 = vor.u32 %v2633_v42, %v2630_v61  ;;  %v5434_v19 = vld [vmem:[%s4562_s28 + $0x58] sm:$0xff]  ;;  %v4491_v61 = vld [vmem:[%s4562_s28 + $0x40] sm:$0xff] }
 0x1dc   : > { %v2637_v3 = vshrl.u32 %v5434_v19, 16  ;;  %v2640_v10 = vshll.u32 %v5434_v19, 16  ;;  %v1924_v42 = vrot.slane %v4491_v61, 2 }
 0x1dd   : > { %2830 = vmatmul.bf16.gmra.mxu3 %v2626_v51  ;;  %v1923_v52 = vsel %vm1910_vm4, %v1920_v39, %v1922_v54  ;;  %v3231_v51 = vld [vmem:[%s5897_s2 + $0x40] sm:$0xff]  ;;  %v2635_v39 = vsel %vm2555_vm3, %v2625_v35, %v2634_v57 }
 0x1de   : > { %3080 = vmatmul.bf16.gmra.mxu0 %v2959_v36  ;;  %v1055_v26 = vpop.f32.mrf.mxu2  ;;  %3301 = vperm.xlu2 %4478, %v3231_v51  }
 0x1df   : > { %v1103_v49 = vadd.f32 %v1055_v26, %v832_v46 }
 0x1e0   : > { %v833_v21 = vpop.f32.mrf.mxu1  ;;  %v5413_v24 = vpop.f32.mrf.mxu3 }
 0x1e1   : > { %v1488_v33 = vadd.f32 %v5350_v63, %v1103_v49  ;;  %v834_v58 = vadd.f32 %v833_v21, %v5915_v11  ;;  %v2960_v63 = vrot.slane %v5341_v43, 3  ;;  %v2309_v11 = vrot.slane %v5374_v32, 2 }
 0x1e3   : > { %v1835_v48 = vpop.f32.mrf.mxu0  ;;  %v5415_v18 = vadd.f32 %v1833_v25, %v1488_v33  ;;  %v2961_v15 = vsel %vm2948_vm5, %v2958_v44, %v2960_v63  ;;  %v2310_v51 = vsel %vm1910_vm4, %v2307_v47, %v2309_v11  ;;  %v5464_v47 = vld [vmem:[%s4562_s28 + $0x60] sm:$0xff] }
 0x1e4   : > { %v2649_v8 = vshll.u32 %v5464_v47, 16 }
 0x1e6   : > { %v1057_v29 = vpop.f32.mrf.mxu2 }
 0x1e7   : > { %v1104_v27 = vadd.f32 %v1057_v29, %v834_v58  ;;  %v2639_v58 = vrot.slane %v2637_v3, 2  ;;  %v2642_v29 = vrot.slane %v2640_v10, 3 }
 0x1e8   : > { %v836_v45 = vpop.f32.mrf.mxu1  ;;  %v5428_v46 = vpop.f32.mrf.mxu3 }
 0x1e9   : > { %v1489_v25 = vadd.f32 %v5368_v1, %v1104_v27  ;;  %v5916_v1 = vld [vmem:[#allocation2_spill] sm:$0xff]  ;;  %v5917_v27 = vld [vmem:[#allocation3_spill] sm:$0xff] }
 0x1ea   : > { %v837_v26 = vadd.f32 %v836_v45, %v5916_v1 }
 0x1eb   : > { %v1838_v36 = vpop.f32.mrf.mxu0  ;;  %2047 = vmatmul.bf16.gmra.mxu1 %v1923_v52  ;;  %2432 = vmatmul.bf16.gmra.mxu2 %v2308_v0  ;;  %v5430_v43 = vadd.f32 %v1835_v48, %v1489_v25 }
 0x1ed   : > { %2835 = vmatmul.bf16.gmra.mxu3 %v2635_v39 }
 0x1ee   : > { %3085 = vmatmul.bf16.gmra.mxu0 %v2961_v15  ;;  %v1060_v44 = vpop.f32.mrf.mxu2  ;;  %v1925_v15 = vsel %vm1910_vm4, %v1922_v54, %v1924_v42 }
 0x1ef   : > { %v1105_v49 = vadd.f32 %v1060_v44, %v837_v26  ;;  %v3236_v44 = vld [vmem:[%s5897_s2 + $0x68] sm:$0xff] }
 0x1f0   : > { %v838_v21 = vpop.f32.mrf.mxu1  ;;  %v5443_v35 = vpop.f32.mrf.mxu3  ;;  %3326 = vperm.xlu1 %4477, %v3236_v44  }
 0x1f1   : > { %v1490_v33 = vadd.f32 %v5383_v37, %v1105_v49  ;;  %v839_v45 = vadd.f32 %v838_v21, %v5917_v27  ;;  %v2962_v37 = vrot.slane %v5374_v32, 3  ;;  %v4492_v27 = vld [vmem:[%s4562_s28 + $0x48] sm:$0xff] }
 0x1f3   : > { %v1840_v48 = vpop.f32.mrf.mxu0  ;;  %v5445_v41 = vadd.f32 %v1838_v36, %v1490_v33  ;;  %v2643_v36 = vor.u32 %v2642_v29, %v2639_v58  ;;  %v2963_v26 = vsel %vm2948_vm5, %v2960_v63, %v2962_v37  ;;  %v2646_v33 = vshrl.u32 %v5464_v47, 16  ;;  %v3234_v58 = vld [vmem:[%s5897_s2 + $0x58] sm:$0xff] }
 0x1f4   : > { %3316 = vperm.xlu2 %4478, %v3234_v58  }
 0x1f5   : > { %v2644_v54 = vsel %vm2555_vm3, %v2634_v57, %v2643_v36 }
 0x1f6   : > { %v1062_v52 = vpop.f32.mrf.mxu2 }
 0x1f7   : > { %v1106_v0 = vadd.f32 %v1062_v52, %v839_v45  ;;  %v1926_v45 = vrot.slane %v4492_v27, 2  ;;  %v2311_v52 = vrot.slane %v5404_v20, 2 }
 0x1f8   : > { %v841_v25 = vpop.f32.mrf.mxu1  ;;  %v5458_v49 = vpop.f32.mrf.mxu3 }
 0x1f9   : > { %v1491_v39 = vadd.f32 %v5398_v17, %v1106_v0  ;;  %v5918_v17 = vld [vmem:[#allocation4_spill] sm:$0xff]  ;;  %v2648_v0 = vrot.slane %v2646_v33, 2 }
 0x1fa   : > { %v842_v21 = vadd.f32 %v841_v25, %v5918_v17  ;;  %v2651_v25 = vrot.slane %v2649_v8, 3  ;;  %v2312_v17 = vsel %vm1910_vm4, %v2309_v11, %v2311_v52  ;;  %v5494_v11 = vld [vmem:[%s4562_s28 + $0x68] sm:$0xff] }
 0x1fb   : > { %v1843_v1 = vpop.f32.mrf.mxu0  ;;  %2052 = vmatmul.bf16.gmra.mxu1 %v1925_v15  ;;  %2437 = vmatmul.bf16.gmra.mxu2 %v2310_v51  ;;  %v5460_v32 = vadd.f32 %v1840_v48, %v1491_v39  ;;  %v5919_v15 = vld [vmem:[#allocation5_spill] sm:$0xff]  ;;  %v2655_v27 = vshrl.u32 %v5494_v11, 16 }
 0x1fd   : > { %2840 = vmatmul.bf16.gmra.mxu3 %v2644_v54  ;;  %v1927_v54 = vsel %vm1910_vm4, %v1924_v42, %v1926_v45 }
 0x1fe   : > { %3090 = vmatmul.bf16.gmra.mxu0 %v2963_v26  ;;  %v1065_v63 = vpop.f32.mrf.mxu2 }
 0x1ff   : > { %v1107_v3 = vadd.f32 %v1065_v63, %v842_v21 }
 0x200   : > { %v843_v10 = vpop.f32.mrf.mxu1  ;;  %v5473_v57 = vpop.f32.mrf.mxu3 }
 0x201   : > { %v1492_v61 = vadd.f32 %v5413_v24, %v1107_v3  ;;  %v844_v51 = vadd.f32 %v843_v10, %v5919_v15  ;;  %v2964_v24 = vrot.slane %v5404_v20, 3  ;;  %v3238_v10 = vld [vmem:[%s5897_s2 + $0x78] sm:$0xff]  ;;  %v3239_v15 = vld [vmem:[%s5897_s2 + $0x80] sm:$0xff] }
 0x202   : > { %3336 = vperm.xlu0 %4476, %v3238_v10   ;;  %3341 = vperm.xlu1 %4477, %v3239_v15  }
 0x203   : > { %v1845_v48 = vpop.f32.mrf.mxu0  ;;  %v5475_v29 = vadd.f32 %v1843_v1, %v1492_v61  ;;  %v2652_v1 = vor.u32 %v2651_v25, %v2648_v0  ;;  %v2965_v3 = vsel %vm2948_vm5, %v2962_v37, %v2964_v24  ;;  %v2658_v0 = vshll.u32 %v5494_v11, 16 }
 0x205   : > { %v2653_v42 = vsel %vm2555_vm3, %v2643_v36, %v2652_v1 }
 0x206   : > { %v1067_v39 = vpop.f32.mrf.mxu2 }
 0x207   : > { %v1108_v26 = vadd.f32 %v1067_v39, %v844_v51  ;;  %v4493_v39 = vld [vmem:[%s4562_s28 + $0x50] sm:$0xff] }
 0x208   : > { %v846_v44 = vpop.f32.mrf.mxu1  ;;  %v5488_v33 = vpop.f32.mrf.mxu3 }
 0x209   : > { %v1493_v21 = vadd.f32 %v5428_v46, %v1108_v26  ;;  %v5920_v46 = vld [vmem:[#allocation6_spill] sm:$0xff]  ;;  %v1928_v26 = vrot.slane %v4493_v39, 2 }
 0x20a   : > { %v847_v8 = vadd.f32 %v846_v44, %v5920_v46  ;;  %v2313_v44 = vrot.slane %v5434_v19, 2 }
 0x20b   : > { %v1848_v63 = vpop.f32.mrf.mxu0  ;;  %2057 = vmatmul.bf16.gmra.mxu1 %v1927_v54  ;;  %2442 = vmatmul.bf16.gmra.mxu2 %v2312_v17  ;;  %v5490_v20 = vadd.f32 %v1845_v48, %v1493_v21  ;;  %v2657_v54 = vrot.slane %v2655_v27, 2  ;;  %v2660_v17 = vrot.slane %v2658_v0, 3  ;;  %v5921_v21 = vld [vmem:[#allocation7_spill] sm:$0xff] }
 0x20d   : > { %2845 = vmatmul.bf16.gmra.mxu3 %v2653_v42 }
 0x20e   : > { %3095 = vmatmul.bf16.gmra.mxu0 %v2965_v3  ;;  %v1070_v37 = vpop.f32.mrf.mxu2 }
 0x20f   : > { %v1109_v61 = vadd.f32 %v1070_v37, %v847_v8  ;;  %v1929_v8 = vsel %vm1910_vm4, %v1926_v45, %v1928_v26  ;;  %v2661_v37 = vor.u32 %v2660_v17, %v2657_v54  ;;  %v3262_v54 = vpop.permute.xlu0 %3261 }
 0x210   : > { %v848_v58 = vpop.f32.mrf.mxu1  ;;  %v5503_v36 = vpop.f32.mrf.mxu3 }
 0x211   : > { %v1494_v25 = vadd.f32 %v5443_v35, %v1109_v61  ;;  %v849_v3 = vadd.f32 %v848_v58, %v5921_v21  ;;  %v2966_v35 = vrot.slane %v5434_v19, 3  ;;  %v3237_v58 = vld [vmem:[%s5897_s2 + $0x70] sm:$0xff]  ;;  %v2662_v45 = vsel %vm2555_vm3, %v2652_v1, %v2661_v37 }
 0x212   : > { %3331 = vperm.xlu2 %4478, %v3237_v58   ;;  %v3241_v1 = vld [vmem:[%s5897_s2 + $0x90] sm:$0xff] }
 0x213   : > { %v1850_v48 = vpop.f32.mrf.mxu0  ;;  %v5505_v51 = vadd.f32 %v1848_v63, %v1494_v25  ;;  %v2314_v63 = vsel %vm1910_vm4, %v2311_v52, %v2313_v44  ;;  %v2967_v27 = vsel %vm2948_vm5, %v2964_v24, %v2966_v35  ;;  %v5524_v52 = vld [vmem:[%s4562_s28 + $0x70] sm:$0xff]  ;;  %3351 = vperm.xlu0 %4476, %v3241_v1  }
 0x214   : > { %v2664_v17 = vshrl.u32 %v5524_v52, 16  ;;  %v2667_v21 = vshll.u32 %v5524_v52, 16 }
 0x216   : > { %v1072_v10 = vpop.f32.mrf.mxu2 }
 0x217   : > { %v1110_v42 = vadd.f32 %v1072_v10, %v849_v3 }
 0x218   : > { %v2023_v46 = vpop.f32.mrf.mxu1  ;;  %v5518_v19 = vpop.f32.mrf.mxu3 }
 0x219   : > { %v1495_v61 = vadd.f32 %v5458_v49, %v1110_v42  ;;  %v2113_v49 = vadd.f32 %v2023_v46, %v5007_v30  ;;  %v5542_v42 = vld [vmem:[%s4562_s28 + $0x58] sm:$0xff] }
 0x21a   : > { %v1930_v46 = vrot.slane %v5542_v42, 2 }
 0x21b   : > { %v3061_v25 = vpop.f32.mrf.mxu0  ;;  %2062 = vmatmul.bf16.gmra.mxu1 %v1929_v8  ;;  %2447 = vmatmul.bf16.gmra.mxu2 %v2314_v63  ;;  %v5520_v0 = vadd.f32 %v1850_v48, %v1495_v61  ;;  %v2666_v8 = vrot.slane %v2664_v17, 2  ;;  %v2669_v63 = vrot.slane %v2667_v21, 3 }
 0x21d   : > { %2850 = vmatmul.bf16.gmra.mxu3 %v2662_v45 }
 0x21e   : > { %3100 = vmatmul.bf16.gmra.mxu0 %v2967_v27  ;;  %v2408_v24 = vpop.f32.mrf.mxu2  ;;  %v2968_v27 = vrot.slane %v5464_v47, 3 }
 0x21f   : > { %v2498_v15 = vadd.f32 %v2408_v24, %v2113_v49  ;;  %v3242_v49 = vld [vmem:[%s5897_s2 + $0x98] sm:$0xff]  ;;  %v1931_v24 = vsel %vm1910_vm4, %v1928_v26, %v1930_v46 }
 0x220   : > { %v2025_v39 = vpop.f32.mrf.mxu1  ;;  %v5539_v30 = vpop.f32.mrf.mxu3  ;;  %3356 = vperm.xlu1 %4477, %v3242_v49   ;;  %v2969_v21 = vsel %vm2948_vm5, %v2966_v35, %v2968_v27  ;;  %v3244_v35 = vld [vmem:[%s5897_s2 + $0xa8] sm:$0xff] }
 0x221   : > { %v2891_v48 = vadd.f32 %v5473_v57, %v2498_v15  ;;  %v2315_v57 = vrot.slane %v5464_v47, 2  ;;  %v2114_v61 = vadd.f32 %v2025_v39, %v5020_v6  ;;  %v5558_v6 = vor.u32 %v2669_v63, %v2666_v8  ;;  %v5569_v8 = vld [vmem:[%s4562_s28 + $0x78] sm:$0xff]  ;;  %3366 = vperm.xlu0 %4476, %v3244_v35  }
 0x222   : > { %v3250_v47 = vld [vmem:[%s5897_s2 + $0xd8] sm:$0xff] }
 0x223   : > { %v3063_v3 = vpop.f32.mrf.mxu0  ;;  %v3151_v10 = vadd.f32 %v3061_v25, %v2891_v48  ;;  %v2316_v15 = vsel %vm1910_vm4, %v2313_v44, %v2315_v57  ;;  %v3267_v48 = vpop.permute.xlu0 %3266  ;;  %v2671_v44 = vsel %vm2555_vm3, %v2661_v37, %v5558_v6  ;;  %v3245_v37 = vld [vmem:[%s5897_s2 + $0xb0] sm:$0xff] }
 0x225   : > { %3187 = vst [vmem:[%s5537_s19] sm:$0xff] %v3151_v10 }
 0x226   : > { %v2410_v58 = vpop.f32.mrf.mxu2 }
 0x227   : > { %v2499_v45 = vadd.f32 %v2410_v58, %v2114_v61  ;;  %v3439_v61 = vmul.f32 %v3262_v54, %v3151_v10 }
 0x228   : > { %v2028_v25 = vpop.f32.mrf.mxu1  ;;  %v5564_v1 = vpop.f32.mrf.mxu3  ;;  %3371 = vperm.xlu1 %4477, %v3245_v37  }
 0x229   : > { %v2892_v39 = vadd.f32 %v5488_v33, %v2499_v45  ;;  %v2115_v33 = vadd.f32 %v2028_v25, %v5035_v28  ;;  %v3517_v54 = vmul.f32 %v3439_v61, %v3151_v10  ;;  %v3272_v28 = vpop.permute.xlu1 %3271  ;;  %v2673_v25 = vshrl.u32 %v5569_v8, 16 }
 0x22b   : > { %v3066_v17 = vpop.f32.mrf.mxu0  ;;  %2067 = vmatmul.bf16.gmra.mxu1 %v1931_v24  ;;  %2452 = vmatmul.bf16.gmra.mxu2 %v2316_v15  ;;  %v3152_v26 = vadd.f32 %v3063_v3, %v2892_v39  ;;  %v2676_v15 = vshll.u32 %v5569_v8, 16  ;;  %v2675_v35 = vrot.slane %v2673_v25, 2  ;;  %v3248_v25 = vld [vmem:[%s5897_s2 + $0xc8] sm:$0xff] }
 0x22d   : > { %3188 = vst [vmem:[%s5537_s19 + $0x8] sm:$0xff] %v3152_v26  ;;  %v3440_v63 = vmul.f32 %v3267_v48, %v3152_v26  ;;  %2855 = vmatmul.bf16.gmra.mxu3 %v2671_v44  ;;  %v3240_v48 = vld [vmem:[%s5897_s2 + $0x88] sm:$0xff]  ;;  %v5588_v44 = vld [vmem:[%s4562_s28 + $0x60] sm:$0xff] }
 0x22e   : > { %3105 = vmatmul.bf16.gmra.mxu0 %v2969_v21  ;;  %v2413_v58 = vpop.f32.mrf.mxu2  ;;  %3346 = vperm.xlu2 %4478, %v3240_v48  }
 0x22f   : > { %v3475_v45 = vadd.f32 %v3440_v63, %v3439_v61  ;;  %v3518_v49 = vmul.f32 %v3440_v63, %v3152_v26  ;;  %v2500_v3 = vadd.f32 %v2413_v58, %v2115_v33  ;;  %v1932_v33 = vrot.slane %v5588_v44, 2 }
 0x230   : > { %v2030_v24 = vpop.f32.mrf.mxu1  ;;  %v5585_v61 = vpop.f32.mrf.mxu3  ;;  %v2317_v63 = vrot.slane %v5494_v11, 2  ;;  %v2678_v58 = vrot.slane %v2676_v15, 3  ;;  %3386 = vperm.xlu1 %4477, %v3248_v25  }
 0x231   : > { %v3553_v39 = vadd.f32 %v3518_v49, %v3517_v54  ;;  %v2893_v10 = vadd.f32 %v5503_v36, %v2500_v3  ;;  %v2116_v36 = vadd.f32 %v2030_v24, %v5049_v60  ;;  %v2970_v49 = vrot.slane %v5494_v11, 3  ;;  %v3247_v3 = vld [vmem:[%s5897_s2 + $0xc0] sm:$0xff] }
 0x232   : > { %3381 = vperm.xlu0 %4476, %v3247_v3   ;;  %v1933_v60 = vsel %vm1910_vm4, %v1930_v46, %v1932_v33  ;;  %v5611_v24 = vor.u32 %v2678_v58, %v2675_v35  ;;  %v3277_v46 = vpop.permute.xlu1 %3276  ;;  %v5625_v35 = vld [vmem:[%s4562_s28 + $0x80] sm:$0xff] }
 0x233   : > { %v3068_v21 = vpop.f32.mrf.mxu0  ;;  %v3153_v26 = vadd.f32 %v3066_v17, %v2893_v10  ;;  %v2971_v42 = vsel %vm2948_vm5, %v2968_v27, %v2970_v49  ;;  %v2685_v25 = vshll.u32 %v5625_v35, 16 }
 0x235   : > { %3189 = vst [vmem:[%s5537_s19 + $0x10] sm:$0xff] %v3153_v26  ;;  %v3441_v54 = vmul.f32 %v3272_v28, %v3153_v26 }
 0x236   : > { %v2415_v37 = vpop.f32.mrf.mxu2 }
 0x237   : > { %v3476_v17 = vadd.f32 %v3475_v45, %v3441_v54  ;;  %v3519_v10 = vmul.f32 %v3441_v54, %v3153_v26  ;;  %v2501_v48 = vadd.f32 %v2415_v37, %v2116_v36  ;;  %v2318_v45 = vsel %vm1910_vm4, %v2315_v57, %v2317_v63 }
 0x238   : > { %v2033_v15 = vpop.f32.mrf.mxu1  ;;  %v5619_v54 = vpop.f32.mrf.mxu3 }
 0x239   : > { %v3554_v28 = vadd.f32 %v3553_v39, %v3519_v10  ;;  %v2894_v26 = vadd.f32 %v5518_v19, %v2501_v48  ;;  %v2680_v39 = vsel %vm2555_vm3, %v5558_v6, %v5611_v24  ;;  %v2117_v19 = vadd.f32 %v2033_v15, %v5058_v14  ;;  %v3251_v6 = vld [vmem:[%s5897_s2 + $0xe0] sm:$0xff]  ;;  %v3282_v48 = vpop.permute.xlu2 %3281 }
 0x23a   : > { %3396 = vperm.xlu0 %4476, %v3250_v47   ;;  %3401 = vperm.xlu1 %4477, %v3251_v6   ;;  %v2682_v14 = vshrl.u32 %v5625_v35, 16  ;;  %v2972_v47 = vrot.slane %v5524_v52, 3 }
 0x23b   : > { %v3071_v36 = vpop.f32.mrf.mxu0  ;;  %2072 = vmatmul.bf16.gmra.mxu1 %v1933_v60  ;;  %2457 = vmatmul.bf16.gmra.mxu2 %v2318_v45  ;;  %v3154_v57 = vadd.f32 %v3068_v21, %v2894_v26  ;;  %v3243_v45 = vld [vmem:[%s5897_s2 + $0xa0] sm:$0xff] }
 0x23c   : > { %3361 = vperm.xlu2 %4478, %v3243_v45   ;;  %v2973_v44 = vsel %vm2948_vm5, %v2970_v49, %v2972_v47 }
 0x23d   : > { %3190 = vst [vmem:[%s5537_s19 + $0x18] sm:$0xff] %v3154_v57  ;;  %v3442_v58 = vmul.f32 %v3277_v46, %v3154_v57  ;;  %2860 = vmatmul.bf16.gmra.mxu3 %v2680_v39  ;;  %v5644_v46 = vld [vmem:[%s4562_s28 + $0x68] sm:$0xff]  ;;  %v2319_v39 = vrot.slane %v5524_v52, 2 }
 0x23e   : > { %3110 = vmatmul.bf16.gmra.mxu0 %v2971_v42  ;;  %v2418_v27 = vpop.f32.mrf.mxu2 }
 0x23f   : > { %v3477_v3 = vadd.f32 %v3476_v17, %v3442_v58  ;;  %v3520_v37 = vmul.f32 %v3442_v58, %v3154_v57  ;;  %v2502_v21 = vadd.f32 %v2418_v27, %v2117_v19  ;;  %v1934_v57 = vrot.slane %v5644_v46, 2  ;;  %v3253_v27 = vld [vmem:[%s5897_s2 + $0xf0] sm:$0xff] }
 0x240   : > { %v2035_v10 = vpop.f32.mrf.mxu1  ;;  %v5641_v26 = vpop.f32.mrf.mxu3  ;;  %v2684_v19 = vrot.slane %v2682_v14, 2  ;;  %v2687_v58 = vrot.slane %v2685_v25, 3  ;;  %v3254_v14 = vld [vmem:[%s5897_s2 + $0xf8] sm:$0xff] }
 0x241   : > { %v3555_v15 = vadd.f32 %v3554_v28, %v3520_v37  ;;  %v2895_v60 = vadd.f32 %v5539_v30, %v2502_v21  ;;  %v2118_v30 = vadd.f32 %v2035_v10, %v5072_v4  ;;  %v1935_v4 = vsel %vm1910_vm4, %v1932_v33, %v1934_v57  ;;  %v3246_v33 = vld [vmem:[%s5897_s2 + $0xb8] sm:$0xff] }
 0x242   : > { %3411 = vperm.xlu0 %4476, %v3253_v27   ;;  %v2320_v10 = vsel %vm1910_vm4, %v2317_v63, %v2319_v39  ;;  %3416 = vperm.xlu1 %4477, %v3254_v14   ;;  %v3287_v63 = vpop.permute.xlu2 %3286 }
 0x243   : > { %v3073_v17 = vpop.f32.mrf.mxu0  ;;  %v3155_v42 = vadd.f32 %v3071_v36, %v2895_v60 }
 0x244   : > { %3376 = vperm.xlu2 %4478, %v3246_v33  }
 0x245   : > { %3191 = vst [vmem:[%s5537_s19 + $0x20] sm:$0xff] %v3155_v42  ;;  %v3443_v28 = vmul.f32 %v3282_v48, %v3155_v42 }
 0x246   : > { %v2420_v37 = vpop.f32.mrf.mxu2 }
 0x247   : > { %v3478_v36 = vadd.f32 %v3477_v3, %v3443_v28  ;;  %v3521_v21 = vmul.f32 %v3443_v28, %v3155_v42  ;;  %v2503_v6 = vadd.f32 %v2420_v37, %v2118_v30  ;;  %v5667_v3 = vor.u32 %v2687_v58, %v2684_v19  ;;  %v5684_v19 = vld [vmem:[%s4562_s28 + $0x88] sm:$0xff] }
 0x248   : > { %v2038_v25 = vpop.f32.mrf.mxu1  ;;  %v5678_v42 = vpop.f32.mrf.mxu3  ;;  %v3256_v58 = vld [vmem:[%s5897_s2 + $0x108] sm:$0xff] }
 0x249   : > { %v3556_v48 = vadd.f32 %v3555_v15, %v3521_v21  ;;  %v2896_v60 = vadd.f32 %v5564_v1, %v2503_v6  ;;  %v2689_v1 = vsel %vm2555_vm3, %v5611_v24, %v5667_v3  ;;  %v2119_v11 = vadd.f32 %v2038_v25, %v5085_v56  ;;  %v3257_v24 = vld [vmem:[%s5897_s2 + $0x110] sm:$0xff] }
 0x24a   : > { %3426 = vperm.xlu0 %4476, %v3256_v58   ;;  %3431 = vperm.xlu1 %4477, %v3257_v24   ;;  %v2691_v56 = vshrl.u32 %v5684_v19, 16  ;;  %v2694_v21 = vshll.u32 %v5684_v19, 16 }
 0x24b   : > { %v3076_v45 = vpop.f32.mrf.mxu0  ;;  %2077 = vmatmul.bf16.gmra.mxu1 %v1935_v4  ;;  %2462 = vmatmul.bf16.gmra.mxu2 %v2320_v10  ;;  %v3156_v15 = vadd.f32 %v3073_v17, %v2896_v60  ;;  %v3292_v4 = vpop.permute.xlu0 %3291 }
 0x24d   : > { %3192 = vst [vmem:[%s5537_s19 + $0x28] sm:$0xff] %v3156_v15  ;;  %v3444_v49 = vmul.f32 %v3287_v63, %v3156_v15  ;;  %2865 = vmatmul.bf16.gmra.mxu3 %v2689_v1  ;;  %v2321_v63 = vrot.slane %v5569_v8, 2 }
 0x24e   : > { %3115 = vmatmul.bf16.gmra.mxu0 %v2973_v44  ;;  %v2423_v30 = vpop.f32.mrf.mxu2  ;;  %v5703_v44 = vld [vmem:[%s4562_s28 + $0x70] sm:$0xff] }
 0x24f   : > { %v3479_v28 = vadd.f32 %v3478_v36, %v3444_v49  ;;  %v3522_v27 = vmul.f32 %v3444_v49, %v3156_v15  ;;  %v2504_v17 = vadd.f32 %v2423_v30, %v2119_v11  ;;  %v3249_v36 = vld [vmem:[%s5897_s2 + $0xd0] sm:$0xff]  ;;  %v1936_v33 = vrot.slane %v5703_v44, 2  ;;  %v3258_v44 = vld [vmem:[%s5897_s2 + $0x118] sm:$0xff] }
 0x250   : > { %v2040_v37 = vpop.f32.mrf.mxu1  ;;  %v5700_v10 = vpop.f32.mrf.mxu3  ;;  %3391 = vperm.xlu2 %4478, %v3249_v36   ;;  %v2693_v15 = vrot.slane %v2691_v56, 2  ;;  %v2974_v11 = vrot.slane %v5569_v8, 3  ;;  %v5922_v8 = vld [vmem:[#allocation9_spill] sm:$0xff] }
 0x251   : > { %v3557_v6 = vadd.f32 %v3556_v48, %v3522_v27  ;;  %v2897_v14 = vadd.f32 %v5585_v61, %v2504_v17  ;;  %v2696_v48 = vrot.slane %v2694_v21, 3  ;;  %v2120_v61 = vadd.f32 %v2040_v37, %v5102_v12  ;;  %v3297_v21 = vpop.permute.xlu1 %3296 }
 0x252   : > { %v2322_v12 = vsel %vm1910_vm4, %v2319_v39, %v2321_v63  ;;  %v2975_v46 = vsel %vm2948_vm5, %v2972_v47, %v2974_v11 }
 0x253   : > { %v3078_v25 = vpop.f32.mrf.mxu0  ;;  %v3157_v60 = vadd.f32 %v3076_v45, %v2897_v14  ;;  %v1937_v45 = vsel %vm1910_vm4, %v1934_v57, %v1936_v33  ;;  %v5720_v24 = vor.u32 %v2696_v48, %v2693_v15  ;;  %v3252_v57 = vld [vmem:[%s5897_s2 + $0xe8] sm:$0xff] }
 0x255   : > { %3193 = vst [vmem:[%s5537_s19 + $0x30] sm:$0xff] %v3157_v60  ;;  %v3445_v1 = vmul.f32 %v3292_v4, %v3157_v60 }
 0x256   : > { %v2425_v49 = vpop.f32.mrf.mxu2 }
 0x257   : > { %v3480_v58 = vadd.f32 %v3479_v28, %v3445_v1  ;;  %v3523_v30 = vmul.f32 %v3445_v1, %v3157_v60  ;;  %v2505_v27 = vadd.f32 %v2425_v49, %v2120_v61 }
 0x258   : > { %v2043_v17 = vpop.f32.mrf.mxu1  ;;  %v5731_v14 = vpop.f32.mrf.mxu3  ;;  %3406 = vperm.xlu2 %4478, %v3252_v57   ;;  %v2976_v57 = vrot.slane %v5625_v35, 3 }
 0x259   : > { %v3558_v28 = vadd.f32 %v3557_v6, %v3523_v30  ;;  %v2898_v37 = vadd.f32 %v5619_v54, %v2505_v27  ;;  %v2698_v54 = vsel %vm2555_vm3, %v5667_v3, %v5720_v24  ;;  %v5737_v6 = vld [vmem:[%s4562_s28 + $0x90] sm:$0xff]  ;;  %v2121_v52 = vadd.f32 %v2043_v17, %v5114_v55  ;;  %v3255_v55 = vld [vmem:[%s5897_s2 + $0x100] sm:$0xff]  ;;  %v3302_v30 = vpop.permute.xlu2 %3301  ;;  %v5750_v17 = vld [vmem:[%s4562_s28 + $0x78] sm:$0xff] }
 0x25a   : > { %v2703_v61 = vshll.u32 %v5737_v6, 16 }
 0x25b   : > { %v3081_v56 = vpop.f32.mrf.mxu0  ;;  %2082 = vmatmul.bf16.gmra.mxu1 %v1937_v45  ;;  %2467 = vmatmul.bf16.gmra.mxu2 %v2322_v12  ;;  %v3158_v39 = vadd.f32 %v3078_v25, %v2898_v37  ;;  %v2700_v25 = vshrl.u32 %v5737_v6, 16  ;;  %v1938_v45 = vrot.slane %v5750_v17, 2  ;;  %v2323_v12 = vrot.slane %v5625_v35, 2 }
 0x25d   : > { %3194 = vst [vmem:[%s5537_s19 + $0x38] sm:$0xff] %v3158_v39  ;;  %v3446_v47 = vmul.f32 %v3297_v21, %v3158_v39  ;;  %2870 = vmatmul.bf16.gmra.mxu3 %v2698_v54  ;;  %v2702_v37 = vrot.slane %v2700_v25, 2  ;;  %v5775_v25 = vld [vmem:[%s4562_s28 + $0x98] sm:$0xff] }
 0x25e   : > { %3120 = vmatmul.bf16.gmra.mxu0 %v2975_v46  ;;  %v2428_v36 = vpop.f32.mrf.mxu2  ;;  %v2712_v17 = vshll.u32 %v5775_v25, 16 }
 0x25f   : > { %v3481_v4 = vadd.f32 %v3480_v58, %v3446_v47  ;;  %v3524_v60 = vmul.f32 %v3446_v47, %v3158_v39  ;;  %v2506_v15 = vadd.f32 %v2428_v36, %v2121_v52  ;;  %v2324_v36 = vsel %vm1910_vm4, %v2321_v63, %v2323_v12 }
 0x260   : > { %v2045_v48 = vpop.f32.mrf.mxu1  ;;  %v5747_v27 = vpop.f32.mrf.mxu3  ;;  %3421 = vperm.xlu2 %4478, %v3255_v55  }
 0x261   : > { %v3559_v1 = vadd.f32 %v3558_v28, %v3524_v60  ;;  %v2899_v3 = vadd.f32 %v5641_v26, %v2506_v15  ;;  %v2705_v28 = vrot.slane %v2703_v61, 3  ;;  %v2122_v26 = vadd.f32 %v2045_v48, %v5128_v34 }
 0x263   : > { %v3083_v49 = vpop.f32.mrf.mxu0  ;;  %v3159_v58 = vadd.f32 %v3081_v56, %v2899_v3  ;;  %v1939_v56 = vsel %vm1910_vm4, %v1936_v33, %v1938_v45  ;;  %v2706_v60 = vor.u32 %v2705_v28, %v2702_v37  ;;  %v3307_v33 = vpop.permute.xlu0 %3306 }
 0x265   : > { %3195 = vst [vmem:[%s5537_s19 + $0x40] sm:$0xff] %v3159_v58  ;;  %v3447_v46 = vmul.f32 %v3302_v30, %v3159_v58 }
 0x266   : > { %v2430_v21 = vpop.f32.mrf.mxu2 }
 0x267   : > { %v3482_v39 = vadd.f32 %v3481_v4, %v3447_v46  ;;  %v3525_v54 = vmul.f32 %v3447_v46, %v3159_v58  ;;  %v2507_v52 = vadd.f32 %v2430_v21, %v2122_v26  ;;  %v2977_v4 = vsel %vm2948_vm5, %v2974_v11, %v2976_v57  ;;  %v3312_v26 = vpop.permute.xlu1 %3311 }
 0x268   : > { %v2048_v47 = vpop.f32.mrf.mxu1  ;;  %v5770_v48 = vpop.f32.mrf.mxu3  ;;  %3436 = vperm.xlu2 %4478, %v3258_v44  }
 0x269   : > { %v3560_v34 = vadd.f32 %v3559_v1, %v3525_v54  ;;  %v2900_v15 = vadd.f32 %v5678_v42, %v2507_v52  ;;  %v2707_v42 = vsel %vm2555_vm3, %v5720_v24, %v2706_v60  ;;  %v2123_v61 = vadd.f32 %v2048_v47, %v5922_v8  ;;  %v5785_v54 = vld [vmem:[%s4562_s28 + $0x80] sm:$0xff] }
 0x26a   : > { %v2325_v52 = vrot.slane %v5684_v19, 2 }
 0x26b   : > { %v3086_v35 = vpop.f32.mrf.mxu0  ;;  %2087 = vmatmul.bf16.gmra.mxu1 %v1939_v56  ;;  %2472 = vmatmul.bf16.gmra.mxu2 %v2324_v36  ;;  %v3160_v63 = vadd.f32 %v3083_v49, %v2900_v15  ;;  %v2709_v49 = vshrl.u32 %v5775_v25, 16  ;;  %v2714_v56 = vrot.slane %v2712_v17, 3  ;;  %v5923_v36 = vld [vmem:[#allocation10_spill] sm:$0xff] }
 0x26c   : > { %v2326_v8 = vsel %vm1910_vm4, %v2323_v12, %v2325_v52 }
 0x26d   : > { %3196 = vst [vmem:[%s5537_s19 + $0x48] sm:$0xff] %v3160_v63  ;;  %v3448_v11 = vmul.f32 %v3307_v33, %v3160_v63  ;;  %2875 = vmatmul.bf16.gmra.mxu3 %v2707_v42  ;;  %v2711_v47 = vrot.slane %v2709_v49, 2  ;;  %v3317_v49 = vpop.permute.xlu2 %3316 }
 0x26e   : > { %3125 = vmatmul.bf16.gmra.mxu0 %v2977_v4  ;;  %v2433_v1 = vpop.f32.mrf.mxu2 }
 0x26f   : > { %v3483_v3 = vadd.f32 %v3482_v39, %v3448_v11  ;;  %v3526_v55 = vmul.f32 %v3448_v11, %v3160_v63  ;;  %v2508_v30 = vadd.f32 %v2433_v1, %v2123_v61  ;;  %v1940_v39 = vrot.slane %v5785_v54, 2 }
 0x270   : > { %v2050_v58 = vpop.f32.mrf.mxu1  ;;  %v5782_v46 = vpop.f32.mrf.mxu3  ;;  %v2715_v61 = vor.u32 %v2714_v56, %v2711_v47 }
 0x271   : > { %v3561_v37 = vadd.f32 %v3560_v34, %v3526_v55  ;;  %v2901_v24 = vadd.f32 %v5700_v10, %v2508_v30  ;;  %v2124_v15 = vadd.f32 %v2050_v58, %v5923_v36  ;;  %v2978_v10 = vrot.slane %v5684_v19, 3  ;;  %v2534_v58 = vld [vmem:[%s4562_s28 + $0xa0] sm:$0x7] }
 0x272   : > { %v1941_v42 = vsel %vm1910_vm4, %v1938_v45, %v1940_v39  ;;  %v2716_v45 = vsel %vm2555_vm3, %v2706_v60, %v2715_v61 }
 0x273   : > { %v3088_v28 = vpop.f32.mrf.mxu0  ;;  %v3161_v21 = vadd.f32 %v3086_v35, %v2901_v24  ;;  %v2979_v30 = vsel %vm2948_vm5, %v2976_v57, %v2978_v10  ;;  %v5924_v24 = vld [vmem:[#allocation11_spill] sm:$0xff] }
 0x275   : > { %3197 = vst [vmem:[%s5537_s19 + $0x50] sm:$0xff] %v3161_v21  ;;  %v3449_v34 = vmul.f32 %v3312_v26, %v3161_v21 }
 0x276   : > { %v2435_v4 = vpop.f32.mrf.mxu2 }
 0x277   : > { %v3484_v44 = vadd.f32 %v3483_v3, %v3449_v34  ;;  %v3527_v33 = vmul.f32 %v3449_v34, %v3161_v21  ;;  %v2509_v63 = vadd.f32 %v2435_v4, %v2124_v15  ;;  %v2553_v3 = vunpack.c.l.b16 %v2534_v58  ;;  %v3322_v34 = vpop.permute.xlu0 %3321 }
 0x278   : > { %v2053_v35 = vpop.f32.mrf.mxu1  ;;  %v5797_v19 = vpop.f32.mrf.mxu3 }
 0x279   : > { %v3562_v11 = vadd.f32 %v3561_v37, %v3527_v33  ;;  %v2902_v1 = vadd.f32 %v5731_v14, %v2509_v63  ;;  %v5800_v12 = vpack.c.b16 %v2553_v3, %v2553_v3  ;;  %v2125_v37 = vadd.f32 %v2053_v35, %v5924_v24  ;;  %v4500_v63 = vld [vmem:[%s4562_s28 + $0x88] sm:$0xff] }
 0x27a   : > { %v1942_v35 = vrot.slane %v4500_v63, 2  ;;  %v3332_v63 = vpop.permute.xlu2 %3331 }
 0x27b   : > { %v3091_v55 = vpop.f32.mrf.mxu0  ;;  %2092 = vmatmul.bf16.gmra.mxu1 %v1941_v42  ;;  %2477 = vmatmul.bf16.gmra.mxu2 %v2326_v8  ;;  %v3162_v17 = vadd.f32 %v3088_v28, %v2902_v1  ;;  %v2718_v56 = vshrl.u32 %v5800_v12, 16  ;;  %v2721_v28 = vshll.u32 %v5800_v12, 16  ;;  %v5925_v1 = vld [vmem:[#allocation12_spill] sm:$0xff] }
 0x27d   : > { %3198 = vst [vmem:[%s5537_s19 + $0x58] sm:$0xff] %v3162_v17  ;;  %v3450_v14 = vmul.f32 %v3317_v49, %v3162_v17  ;;  %2880 = vmatmul.bf16.gmra.mxu3 %v2716_v45  ;;  %v2720_v42 = vrot.slane %v2718_v56, 2  ;;  %v2723_v8 = vrot.slane %v2721_v28, 3  ;;  %v2980_v49 = vrot.slane %v5737_v6, 3 }
 0x27e   : > { %3130 = vmatmul.bf16.gmra.mxu0 %v2979_v30  ;;  %v2438_v26 = vpop.f32.mrf.mxu2 }
 0x27f   : > { %v3485_v57 = vadd.f32 %v3484_v44, %v3450_v14  ;;  %v3528_v21 = vmul.f32 %v3450_v14, %v3162_v17  ;;  %v2510_v54 = vadd.f32 %v2438_v26, %v2125_v37  ;;  %v2327_v44 = vrot.slane %v5737_v6, 2 }
 0x280   : > { %v2055_v47 = vpop.f32.mrf.mxu1  ;;  %v5807_v4 = vpop.f32.mrf.mxu3  ;;  %v2724_v37 = vor.u32 %v2723_v8, %v2720_v42  ;;  %v4501_v8 = vld [vmem:[%s4562_s28 + $0x90] sm:$0xff] }
 0x281   : > { %v3563_v36 = vadd.f32 %v3562_v11, %v3528_v21  ;;  %v2903_v60 = vadd.f32 %v5747_v27, %v2510_v54  ;;  %v2126_v30 = vadd.f32 %v2055_v47, %v5925_v1  ;;  %v2328_v24 = vsel %vm1910_vm4, %v2325_v52, %v2327_v44  ;;  %v3327_v47 = vpop.permute.xlu1 %3326 }
 0x282   : > { %v2981_v54 = vsel %vm2948_vm5, %v2978_v10, %v2980_v49  ;;  %v1944_v1 = vrot.slane %v4501_v8, 2  ;;  %v2984_v8 = vrot.slane %v5800_v12, 3 }
 0x283   : > { %v3093_v15 = vpop.f32.mrf.mxu0  ;;  %v3163_v33 = vadd.f32 %v3091_v55, %v2903_v60  ;;  %v1943_v55 = vsel %vm1910_vm4, %v1940_v39, %v1942_v35 }
 0x285   : > { %3199 = vst [vmem:[%s5537_s19 + $0x60] sm:$0xff] %v3163_v33  ;;  %v3451_v58 = vmul.f32 %v3322_v34, %v3163_v33 }
 0x286   : > { %v2440_v11 = vpop.f32.mrf.mxu2 }
 0x287   : > { %v3486_v3 = vadd.f32 %v3485_v57, %v3451_v58  ;;  %v3529_v27 = vmul.f32 %v3451_v58, %v3163_v33  ;;  %v2511_v17 = vadd.f32 %v2440_v11, %v2126_v30  ;;  %v2725_v57 = vsel %vm2555_vm3, %v2715_v61, %v2724_v37 }
 0x288   : > { %v2058_v45 = vpop.f32.mrf.mxu1  ;;  %v5818_v56 = vpop.f32.mrf.mxu3  ;;  %v2982_v11 = vrot.slane %v5775_v25, 3 }
 0x289   : > { %v3564_v14 = vadd.f32 %v3563_v36, %v3529_v27  ;;  %v2904_v26 = vadd.f32 %v5770_v48, %v2511_v17  ;;  %v2127_v39 = vadd.f32 %v2058_v45, %v5212_v5  ;;  %v2329_v5 = vrot.slane %v5775_v25, 2 }
 0x28b   : > { %v3096_v21 = vpop.f32.mrf.mxu0  ;;  %v3164_v6 = vadd.f32 %v3093_v15, %v2904_v26  ;;  %2097 = vmatmul.bf16.gmra.mxu1 %v1943_v55  ;;  %2482 = vmatmul.bf16.gmra.mxu2 %v2328_v24  ;;  %v1945_v55 = vsel %vm1910_vm4, %v1942_v35, %v1944_v1  ;;  %v2330_v24 = vsel %vm1910_vm4, %v2327_v44, %v2329_v5 }
 0x28d   : > { %3200 = vst [vmem:[%s5537_s19 + $0x68] sm:$0xff] %v3164_v6  ;;  %v3452_v52 = vmul.f32 %v3327_v47, %v3164_v6  ;;  %2885 = vmatmul.bf16.gmra.mxu3 %v2725_v57 }
 0x28e   : > { %3135 = vmatmul.bf16.gmra.mxu0 %v2981_v54  ;;  %v2443_v28 = vpop.f32.mrf.mxu2  ;;  %v3337_v54 = vpop.permute.xlu0 %3336 }
 0x28f   : > { %v3487_v48 = vadd.f32 %v3486_v3, %v3452_v52  ;;  %v3530_v36 = vmul.f32 %v3452_v52, %v3164_v6  ;;  %v2512_v60 = vadd.f32 %v2443_v28, %v2127_v39 }
 0x290   : > { %v2060_v10 = vpop.f32.mrf.mxu1  ;;  %v5824_v42 = vpop.f32.mrf.mxu3 }
 0x291   : > { %v3565_v34 = vadd.f32 %v3564_v14, %v3530_v36  ;;  %v2905_v15 = vadd.f32 %v5782_v46, %v2512_v60  ;;  %v2128_v30 = vadd.f32 %v2060_v10, %v5223_v23  ;;  %v2185_v23 = vld [vmem:[%s4562_s28 + $0xa0] sm:$0x3]  ;;  %v3342_v10 = vpop.permute.xlu1 %3341  ;;  %s3688_s28 = sshll.u32 %s5927_s16, 1 }
 0x292   : > { %v2276_v6 = vunpack.c.l.b16 %v2185_v23  ;;  %s208_s11 = scalar_lea.vmem %s5899_s4, %s3688_s28 }
 0x293   : > { %v3098_v33 = vpop.f32.mrf.mxu0  ;;  %v3165_v61 = vadd.f32 %v3096_v21, %v2905_v15  ;;  %v2983_v21 = vsel %vm2948_vm5, %v2980_v49, %v2982_v11 }
 0x294   : > { %v2295_v49 = vpack.c.b16 %v2276_v6, %v2276_v6 }
 0x295   : > { %3201 = vst [vmem:[%s5537_s19 + $0x70] sm:$0xff] %v3165_v61  ;;  %v3453_v58 = vmul.f32 %v3332_v63, %v3165_v61 }
 0x296   : > { %v2445_v3 = vpop.f32.mrf.mxu2  ;;  %v2331_v63 = vrot.slane %v2295_v49, 2  ;;  %v3352_v6 = vpop.permute.xlu0 %3351 }
 0x297   : > { %v3488_v27 = vadd.f32 %v3487_v48, %v3453_v58  ;;  %v3531_v17 = vmul.f32 %v3453_v58, %v3165_v61  ;;  %v2513_v46 = vadd.f32 %v2445_v3, %v2128_v30 }
 0x298   : > { %v2063_v45 = vpop.f32.mrf.mxu1  ;;  %v5836_v47 = vpop.f32.mrf.mxu3 }
 0x299   : > { %v3566_v37 = vadd.f32 %v3565_v34, %v3531_v17  ;;  %v2906_v14 = vadd.f32 %v5797_v19, %v2513_v46  ;;  %v2129_v35 = vadd.f32 %v2063_v45, %v5237_v38  ;;  %v2332_v46 = vsel %vm1910_vm4, %v2329_v5, %v2331_v63 }
 0x29b   : > { %v3101_v26 = vpop.f32.mrf.mxu0  ;;  %v3166_v25 = vadd.f32 %v3098_v33, %v2906_v14  ;;  %2102 = vmatmul.bf16.gmra.mxu1 %v1945_v55  ;;  %2487 = vmatmul.bf16.gmra.mxu2 %v2330_v24  ;;  %v1946_v33 = vrot.slane %v5218_v7, 2  ;;  %v2985_v24 = vsel %vm2948_vm5, %v2982_v11, %v2984_v8 }
 0x29d   : > { %3202 = vst [vmem:[%s5537_s19 + $0x78] sm:$0xff] %v3166_v25  ;;  %v3454_v44 = vmul.f32 %v3337_v54, %v3166_v25 }
 0x29e   : > { %3140 = vmatmul.bf16.gmra.mxu0 %v2983_v21  ;;  %v2448_v57 = vpop.f32.mrf.mxu2 }
 0x29f   : > { %v3489_v39 = vadd.f32 %v3488_v27, %v3454_v44  ;;  %v3532_v19 = vmul.f32 %v3454_v44, %v3166_v25  ;;  %v2514_v52 = vadd.f32 %v2448_v57, %v2129_v35 }
 0x2a0   : > { %v2065_v28 = vpop.f32.mrf.mxu1  ;;  %v2851_v34 = vpop.f32.mrf.mxu3 }
 0x2a1   : > { %v3567_v48 = vadd.f32 %v3566_v37, %v3532_v19  ;;  %v2907_v36 = vadd.f32 %v5807_v4, %v2514_v52  ;;  %v2130_v38 = vadd.f32 %v2065_v28, %v5248_v31  ;;  %v1947_v4 = vsel %vm1910_vm4, %v1944_v1, %v1946_v33  ;;  %v3347_v31 = vpop.permute.xlu2 %3346 }
 0x2a3   : > { %v3103_v60 = vpop.f32.mrf.mxu0  ;;  %v3167_v15 = vadd.f32 %v3101_v26, %v2907_v36 }
 0x2a5   : > { %3203 = vst [vmem:[%s5537_s19 + $0x80] sm:$0xff] %v3167_v15  ;;  %v3455_v61 = vmul.f32 %v3342_v10, %v3167_v15 }
 0x2a6   : > { %v2450_v30 = vpop.f32.mrf.mxu2 }
 0x2a7   : > { %v3490_v58 = vadd.f32 %v3489_v39, %v3455_v61  ;;  %v3533_v3 = vmul.f32 %v3455_v61, %v3167_v15  ;;  %v2515_v27 = vadd.f32 %v2450_v30, %v2130_v38 }
 0x2a8   : > { %v2068_v17 = vpop.f32.mrf.mxu1  ;;  %v2853_v12 = vpop.f32.mrf.mxu3 }
 0x2a9   : > { %v3568_v45 = vadd.f32 %v3567_v48, %v3533_v3  ;;  %v2908_v7 = vadd.f32 %v5818_v56, %v2515_v27  ;;  %v2131_v14 = vadd.f32 %v2068_v17, %v5268_v50 }
 0x2ab   : > { %v3106_v55 = vpop.f32.mrf.mxu0  ;;  %v3168_v37 = vadd.f32 %v3103_v60, %v2908_v7  ;;  %2107 = vmatmul.bf16.gmra.mxu1 %v1947_v4  ;;  %2492 = vmatmul.bf16.gmra.mxu2 %v2332_v46 }
 0x2ad   : > { %3204 = vst [vmem:[%s5537_s19 + $0x88] sm:$0xff] %v3168_v37  ;;  %v3456_v26 = vmul.f32 %v3347_v31, %v3168_v37 }
 0x2ae   : > { %3145 = vmatmul.bf16.gmra.mxu0 %v2985_v24  ;;  %v2453_v1 = vpop.f32.mrf.mxu2 }
 0x2af   : > { %v3491_v21 = vadd.f32 %v3490_v58, %v3456_v26  ;;  %v3534_v5 = vmul.f32 %v3456_v26, %v3168_v37  ;;  %v2516_v23 = vadd.f32 %v2453_v1, %v2131_v14 }
 0x2b0   : > { %v2070_v54 = vpop.f32.mrf.mxu1  ;;  %v2856_v19 = vpop.f32.mrf.mxu3 }
 0x2b1   : > { %v3569_v56 = vadd.f32 %v3568_v45, %v3534_v5  ;;  %v2909_v25 = vadd.f32 %v5824_v42, %v2516_v23  ;;  %v2132_v44 = vadd.f32 %v2070_v54, %v5283_v59  ;;  %v3357_v42 = vpop.permute.xlu1 %3356 }
 0x2b3   : > { %v3108_v11 = vpop.f32.mrf.mxu0  ;;  %v3169_v35 = vadd.f32 %v3106_v55, %v2909_v25 }
 0x2b5   : > { %3205 = vst [vmem:[%s5537_s19 + $0x90] sm:$0xff] %v3169_v35  ;;  %v3457_v57 = vmul.f32 %v3352_v6, %v3169_v35 }
 0x2b6   : > { %v2455_v39 = vpop.f32.mrf.mxu2 }
 0x2b7   : > { %v3492_v50 = vadd.f32 %v3491_v21, %v3457_v57  ;;  %v3535_v52 = vmul.f32 %v3457_v57, %v3169_v35  ;;  %v2517_v28 = vadd.f32 %v2455_v39, %v2132_v44 }
 0x2b8   : > { %v2073_v49 = vpop.f32.mrf.mxu1  ;;  %v2858_v30 = vpop.f32.mrf.mxu3 }
 0x2b9   : > { %v3570_v48 = vadd.f32 %v3569_v56, %v3535_v52  ;;  %v2910_v36 = vadd.f32 %v5836_v47, %v2517_v28  ;;  %v2133_v15 = vadd.f32 %v2073_v49, %v5298_v13  ;;  %v3362_v47 = vpop.permute.xlu2 %3361 }
 0x2bb   : > { %v3111_v60 = vpop.f32.mrf.mxu0  ;;  %v3170_v10 = vadd.f32 %v3108_v11, %v2910_v36 }
 0x2bd   : > { %3206 = vst [vmem:[%s5537_s19 + $0x98] sm:$0xff] %v3170_v10  ;;  %v3458_v33 = vmul.f32 %v3357_v42, %v3170_v10 }
 0x2be   : > { %v2458_v63 = vpop.f32.mrf.mxu2 }
 0x2bf   : > { %v3493_v59 = vadd.f32 %v3492_v50, %v3458_v33  ;;  %v3536_v38 = vmul.f32 %v3458_v33, %v3170_v10  ;;  %v2518_v61 = vadd.f32 %v2458_v63, %v2133_v15 }
 0x2c0   : > { %v2075_v8 = vpop.f32.mrf.mxu1  ;;  %v2861_v26 = vpop.f32.mrf.mxu3 }
 0x2c1   : > { %v3571_v58 = vadd.f32 %v3570_v48, %v3536_v38  ;;  %v2911_v3 = vadd.f32 %v2851_v34, %v2518_v61  ;;  %v2134_v46 = vadd.f32 %v2075_v8, %v5313_v40  ;;  %v3367_v34 = vpop.permute.xlu0 %3366 }
 0x2c3   : > { %v3113_v27 = vpop.f32.mrf.mxu0  ;;  %v3171_v17 = vadd.f32 %v3111_v60, %v2911_v3 }
 0x2c5   : > { %3207 = vst [vmem:[%s5537_s19 + $0xa0] sm:$0xff] %v3171_v17  ;;  %v3459_v4 = vmul.f32 %v3362_v47, %v3171_v17 }
 0x2c6   : > { %v2460_v45 = vpop.f32.mrf.mxu2 }
 0x2c7   : > { %v3494_v7 = vadd.f32 %v3493_v59, %v3459_v4  ;;  %v3537_v13 = vmul.f32 %v3459_v4, %v3171_v17  ;;  %v2519_v55 = vadd.f32 %v2460_v45, %v2134_v46 }
 0x2c8   : > { %v2078_v24 = vpop.f32.mrf.mxu1  ;;  %v2863_v57 = vpop.f32.mrf.mxu3 }
 0x2c9   : > { %v3572_v31 = vadd.f32 %v3571_v58, %v3537_v13  ;;  %v2912_v37 = vadd.f32 %v2853_v12, %v2519_v55  ;;  %v2135_v5 = vadd.f32 %v2078_v24, %v5325_v53  ;;  %v3372_v12 = vpop.permute.xlu1 %3371 }
 0x2cb   : > { %v3116_v14 = vpop.f32.mrf.mxu0  ;;  %v3172_v1 = vadd.f32 %v3113_v27, %v2912_v37 }
 0x2cd   : > { %3208 = vst [vmem:[%s5537_s19 + $0xa8] sm:$0xff] %v3172_v1  ;;  %v3460_v21 = vmul.f32 %v3367_v34, %v3172_v1 }
 0x2ce   : > { %v2463_v23 = vpop.f32.mrf.mxu2 }
 0x2cf   : > { %v3495_v54 = vadd.f32 %v3494_v7, %v3460_v21  ;;  %v3538_v56 = vmul.f32 %v3460_v21, %v3172_v1  ;;  %v2520_v40 = vadd.f32 %v2463_v23, %v2135_v5 }
 0x2d0   : > { %v2080_v25 = vpop.f32.mrf.mxu1  ;;  %v2866_v59 = vpop.f32.mrf.mxu3 }
 0x2d1   : > { %v3573_v11 = vadd.f32 %v3572_v31, %v3538_v56  ;;  %v2913_v6 = vadd.f32 %v2856_v19, %v2520_v40  ;;  %v2136_v50 = vadd.f32 %v2080_v25, %v5337_v2  ;;  %v3377_v19 = vpop.permute.xlu2 %3376 }
 0x2d3   : > { %v3118_v35 = vpop.f32.mrf.mxu0  ;;  %v3173_v44 = vadd.f32 %v3116_v14, %v2913_v6 }
 0x2d5   : > { %3209 = vst [vmem:[%s5537_s19 + $0xb0] sm:$0xff] %v3173_v44  ;;  %v3461_v39 = vmul.f32 %v3372_v12, %v3173_v44 }
 0x2d6   : > { %v2465_v52 = vpop.f32.mrf.mxu2 }
 0x2d7   : > { %v3496_v28 = vadd.f32 %v3495_v54, %v3461_v39  ;;  %v3539_v49 = vmul.f32 %v3461_v39, %v3173_v44  ;;  %v2521_v53 = vadd.f32 %v2465_v52, %v2136_v50 }
 0x2d8   : > { %v2083_v48 = vpop.f32.mrf.mxu1  ;;  %v2868_v55 = vpop.f32.mrf.mxu3 }
 0x2d9   : > { %v3574_v36 = vadd.f32 %v3573_v11, %v3539_v49  ;;  %v2914_v60 = vadd.f32 %v2858_v30, %v2521_v53  ;;  %v2137_v33 = vadd.f32 %v2083_v48, %v5352_v16  ;;  %v3382_v30 = vpop.permute.xlu0 %3381 }
 0x2db   : > { %v3121_v10 = vpop.f32.mrf.mxu0  ;;  %v3174_v42 = vadd.f32 %v3118_v35, %v2914_v60  ;;  %v3392_v35 = vpop.permute.xlu2 %3391 }
 0x2dd   : > { %3210 = vst [vmem:[%s5537_s19 + $0xb8] sm:$0xff] %v3174_v42  ;;  %v3462_v15 = vmul.f32 %v3377_v19, %v3174_v42 }
 0x2de   : > { %v2468_v63 = vpop.f32.mrf.mxu2 }
 0x2df   : > { %v3497_v38 = vadd.f32 %v3496_v28, %v3462_v15  ;;  %v3540_v61 = vmul.f32 %v3462_v15, %v3174_v42  ;;  %v2522_v2 = vadd.f32 %v2468_v63, %v2137_v33 }
 0x2e0   : > { %v2085_v8 = vpop.f32.mrf.mxu1  ;;  %v2871_v11 = vpop.f32.mrf.mxu3 }
 0x2e1   : > { %v3575_v58 = vadd.f32 %v3574_v36, %v3540_v61  ;;  %v2915_v3 = vadd.f32 %v2861_v26, %v2522_v2  ;;  %v2138_v4 = vadd.f32 %v2085_v8, %v5370_v62  ;;  %v3387_v26 = vpop.permute.xlu1 %3386  ;;  %v3397_v36 = vpop.permute.xlu0 %3396 }
 0x2e3   : > { %v3123_v27 = vpop.f32.mrf.mxu0  ;;  %v3175_v17 = vadd.f32 %v3121_v10, %v2915_v3 }
 0x2e5   : > { %3211 = vst [vmem:[%s5537_s19 + $0xc0] sm:$0xff] %v3175_v17  ;;  %v3463_v47 = vmul.f32 %v3382_v30, %v3175_v17 }
 0x2e6   : > { %v2470_v46 = vpop.f32.mrf.mxu2 }
 0x2e7   : > { %v3498_v45 = vadd.f32 %v3497_v38, %v3463_v47  ;;  %v3541_v7 = vmul.f32 %v3463_v47, %v3175_v17  ;;  %v2523_v16 = vadd.f32 %v2470_v46, %v2138_v4 }
 0x2e8   : > { %v2088_v13 = vpop.f32.mrf.mxu1  ;;  %v2873_v60 = vpop.f32.mrf.mxu3 }
 0x2e9   : > { %v3576_v24 = vadd.f32 %v3575_v58, %v3541_v7  ;;  %v2916_v31 = vadd.f32 %v2863_v57, %v2523_v16  ;;  %v2139_v34 = vadd.f32 %v2088_v13, %v5385_v9  ;;  %v3402_v8 = vpop.permute.xlu1 %3401  ;;  %v3407_v13 = vpop.permute.xlu2 %3406 }
 0x2eb   : > { %v3126_v37 = vpop.f32.mrf.mxu0  ;;  %v3176_v14 = vadd.f32 %v3123_v27, %v2916_v31 }
 0x2ed   : > { %3212 = vst [vmem:[%s5537_s19 + $0xc8] sm:$0xff] %v3176_v14  ;;  %v3464_v1 = vmul.f32 %v3387_v26, %v3176_v14 }
 0x2ee   : > { %v2473_v21 = vpop.f32.mrf.mxu2 }
 0x2ef   : > { %v3499_v5 = vadd.f32 %v3498_v45, %v3464_v1  ;;  %v3542_v23 = vmul.f32 %v3464_v1, %v3176_v14  ;;  %v2524_v62 = vadd.f32 %v2473_v21, %v2139_v34 }
 0x2f0   : > { %v2090_v54 = vpop.f32.mrf.mxu1  ;;  %v2876_v17 = vpop.f32.mrf.mxu3 }
 0x2f1   : > { %v3577_v56 = vadd.f32 %v3576_v24, %v3542_v23  ;;  %v2917_v40 = vadd.f32 %v2866_v59, %v2524_v62  ;;  %v2140_v12 = vadd.f32 %v2090_v54, %v5400_v22  ;;  %v3412_v62 = vpop.permute.xlu0 %3411 }
 0x2f3   : > { %v3128_v25 = vpop.f32.mrf.mxu0  ;;  %v3177_v6 = vadd.f32 %v3126_v37, %v2917_v40 }
 0x2f5   : > { %3213 = vst [vmem:[%s5537_s19 + $0xd0] sm:$0xff] %v3177_v6  ;;  %v3465_v44 = vmul.f32 %v3392_v35, %v3177_v6 }
 0x2f6   : > { %v2475_v57 = vpop.f32.mrf.mxu2 }
 0x2f7   : > { %v3500_v39 = vadd.f32 %v3499_v5, %v3465_v44  ;;  %v3543_v50 = vmul.f32 %v3465_v44, %v3177_v6  ;;  %v2525_v9 = vadd.f32 %v2475_v57, %v2140_v12 }
 0x2f8   : > { %v2093_v52 = vpop.f32.mrf.mxu1  ;;  %v2878_v1 = vpop.f32.mrf.mxu3 }
 0x2f9   : > { %v3578_v28 = vadd.f32 %v3577_v56, %v3543_v50  ;;  %v2918_v49 = vadd.f32 %v2868_v55, %v2525_v9  ;;  %v2141_v42 = vadd.f32 %v2093_v52, %v5415_v18 }
 0x2fb   : > { %v3131_v53 = vpop.f32.mrf.mxu0  ;;  %v3178_v48 = vadd.f32 %v3128_v25, %v2918_v49 }
 0x2fd   : > { %3214 = vst [vmem:[%s5537_s19 + $0xd8] sm:$0xff] %v3178_v48  ;;  %v3466_v10 = vmul.f32 %v3397_v36, %v3178_v48 }
 0x2fe   : > { %v2478_v19 = vpop.f32.mrf.mxu2 }
 0x2ff   : > { %v3501_v15 = vadd.f32 %v3500_v39, %v3466_v10  ;;  %v3544_v33 = vmul.f32 %v3466_v10, %v3178_v48  ;;  %v2526_v22 = vadd.f32 %v2478_v19, %v2141_v42  ;;  %v3417_v39 = vpop.permute.xlu1 %3416  ;;  %v3422_v42 = vpop.permute.xlu2 %3421 }
 0x300   : > { %v2095_v63 = vpop.f32.mrf.mxu1  ;;  %v2881_v12 = vpop.f32.mrf.mxu3 }
 0x301   : > { %v3579_v59 = vadd.f32 %v3578_v28, %v3544_v33  ;;  %v2919_v38 = vadd.f32 %v2871_v11, %v2526_v22  ;;  %v2142_v3 = vadd.f32 %v2095_v63, %v5430_v43 }
 0x303   : > { %v3133_v61 = vpop.f32.mrf.mxu0  ;;  %v3179_v2 = vadd.f32 %v3131_v53, %v2919_v38 }
 0x305   : > { %3215 = vst [vmem:[%s5537_s19 + $0xe0] sm:$0xff] %v3179_v2  ;;  %v3467_v58 = vmul.f32 %v3402_v8, %v3179_v2 }
 0x306   : > { %v2480_v27 = vpop.f32.mrf.mxu2 }
 0x307   : > { %v3502_v30 = vadd.f32 %v3501_v15, %v3467_v58  ;;  %v3545_v47 = vmul.f32 %v3467_v58, %v3179_v2  ;;  %v2527_v18 = vadd.f32 %v2480_v27, %v2142_v3  ;;  %v3427_v3 = vpop.permute.xlu0 %3426 }
 0x308   : > { %v2098_v4 = vpop.f32.mrf.mxu1  ;;  %v2883_v19 = vpop.f32.mrf.mxu3 }
 0x309   : > { %v3580_v46 = vadd.f32 %v3579_v59, %v3545_v47  ;;  %v2920_v45 = vadd.f32 %v2873_v60, %v2527_v18  ;;  %v2143_v24 = vadd.f32 %v2098_v4, %v5445_v41 }
 0x30b   : > { %v3136_v7 = vpop.f32.mrf.mxu0  ;;  %v3180_v16 = vadd.f32 %v3133_v61, %v2920_v45 }
 0x30d   : > { %3216 = vst [vmem:[%s5537_s19 + $0xe8] sm:$0xff] %v3180_v16  ;;  %v3468_v55 = vmul.f32 %v3407_v13, %v3180_v16 }
 0x30e   : > { %v2483_v31 = vpop.f32.mrf.mxu2 }
 0x30f   : > { %v3503_v37 = vadd.f32 %v3502_v30, %v3468_v55  ;;  %v3546_v14 = vmul.f32 %v3468_v55, %v3180_v16  ;;  %v2528_v43 = vadd.f32 %v2483_v31, %v2143_v24  ;;  %v3432_v55 = vpop.permute.xlu1 %3431 }
 0x310   : > { %v2100_v26 = vpop.f32.mrf.mxu1  ;;  %v2886_v30 = vpop.f32.mrf.mxu3 }
 0x311   : > { %v3581_v34 = vadd.f32 %v3580_v46, %v3546_v14  ;;  %v2921_v21 = vadd.f32 %v2876_v17, %v2528_v43  ;;  %v2144_v56 = vadd.f32 %v2100_v26, %v5460_v32 }
 0x313   : > { %v3138_v5 = vpop.f32.mrf.mxu0  ;;  %v3181_v23 = vadd.f32 %v3136_v7, %v2921_v21 }
 0x315   : > { %3217 = vst [vmem:[%s5537_s19 + $0xf0] sm:$0xff] %v3181_v23  ;;  %v3469_v54 = vmul.f32 %v3412_v62, %v3181_v23 }
 0x316   : > { %v2485_v40 = vpop.f32.mrf.mxu2 }
 0x317   : > { %v3504_v25 = vadd.f32 %v3503_v37, %v3469_v54  ;;  %v3547_v11 = vmul.f32 %v3469_v54, %v3181_v23  ;;  %v2529_v41 = vadd.f32 %v2485_v40, %v2144_v56  ;;  %v3437_v23 = vpop.permute.xlu2 %3436 }
 0x318   : > { %v2103_v6 = vpop.f32.mrf.mxu1  ;;  %v2888_v26 = vpop.f32.mrf.mxu3 }
 0x319   : > { %v3582_v35 = vadd.f32 %v3581_v34, %v3547_v11  ;;  %v2922_v44 = vadd.f32 %v2878_v1, %v2529_v41  ;;  %v2145_v52 = vadd.f32 %v2103_v6, %v5475_v29 }
 0x31b   : > { %v3182_v57 = vadd.f32 %v3138_v5, %v2922_v44  ;;  %v3141_v50 = vpop.f32.mrf.mxu0 }
 0x31d   : > { %3218 = vst [vmem:[%s5537_s19 + $0xf8] sm:$0xff] %v3182_v57  ;;  %v3470_v9 = vmul.f32 %v3417_v39, %v3182_v57 }
 0x31e   : > { %v2488_v28 = vpop.f32.mrf.mxu2 }
 0x31f   : > { %v3505_v49 = vadd.f32 %v3504_v25, %v3470_v9  ;;  %v3548_v53 = vmul.f32 %v3470_v9, %v3182_v57  ;;  %v2530_v32 = vadd.f32 %v2488_v28, %v2145_v52 }
 0x320   : > { %v2105_v48 = vpop.f32.mrf.mxu1 }
 0x321   : > { %v3583_v36 = vadd.f32 %v3582_v35, %v3548_v53  ;;  %v2923_v60 = vadd.f32 %v2881_v12, %v2530_v32  ;;  %v2146_v33 = vadd.f32 %v2105_v48, %v5490_v20 }
 0x323   : > { %v3183_v10 = vadd.f32 %v3141_v50, %v2923_v60  ;;  %v3143_v22 = vpop.f32.mrf.mxu0 }
 0x325   : > { %3219 = vst [vmem:[%s5537_s19 + $0x100] sm:$0xff] %v3183_v10  ;;  %v3471_v15 = vmul.f32 %v3422_v42, %v3183_v10 }
 0x326   : > { %v2490_v63 = vpop.f32.mrf.mxu2 }
 0x327   : > { %v3506_v59 = vadd.f32 %v3505_v49, %v3471_v15  ;;  %v3549_v38 = vmul.f32 %v3471_v15, %v3183_v10  ;;  %v2531_v29 = vadd.f32 %v2490_v63, %v2146_v33 }
 0x328   : > { %v2108_v61 = vpop.f32.mrf.mxu1 }
 0x329   : > { %v3584_v2 = vadd.f32 %v3583_v36, %v3549_v38  ;;  %v2924_v8 = vadd.f32 %v2883_v19, %v2531_v29  ;;  %v2147_v17 = vadd.f32 %v2108_v61, %v5505_v51 }
 0x32b   : > { %v3184_v58 = vadd.f32 %v3143_v22, %v2924_v8  ;;  %v3146_v46 = vpop.f32.mrf.mxu0 }
 0x32d   : > { %3220 = vst [vmem:[%s5537_s19 + $0x108] sm:$0xff] %v3184_v58  ;;  %v3472_v27 = vmul.f32 %v3427_v3, %v3184_v58 }
 0x32e   : > { %v2493_v47 = vpop.f32.mrf.mxu2 }
 0x32f   : > { %v3507_v18 = vadd.f32 %v3506_v59, %v3472_v27  ;;  %v3550_v4 = vmul.f32 %v3472_v27, %v3184_v58  ;;  %v2532_v20 = vadd.f32 %v2493_v47, %v2147_v17 }
 0x330   : > { %v2110_v16 = vpop.f32.mrf.mxu1 }
 0x331   : > { %v3585_v45 = vadd.f32 %v3584_v2, %v3550_v4  ;;  %v2925_v7 = vadd.f32 %v2886_v30, %v2532_v20  ;;  %v2148_v31 = vadd.f32 %v2110_v16, %v5520_v0 }
 0x333   : > { %v3185_v13 = vadd.f32 %v3146_v46, %v2925_v7  ;;  %v3148_v21 = vpop.f32.mrf.mxu0 }
 0x335   : > { %3221 = vst [vmem:[%s5537_s19 + $0x110] sm:$0xff] %v3185_v13  ;;  %v3473_v24 = vmul.f32 %v3432_v55, %v3185_v13 }
 0x336   : > { %v2495_v37 = vpop.f32.mrf.mxu2 }
 0x337   : > { %v3508_v14 = vadd.f32 %v3507_v18, %v3473_v24  ;;  %v3551_v43 = vmul.f32 %v3473_v24, %v3185_v13  ;;  %v2533_v51 = vadd.f32 %v2495_v37, %v2148_v31 }
 0x339   : > { %v3586_v1 = vadd.f32 %v3585_v45, %v3551_v43  ;;  %v2926_v34 = vadd.f32 %v2888_v26, %v2533_v51 }
 0x33b   : > { %v3186_v5 = vadd.f32 %v3148_v21, %v2926_v34 }
 0x33d   : > { %3222 = vst [vmem:[%s5537_s19 + $0x118] sm:$0xff] %v3186_v5  ;;  %v3474_v62 = vmul.f32 %v3437_v23, %v3186_v5 }
 0x33f   : > { %v3509_v54 = vadd.f32 %v3508_v14, %v3474_v62  ;;  %v3552_v56 = vmul.f32 %v3474_v62, %v3186_v5 }
 0x341   : > { %v3510_v40 = vrot.slane %v3509_v54, 4  ;;  %v3587_v25 = vadd.f32 %v3586_v1, %v3552_v56 }
 0x343   : > { %v3511_v11 = vadd.f32 %v3510_v40, %v3509_v54  ;;  %v3588_v41 = vrot.slane %v3587_v25, 4 }
 0x345   : > { %v3512_v0 = vrot.slane %v3511_v11, 2  ;;  %v3589_v6 = vadd.f32 %v3588_v41, %v3587_v25 }
 0x347   : > { %v3513_v35 = vadd.f32 %v3512_v0, %v3511_v11  ;;  %v3590_v44 = vrot.slane %v3589_v6, 2 }
 0x349   : > { %v3514_v12 = vrot.slane %v3513_v35, 1  ;;  %v3591_v57 = vadd.f32 %v3590_v44, %v3589_v6 }
 0x34b   : > { %v3515_v39 = vadd.f32 %v3514_v12, %v3513_v35  ;;  %v3592_v50 = vrot.slane %v3591_v57, 1 }
 0x34d   : > { %3516 = vst [vmem:[%s208_s11] sm:$0x1] %v3515_v39  ;;  %v3593_v9 = vadd.f32 %v3592_v50, %v3591_v57 }
 0x34f   : > { %3594 = vst [vmem:[%s208_s11 + $0x1] sm:$0x1] %v3593_v9 }
 0x350 PF: > { %s15_s15 = sadd.s32 1, %s4508_s15  }
 0x351   : > { %p12_p4 = scmp.ge.s32.totalorder %s15_s15, 4  }
 0x353   :  { %14 = sbr.rel (!%p12_p4) target bundleno = 1 (0x1), region = 82 }

</bundles_post_ra>
